<compile_context>
chip_gen: v7x
topology: tpu7x:2x2x1
jax: 0.10.0
libtpu: 0.0.40
codegen_flags: <defaults>
</compile_context>

<pallas_src>
import functools

import jax
import jax.numpy as jnp
from jax.experimental import pallas as pl
from jax.experimental.pallas import tpu as pltpu


# ----------------------------------------------------------------------------
# Shared static helper: relative position bias (nh, ws*ws, ws*ws).
# ----------------------------------------------------------------------------
def _relative_position_bias(table, ws, num_heads):
    coords = jnp.stack(jnp.meshgrid(jnp.arange(ws), jnp.arange(ws), indexing='ij'))
    cf = coords.reshape(2, -1)                                  # (2, n)
    rel = cf[:, :, None] - cf[:, None, :]                       # (2, n, n)
    rel = jnp.transpose(rel, (1, 2, 0)) + (ws - 1)              # (n, n, 2)
    idx = rel[..., 0] * (2 * ws - 1) + rel[..., 1]              # (n, n)
    bias = table[idx.reshape(-1)].reshape(ws * ws, ws * ws, num_heads)
    return jnp.transpose(bias, (2, 0, 1)).astype(jnp.float32)   # (nh, n, n)


# ----------------------------------------------------------------------------
# Kernel 1: fused qkv 1x1 conv + per-window multi-head attention.
# One grid step = one batch element x one row of windows (block (1, ws, Wp, C)).
# ----------------------------------------------------------------------------
def _window_attn_kernel(x_ref, wqkv_ref, bias_ref, o_ref, *, ws, nh, hd, C, ww):
    f32, bf16 = jnp.float32, jnp.bfloat16
    n = ws * ws
    Wp = ww * ws

    # One big qkv matmul for the whole row of windows (M = ws*Wp).
    x2 = x_ref[...].reshape(ws * Wp, C)                              # bf16
    qkv = jnp.dot(x2, wqkv_ref[...], preferred_element_type=f32)     # (ws*Wp, 3C)
    qkv = qkv.astype(bf16).reshape(ws, Wp, 3 * C)                    # bf16 for MXU

    bias = bias_ref[...]                                             # (nh*n, n) f32

    for j in range(ww):                                              # static unroll
        win = qkv[:, j * ws:(j + 1) * ws, :].reshape(n, 3 * C)       # 8-aligned slice
        scores = []
        vs = []
        for h in range(nh):
            q = win[:, h * hd:(h + 1) * hd]                          # scale folded in Wq
            k = win[:, C + h * hd:C + (h + 1) * hd]
            vs.append(win[:, 2 * C + h * hd:2 * C + (h + 1) * hd])
            scores.append(jax.lax.dot_general(                       # bf16 MXU, f32 acc
                q, k, (((1,), (1,)), ((), ())), preferred_element_type=f32))

        # Heads stacked along the sublane axis -> one fused softmax per window.
        s = jnp.concatenate(scores, axis=0) + bias                   # (nh*n, n)
        m = jnp.max(s, axis=-1, keepdims=True)
        e = jnp.exp(s - m)
        p_attn = (e * pl.reciprocal(jnp.sum(e, axis=-1, keepdims=True),
                                    approx=True)).astype(bf16)
        outs = [jnp.dot(p_attn[h * n:(h + 1) * n], vs[h],            # bf16 MXU, f32 acc
                        preferred_element_type=f32)
                for h in range(nh)]
        o = jnp.concatenate(outs, axis=-1)                           # (n, C)
        o_ref[:, :, j * ws:(j + 1) * ws, :] = (
            o.reshape(1, ws, ws, C).astype(o_ref.dtype))


# ----------------------------------------------------------------------------
# Kernel 2: local branch + directional avg pools + SeparableConvBN projection.
# ----------------------------------------------------------------------------
def _post_kernel(x_ref, attn_ref, wl2_ref, l2s_ref, l2b_ref,
                 wl1_ref, l1s_ref, l1b_ref,
                 wdw_ref, dws_ref, dwb_ref, wpw_ref,
                 out_ref, pad_ref, *, H, W, C, ws):
    f32, bf16 = jnp.float32, jnp.bfloat16
    p = ws // 2 - 1                    # == (ws-1)//2 for the even ws required here
    N = H * W
    Ph, Pw = H + ws - 1, W + ws - 1

    # Zero only the border ring (interior + reflect band are fully rewritten by
    # every fill() before being read) -- avoids a full-slab memset per step.
    pad_ref[0:p, :, :] = jnp.zeros((p, Pw, C), f32)
    pad_ref[p + H:Ph, :, :] = jnp.zeros((Ph - p - H, Pw, C), f32)
    pad_ref[p:p + H, 0:p, :] = jnp.zeros((H, p, C), f32)
    pad_ref[p:p + H, p + W:Pw, :] = jnp.zeros((H, Pw - p - W, C), f32)

    def fill(val, reflect):
        # interior at offset (p, p); optional PyTorch-style reflect pad of one
        # extra row/col (row H -> row H-2, col W -> col W-2, corner -> [H-2,W-2]).
        pad_ref[p:p + H, p:p + W, :] = val
        if reflect:
            pad_ref[p:p + H, p + W:p + W + 1, :] = pad_ref[p:p + H, p + W - 2:p + W - 1, :]
            pad_ref[p + H:p + H + 1, p:p + W + 1, :] = pad_ref[p + H - 2:p + H - 1, p:p + W + 1, :]

    x_bf = x_ref[0]                                   # (H, W, C) bf16
    attn = attn_ref[0].astype(f32)                    # (H, W, C) f32

    # ---- local branch: ConvBN(1x1) + ConvBN(3x3) -------------------------
    local = jnp.dot(x_bf.reshape(N, C), wl2_ref[...], preferred_element_type=f32)
    local = local * l2s_ref[...] + l2b_ref[...]

    fill(x_bf.astype(f32), reflect=False)             # zero-padded x
    l1 = jnp.zeros((N, C), f32)
    for kx in range(3):                               # sublane shift hoisted (3 not 9)
        slab = pad_ref[p - 1:p + 1 + H, p - 1 + kx:p - 1 + kx + W, :]   # (H+2, W, C)
        for ky in range(3):
            t = ky * 3 + kx
            tap = slab[ky:ky + H].reshape(N, C).astype(bf16)
            l1 = l1 + jnp.dot(tap, wl1_ref[t * C:(t + 1) * C, :],
                              preferred_element_type=f32)
    local = local + l1 * l1s_ref[...] + l1b_ref[...]

    # ---- directional average pools over the attention map ----------------
    fill(attn, reflect=True)                          # reflect row/col + zero ring
    slab_x = pad_ref[:, p:p + W, :]                   # one sublane shift, reused
    acc_x = slab_x[0:H]
    for k in range(1, ws):
        acc_x = acc_x + slab_x[k:k + H]               # AvgPool (ws, 1)
    acc_y = pad_ref[p:p + H, 0:W, :]
    for k in range(1, ws):
        acc_y = acc_y + pad_ref[p:p + H, k:k + W, :]  # AvgPool (1, ws)
    s = (acc_x + acc_y) * (1.0 / ws) + local.reshape(H, W, C)

    # ---- proj: depthwise ws x ws -> BN -> 1x1 -----------------------------
    fill(s, reflect=True)                             # pad_out + conv zero pad
    acc = jnp.zeros((H, W, C), f32)
    for kx in range(ws):                              # ws relayouts instead of ws*ws
        slab = pad_ref[:, kx:kx + W, :]               # (Ph, W, C)
        for ky in range(ws):
            acc = acc + slab[ky:ky + H] * wdw_ref[ky * ws + kx]
    dw = acc * dws_ref[...] + dwb_ref[...]
    proj = jnp.dot(dw.reshape(N, C).astype(bf16), wpw_ref[...],
                   preferred_element_type=f32)
    out_ref[...] = proj.reshape(1, H, W, C)


# ----------------------------------------------------------------------------
# Wrapper: layout glue, BN folding, parameter packing, pallas_call plumbing.
# ----------------------------------------------------------------------------
def global_local_attention_pallas(x, params, *, num_heads, window_size):
    B, C, H, W = x.shape
    ws, nh = window_size, num_heads
    assert C % nh == 0 and ws % 2 == 0 and ws >= 4 and H >= 2 and W >= 2
    hd = C // nh
    n = ws * ws
    scale = hd ** -0.5
    f32, bf16 = jnp.float32, jnp.bfloat16
    eps = 1e-5

    # reflect-pad spatial dims to multiples of ws (matches module .pad()).
    pad_h = (ws - H % ws) % ws
    pad_w = (ws - W % ws) % ws
    xpad = x
    if pad_w:
        xpad = jnp.pad(xpad, ((0, 0), (0, 0), (0, 0), (0, pad_w)), mode='reflect')
    if pad_h:
        xpad = jnp.pad(xpad, ((0, 0), (0, 0), (0, pad_h), (0, 0)), mode='reflect')
    Hp, Wp = H + pad_h, W + pad_w
    hh, ww = Hp // ws, Wp // ws
    no_pad = (pad_h == 0 and pad_w == 0)

    xp_nhwc = jnp.transpose(xpad, (0, 2, 3, 1)).astype(bf16)   # (B, Hp, Wp, C)
    x_nhwc = xp_nhwc if no_pad else xp_nhwc[:, :H, :W, :]      # (B, H, W, C)

    def bn_fold(g, b, m, v):
        s = (g / jnp.sqrt(v + eps)).astype(f32)
        return s.reshape(1, C), (b - m * s).astype(f32).reshape(1, C)

    # qkv 1x1 conv weight (attention scale folded into the q columns).
    wqkv = jnp.transpose(params['w_qkv'][:, :, 0, 0]).astype(f32)   # (C, 3C)
    wqkv = wqkv.at[:, :C].multiply(scale).astype(bf16)
    # bias flattened head-major along the sublane axis to match the stacked scores.
    bias = _relative_position_bias(params['rel_pos_table'], ws, nh).reshape(nh * n, n)

    attn_out = pl.pallas_call(
        functools.partial(_window_attn_kernel, ws=ws, nh=nh, hd=hd, C=C, ww=ww),
        out_shape=jax.ShapeDtypeStruct((B, Hp, Wp, C), bf16),
        grid=(B, hh),
        in_specs=[
            pl.BlockSpec((1, ws, Wp, C), lambda b, i: (b, i, 0, 0)),
            pl.BlockSpec((C, 3 * C), lambda b, i: (0, 0)),
            pl.BlockSpec((nh * n, n), lambda b, i: (0, 0)),
        ],
        out_specs=pl.BlockSpec((1, ws, Wp, C), lambda b, i: (b, i, 0, 0)),
        compiler_params=pltpu.CompilerParams(
            dimension_semantics=("parallel", "parallel"),
            vmem_limit_bytes=32 * 1024 * 1024),
    )(xp_nhwc, wqkv, bias)

    # no crop copy when the input was already a window multiple.
    attn_nhwc = attn_out if no_pad else attn_out[:, :H, :W, :]

    # local / projection weights.
    wl2 = jnp.transpose(params['w_local2'][:, :, 0, 0]).astype(bf16)          # (C, C)
    l2s, l2b = bn_fold(params['l2_gamma'], params['l2_beta'],
                       params['l2_mean'], params['l2_var'])
    wl1 = jnp.transpose(params['w_local1'], (2, 3, 1, 0)).reshape(9 * C, C).astype(bf16)
    l1s, l1b = bn_fold(params['l1_gamma'], params['l1_beta'],
                       params['l1_mean'], params['l1_var'])
    wdw = jnp.transpose(params['w_dw'][:, 0, :, :], (1, 2, 0)).reshape(ws * ws, C).astype(f32)
    dws, dwb = bn_fold(params['dw_gamma'], params['dw_beta'],
                       params['dw_mean'], params['dw_var'])
    wpw = jnp.transpose(params['w_pw'][:, :, 0, 0]).astype(bf16)

    cspec = lambda shape: pl.BlockSpec(shape, lambda b, _nd=len(shape): (0,) * _nd)

    # VMEM budget from the actual footprint (scratch + double-buffered blocks),
    # generous margin; re-derive per generation (v7x: 64 MiB physical, needs the
    # spatial-tiling TODO at large H,W anyway).
    vmem2 = ((H + ws - 1) * (W + ws - 1) * C * 4          # f32 scratch pad
             + 2 * 2 * H * W * C * 2                      # x + attn bf16, double-buffered
             + 2 * H * W * C * 4)                         # f32 out, double-buffered
    vmem2 = int(min(96 * 1024 * 1024, max(32 * 1024 * 1024, 3 * vmem2)))

    out_nhwc = pl.pallas_call(
        functools.partial(_post_kernel, H=H, W=W, C=C, ws=ws),
        out_shape=jax.ShapeDtypeStruct((B, H, W, C), f32),
        grid=(B,),
        in_specs=[
            pl.BlockSpec((1, H, W, C), lambda b: (b, 0, 0, 0)),   # x
            pl.BlockSpec((1, H, W, C), lambda b: (b, 0, 0, 0)),   # attention map
            cspec((C, C)), cspec((1, C)), cspec((1, C)),          # local2 + BN
            cspec((9 * C, C)), cspec((1, C)), cspec((1, C)),      # local1 taps + BN
            cspec((ws * ws, C)), cspec((1, C)), cspec((1, C)),    # proj depthwise + BN
            cspec((C, C)),                                        # proj pointwise
        ],
        out_specs=pl.BlockSpec((1, H, W, C), lambda b: (b, 0, 0, 0)),
        scratch_shapes=[pltpu.VMEM((H + ws - 1, W + ws - 1, C), f32)],
        compiler_params=pltpu.CompilerParams(
            dimension_semantics=("parallel",),
            vmem_limit_bytes=vmem2),
    )(x_nhwc, attn_nhwc, wl2, l2s, l2b, wl1, l1s, l1b, wdw, dws, dwb, wpw)

    return jnp.transpose(out_nhwc, (0, 3, 1, 2))                  # NCHW


# ----------------------------------------------------------------------------
# Pure-JAX reference (NCHW, mirrors the PyTorch module) for verification.
# ----------------------------------------------------------------------------
def global_local_attention_reference(x, params, *, num_heads, window_size):
    B, C, H, W = x.shape
    ws, nh = window_size, num_heads
    hd = C // nh
    scale = hd ** -0.5
    PR = jax.lax.Precision.HIGHEST

    def conv(y, w, pad=0, groups=1):
        return jax.lax.conv_general_dilated(
            y, w, (1, 1), [(pad, pad), (pad, pad)],
            feature_group_count=groups,
            dimension_numbers=('NCHW', 'OIHW', 'NCHW'),
            precision=PR, preferred_element_type=jnp.float32)

    def bn(y, g, b, m, v, eps=1e-5):
        s = g / jnp.sqrt(v + eps)
        return y * s.reshape(1, -1, 1, 1) + (b - m * s).reshape(1, -1, 1, 1)

    local = (bn(conv(x, params['w_local2']), params['l2_gamma'], params['l2_beta'],
                params['l2_mean'], params['l2_var'])
             + bn(conv(x, params['w_local1'], pad=1), params['l1_gamma'],
                  params['l1_beta'], params['l1_mean'], params['l1_var']))

    pad_h = (ws - H % ws) % ws
    pad_w = (ws - W % ws) % ws
    xp = x
    if pad_w:
        xp = jnp.pad(xp, ((0, 0), (0, 0), (0, 0), (0, pad_w)), mode='reflect')
    if pad_h:
        xp = jnp.pad(xp, ((0, 0), (0, 0), (0, pad_h), (0, 0)), mode='reflect')
    Hp, Wp = H + pad_h, W + pad_w
    hh, ww = Hp // ws, Wp // ws

    qkv = conv(xp, params['w_qkv'])                               # (B, 3C, Hp, Wp)
    qkv = qkv.reshape(B, 3, nh, hd, hh, ws, ww, ws)
    qkv = jnp.transpose(qkv, (1, 0, 4, 6, 2, 5, 7, 3)).reshape(3, B * hh * ww, nh, ws * ws, hd)
    q, k, v = qkv[0], qkv[1], qkv[2]
    dots = jnp.einsum('bhid,bhjd->bhij', q, k, precision=PR) * scale
    dots = dots + _relative_position_bias(params['rel_pos_table'], ws, nh)[None]
    a = jax.nn.softmax(dots, axis=-1)
    o = jnp.einsum('bhij,bhjd->bhid', a, v, precision=PR)
    o = o.reshape(B, hh, ww, nh, ws, ws, hd)
    o = jnp.transpose(o, (0, 3, 6, 1, 4, 2, 5)).reshape(B, C, Hp, Wp)[:, :, :H, :W]

    p = ws // 2 - 1
    zero = jnp.array(0.0, jnp.float32)
    ob = jnp.pad(o, ((0, 0), (0, 0), (0, 1), (0, 0)), mode='reflect')
    ax = jax.lax.reduce_window(ob, zero, jax.lax.add, (1, 1, ws, 1), (1, 1, 1, 1),
                               [(0, 0), (0, 0), (p, p), (0, 0)]) / ws
    orr = jnp.pad(o, ((0, 0), (0, 0), (0, 0), (0, 1)), mode='reflect')
    ay = jax.lax.reduce_window(orr, zero, jax.lax.add, (1, 1, 1, ws), (1, 1, 1, 1),
                               [(0, 0), (0, 0), (0, 0), (p, p)]) / ws
    s = ax + ay + local
    sp = jnp.pad(s, ((0, 0), (0, 0), (0, 1), (0, 1)), mode='reflect')
    dw = bn(conv(sp, params['w_dw'], pad=(ws - 1) // 2, groups=C),
            params['dw_gamma'], params['dw_beta'], params['dw_mean'], params['dw_var'])
    out = conv(dw, params['w_pw'])
    return out[:, :, :H, :W]


# ----------------------------------------------------------------------------
# Deterministic synthetic parameters (PyTorch-shaped).
# ----------------------------------------------------------------------------
def init_params(key, C, num_heads, ws):
    ks = jax.random.split(key, 18)
    n = lambda k, shape, s=0.1: jax.random.normal(k, shape, jnp.float32) * s
    return {
        'w_qkv': n(ks[0], (3 * C, C, 1, 1)),
        'rel_pos_table': n(ks[1], ((2 * ws - 1) * (2 * ws - 1), num_heads), 0.05),
        'w_local1': n(ks[2], (C, C, 3, 3)),
        'l1_gamma': 1.0 + n(ks[3], (C,)),
        'l1_beta': n(ks[4], (C,)),
        'l1_mean': n(ks[5], (C,)),
        'l1_var': 1.0 + jnp.abs(n(ks[6], (C,))),
        'w_local2': n(ks[7], (C, C, 1, 1)),
        'l2_gamma': 1.0 + n(ks[8], (C,)),
        'l2_beta': n(ks[9], (C,)),
        'l2_mean': n(ks[10], (C,)),
        'l2_var': 1.0 + jnp.abs(n(ks[11], (C,))),
        'w_dw': n(ks[12], (C, 1, ws, ws)),
        'dw_gamma': 1.0 + n(ks[13], (C,)),
        'dw_beta': n(ks[14], (C,)),
        'dw_mean': n(ks[15], (C,)),
        'dw_var': 1.0 + jnp.abs(n(ks[16], (C,))),
        'w_pw': n(ks[17], (C, C, 1, 1)),
    }


if __name__ == "__main__":
    B, C, H, W = 2, 64, 16, 16
    num_heads, window_size = 4, 8

    key = jax.random.PRNGKey(0)
    kx, kp = jax.random.split(key)
    x = jax.random.normal(kx, (B, C, H, W), jnp.float32)
    params = init_params(kp, C, num_heads, window_size)

    out = jax.block_until_ready(
        global_local_attention_pallas(x, params, num_heads=num_heads,
                                      window_size=window_size))
    ref = jax.block_until_ready(
        global_local_attention_reference(x, params, num_heads=num_heads,
                                         window_size=window_size))

    assert out.shape == (B, C, H, W)
    maxref = float(jnp.max(jnp.abs(ref)))
    err = float(jnp.max(jnp.abs(out - ref)))
    assert err <= 5e-2 * max(1.0, maxref), f"max abs err {err} vs ref max {maxref}"
    print("KERNEL_OK")
</pallas_src>

<mosaic_0001>
module attributes {stable_mosaic.version = 11 : i64} {
  func.func @_window_attn_kernel(%arg0: i32, %arg1: i32, %arg2: memref<1x8x16x64xbf16, #tpu.memory_space<vmem>>, %arg3: memref<64x192xbf16, #tpu.memory_space<vmem>>, %arg4: memref<256x64xf32, #tpu.memory_space<vmem>>, %arg5: memref<1x8x16x64xbf16, #tpu.memory_space<vmem>>) attributes {dimension_semantics = [#tpu.dimension_semantics<parallel>, #tpu.dimension_semantics<parallel>], iteration_bounds = array<i64: 2, 2>, scalar_prefetch = 0 : i64, scratch_operands = 0 : i64, tpu.core_type = #tpu.core_type<tc>, window_params = [{transform_indices = @transform_0, window_bounds = array<i64: 1, 8, 16, 64>}, {pipeline_mode = #tpu.pipeline_mode<synchronous>, transform_indices = @transform_1, window_bounds = array<i64: 64, 192>}, {pipeline_mode = #tpu.pipeline_mode<synchronous>, transform_indices = @transform_2, window_bounds = array<i64: 256, 64>}, {transform_indices = @transform_3, window_bounds = array<i64: 1, 8, 16, 64>}]} {
    %c0 = arith.constant 0 : index
    %c0_0 = arith.constant 0 : index
    %c0_1 = arith.constant 0 : index
    %c0_2 = arith.constant 0 : index
    %0 = vector.load %arg2[%c0, %c0_0, %c0_1, %c0_2] : memref<1x8x16x64xbf16, #tpu.memory_space<vmem>>, vector<1x8x16x64xbf16>
    %1 = vector.shape_cast %0 : vector<1x8x16x64xbf16> to vector<128x64xbf16>
    %c0_3 = arith.constant 0 : index
    %c0_4 = arith.constant 0 : index
    %2 = vector.load %arg3[%c0_3, %c0_4] : memref<64x192xbf16, #tpu.memory_space<vmem>>, vector<64x192xbf16>
    %cst = arith.constant dense<0.000000e+00> : vector<128x192xf32>
    %3 = tpu.matmul %1, %2, %cst {dimension_numbers = #tpu.dot_dimension_numbers<[1], [0], [0], [1], [0, 0, 1, 1], [], []>} : vector<128x64xbf16>, vector<64x192xbf16>, vector<128x192xf32> -> vector<128x192xf32>
    %4 = arith.truncf %3 : vector<128x192xf32> to vector<128x192xbf16>
    %5 = vector.shape_cast %4 : vector<128x192xbf16> to vector<8x16x192xbf16>
    %c0_5 = arith.constant 0 : index
    %c0_6 = arith.constant 0 : index
    %6 = vector.load %arg4[%c0_5, %c0_6] : memref<256x64xf32, #tpu.memory_space<vmem>>, vector<256x64xf32>
    %7 = vector.extract_strided_slice %5 {offsets = [0, 0, 0], sizes = [8, 8, 192], strides = [1, 1, 1]} : vector<8x16x192xbf16> to vector<8x8x192xbf16>
    %8 = vector.shape_cast %7 : vector<8x8x192xbf16> to vector<64x192xbf16>
    %9 = vector.extract_strided_slice %8 {offsets = [0, 0], sizes = [64, 16], strides = [1, 1]} : vector<64x192xbf16> to vector<64x16xbf16>
    %10 = vector.extract_strided_slice %8 {offsets = [0, 64], sizes = [64, 16], strides = [1, 1]} : vector<64x192xbf16> to vector<64x16xbf16>
    %11 = vector.extract_strided_slice %8 {offsets = [0, 128], sizes = [64, 16], strides = [1, 1]} : vector<64x192xbf16> to vector<64x16xbf16>
    %cst_7 = arith.constant dense<0.000000e+00> : vector<64x64xf32>
    %12 = tpu.matmul %9, %10, %cst_7 {dimension_numbers = #tpu.dot_dimension_numbers<[1], [1], [0], [0], [0, 0, 1, 0], [], []>} : vector<64x16xbf16>, vector<64x16xbf16>, vector<64x64xf32> -> vector<64x64xf32>
    %13 = vector.extract_strided_slice %8 {offsets = [0, 16], sizes = [64, 16], strides = [1, 1]} : vector<64x192xbf16> to vector<64x16xbf16>
    %14 = vector.extract_strided_slice %8 {offsets = [0, 80], sizes = [64, 16], strides = [1, 1]} : vector<64x192xbf16> to vector<64x16xbf16>
    %15 = vector.extract_strided_slice %8 {offsets = [0, 144], sizes = [64, 16], strides = [1, 1]} : vector<64x192xbf16> to vector<64x16xbf16>
    %cst_8 = arith.constant dense<0.000000e+00> : vector<64x64xf32>
    %16 = tpu.matmul %13, %14, %cst_8 {dimension_numbers = #tpu.dot_dimension_numbers<[1], [1], [0], [0], [0, 0, 1, 0], [], []>} : vector<64x16xbf16>, vector<64x16xbf16>, vector<64x64xf32> -> vector<64x64xf32>
    %17 = vector.extract_strided_slice %8 {offsets = [0, 32], sizes = [64, 16], strides = [1, 1]} : vector<64x192xbf16> to vector<64x16xbf16>
    %18 = vector.extract_strided_slice %8 {offsets = [0, 96], sizes = [64, 16], strides = [1, 1]} : vector<64x192xbf16> to vector<64x16xbf16>
    %19 = vector.extract_strided_slice %8 {offsets = [0, 160], sizes = [64, 16], strides = [1, 1]} : vector<64x192xbf16> to vector<64x16xbf16>
    %cst_9 = arith.constant dense<0.000000e+00> : vector<64x64xf32>
    %20 = tpu.matmul %17, %18, %cst_9 {dimension_numbers = #tpu.dot_dimension_numbers<[1], [1], [0], [0], [0, 0, 1, 0], [], []>} : vector<64x16xbf16>, vector<64x16xbf16>, vector<64x64xf32> -> vector<64x64xf32>
    %21 = vector.extract_strided_slice %8 {offsets = [0, 48], sizes = [64, 16], strides = [1, 1]} : vector<64x192xbf16> to vector<64x16xbf16>
    %22 = vector.extract_strided_slice %8 {offsets = [0, 112], sizes = [64, 16], strides = [1, 1]} : vector<64x192xbf16> to vector<64x16xbf16>
    %23 = vector.extract_strided_slice %8 {offsets = [0, 176], sizes = [64, 16], strides = [1, 1]} : vector<64x192xbf16> to vector<64x16xbf16>
    %cst_10 = arith.constant dense<0.000000e+00> : vector<64x64xf32>
    %24 = tpu.matmul %21, %22, %cst_10 {dimension_numbers = #tpu.dot_dimension_numbers<[1], [1], [0], [0], [0, 0, 1, 0], [], []>} : vector<64x16xbf16>, vector<64x16xbf16>, vector<64x64xf32> -> vector<64x64xf32>
    %25 = tpu.concatenate %12, %16, %20, %24 in 0 : vector<64x64xf32>, vector<64x64xf32>, vector<64x64xf32>, vector<64x64xf32> -> vector<256x64xf32>
    %26 = arith.addf %25, %6 : vector<256x64xf32>
    %cst_11 = arith.constant dense<0xFF800000> : vector<256xf32>
    %27 = vector.multi_reduction <maximumf>, %26, %cst_11 [1] : vector<256x64xf32> to vector<256xf32>
    %28 = vector.shape_cast %27 : vector<256xf32> to vector<256x1xf32>
    %29 = vector.broadcast %28 : vector<256x1xf32> to vector<256x64xf32>
    %30 = arith.subf %26, %29 : vector<256x64xf32>
    %31 = math.exp %30 : vector<256x64xf32>
    %cst_12 = arith.constant dense<0.000000e+00> : vector<256xf32>
    %32 = vector.multi_reduction <add>, %31, %cst_12 [1] : vector<256x64xf32> to vector<256xf32>
    %33 = vector.shape_cast %32 : vector<256xf32> to vector<256x1xf32>
    %34 = tpu.reciprocal %33 {approx = true} : vector<256x1xf32> -> vector<256x1xf32>
    %35 = vector.broadcast %34 : vector<256x1xf32> to vector<256x64xf32>
    %36 = arith.mulf %31, %35 : vector<256x64xf32>
    %37 = arith.truncf %36 : vector<256x64xf32> to vector<256x64xbf16>
    %38 = vector.extract_strided_slice %37 {offsets = [0, 0], sizes = [64, 64], strides = [1, 1]} : vector<256x64xbf16> to vector<64x64xbf16>
    %cst_13 = arith.constant dense<0.000000e+00> : vector<64x16xf32>
    %39 = tpu.matmul %38, %11, %cst_13 {dimension_numbers = #tpu.dot_dimension_numbers<[1], [0], [0], [1], [0, 0, 1, 1], [], []>} : vector<64x64xbf16>, vector<64x16xbf16>, vector<64x16xf32> -> vector<64x16xf32>
    %40 = vector.extract_strided_slice %37 {offsets = [64, 0], sizes = [64, 64], strides = [1, 1]} : vector<256x64xbf16> to vector<64x64xbf16>
    %cst_14 = arith.constant dense<0.000000e+00> : vector<64x16xf32>
    %41 = tpu.matmul %40, %15, %cst_14 {dimension_numbers = #tpu.dot_dimension_numbers<[1], [0], [0], [1], [0, 0, 1, 1], [], []>} : vector<64x64xbf16>, vector<64x16xbf16>, vector<64x16xf32> -> vector<64x16xf32>
    %42 = vector.extract_strided_slice %37 {offsets = [128, 0], sizes = [64, 64], strides = [1, 1]} : vector<256x64xbf16> to vector<64x64xbf16>
    %cst_15 = arith.constant dense<0.000000e+00> : vector<64x16xf32>
    %43 = tpu.matmul %42, %19, %cst_15 {dimension_numbers = #tpu.dot_dimension_numbers<[1], [0], [0], [1], [0, 0, 1, 1], [], []>} : vector<64x64xbf16>, vector<64x16xbf16>, vector<64x16xf32> -> vector<64x16xf32>
    %44 = vector.extract_strided_slice %37 {offsets = [192, 0], sizes = [64, 64], strides = [1, 1]} : vector<256x64xbf16> to vector<64x64xbf16>
    %cst_16 = arith.constant dense<0.000000e+00> : vector<64x16xf32>
    %45 = tpu.matmul %44, %23, %cst_16 {dimension_numbers = #tpu.dot_dimension_numbers<[1], [0], [0], [1], [0, 0, 1, 1], [], []>} : vector<64x64xbf16>, vector<64x16xbf16>, vector<64x16xf32> -> vector<64x16xf32>
    %46 = tpu.concatenate %39, %41, %43, %45 in 1 : vector<64x16xf32>, vector<64x16xf32>, vector<64x16xf32>, vector<64x16xf32> -> vector<64x64xf32>
    %47 = vector.shape_cast %46 : vector<64x64xf32> to vector<1x8x8x64xf32>
    %48 = arith.truncf %47 : vector<1x8x8x64xf32> to vector<1x8x8x64xbf16>
    %c0_17 = arith.constant 0 : index
    %c0_18 = arith.constant 0 : index
    %c0_19 = arith.constant 0 : index
    %c0_20 = arith.constant 0 : index
    %49 = vector.load %arg5[%c0_17, %c0_18, %c0_19, %c0_20] : memref<1x8x16x64xbf16, #tpu.memory_space<vmem>>, vector<1x8x8x64xbf16>
    tpu.vector_store %arg5[%c0_17, %c0_18, %c0_19, %c0_20], %48 {strides = array<i32>} : memref<1x8x16x64xbf16, #tpu.memory_space<vmem>>, vector<1x8x8x64xbf16>,
    %50 = vector.extract_strided_slice %5 {offsets = [0, 8, 0], sizes = [8, 8, 192], strides = [1, 1, 1]} : vector<8x16x192xbf16> to vector<8x8x192xbf16>
    %51 = vector.shape_cast %50 : vector<8x8x192xbf16> to vector<64x192xbf16>
    %52 = vector.extract_strided_slice %51 {offsets = [0, 0], sizes = [64, 16], strides = [1, 1]} : vector<64x192xbf16> to vector<64x16xbf16>
    %53 = vector.extract_strided_slice %51 {offsets = [0, 64], sizes = [64, 16], strides = [1, 1]} : vector<64x192xbf16> to vector<64x16xbf16>
    %54 = vector.extract_strided_slice %51 {offsets = [0, 128], sizes = [64, 16], strides = [1, 1]} : vector<64x192xbf16> to vector<64x16xbf16>
    %cst_21 = arith.constant dense<0.000000e+00> : vector<64x64xf32>
    %55 = tpu.matmul %52, %53, %cst_21 {dimension_numbers = #tpu.dot_dimension_numbers<[1], [1], [0], [0], [0, 0, 1, 0], [], []>} : vector<64x16xbf16>, vector<64x16xbf16>, vector<64x64xf32> -> vector<64x64xf32>
    %56 = vector.extract_strided_slice %51 {offsets = [0, 16], sizes = [64, 16], strides = [1, 1]} : vector<64x192xbf16> to vector<64x16xbf16>
    %57 = vector.extract_strided_slice %51 {offsets = [0, 80], sizes = [64, 16], strides = [1, 1]} : vector<64x192xbf16> to vector<64x16xbf16>
    %58 = vector.extract_strided_slice %51 {offsets = [0, 144], sizes = [64, 16], strides = [1, 1]} : vector<64x192xbf16> to vector<64x16xbf16>
    %cst_22 = arith.constant dense<0.000000e+00> : vector<64x64xf32>
    %59 = tpu.matmul %56, %57, %cst_22 {dimension_numbers = #tpu.dot_dimension_numbers<[1], [1], [0], [0], [0, 0, 1, 0], [], []>} : vector<64x16xbf16>, vector<64x16xbf16>, vector<64x64xf32> -> vector<64x64xf32>
    %60 = vector.extract_strided_slice %51 {offsets = [0, 32], sizes = [64, 16], strides = [1, 1]} : vector<64x192xbf16> to vector<64x16xbf16>
    %61 = vector.extract_strided_slice %51 {offsets = [0, 96], sizes = [64, 16], strides = [1, 1]} : vector<64x192xbf16> to vector<64x16xbf16>
    %62 = vector.extract_strided_slice %51 {offsets = [0, 160], sizes = [64, 16], strides = [1, 1]} : vector<64x192xbf16> to vector<64x16xbf16>
    %cst_23 = arith.constant dense<0.000000e+00> : vector<64x64xf32>
    %63 = tpu.matmul %60, %61, %cst_23 {dimension_numbers = #tpu.dot_dimension_numbers<[1], [1], [0], [0], [0, 0, 1, 0], [], []>} : vector<64x16xbf16>, vector<64x16xbf16>, vector<64x64xf32> -> vector<64x64xf32>
    %64 = vector.extract_strided_slice %51 {offsets = [0, 48], sizes = [64, 16], strides = [1, 1]} : vector<64x192xbf16> to vector<64x16xbf16>
    %65 = vector.extract_strided_slice %51 {offsets = [0, 112], sizes = [64, 16], strides = [1, 1]} : vector<64x192xbf16> to vector<64x16xbf16>
    %66 = vector.extract_strided_slice %51 {offsets = [0, 176], sizes = [64, 16], strides = [1, 1]} : vector<64x192xbf16> to vector<64x16xbf16>
    %cst_24 = arith.constant dense<0.000000e+00> : vector<64x64xf32>
    %67 = tpu.matmul %64, %65, %cst_24 {dimension_numbers = #tpu.dot_dimension_numbers<[1], [1], [0], [0], [0, 0, 1, 0], [], []>} : vector<64x16xbf16>, vector<64x16xbf16>, vector<64x64xf32> -> vector<64x64xf32>
    %68 = tpu.concatenate %55, %59, %63, %67 in 0 : vector<64x64xf32>, vector<64x64xf32>, vector<64x64xf32>, vector<64x64xf32> -> vector<256x64xf32>
    %69 = arith.addf %68, %6 : vector<256x64xf32>
    %cst_25 = arith.constant dense<0xFF800000> : vector<256xf32>
    %70 = vector.multi_reduction <maximumf>, %69, %cst_25 [1] : vector<256x64xf32> to vector<256xf32>
    %71 = vector.shape_cast %70 : vector<256xf32> to vector<256x1xf32>
    %72 = vector.broadcast %71 : vector<256x1xf32> to vector<256x64xf32>
    %73 = arith.subf %69, %72 : vector<256x64xf32>
    %74 = math.exp %73 : vector<256x64xf32>
    %cst_26 = arith.constant dense<0.000000e+00> : vector<256xf32>
    %75 = vector.multi_reduction <add>, %74, %cst_26 [1] : vector<256x64xf32> to vector<256xf32>
    %76 = vector.shape_cast %75 : vector<256xf32> to vector<256x1xf32>
    %77 = tpu.reciprocal %76 {approx = true} : vector<256x1xf32> -> vector<256x1xf32>
    %78 = vector.broadcast %77 : vector<256x1xf32> to vector<256x64xf32>
    %79 = arith.mulf %74, %78 : vector<256x64xf32>
    %80 = arith.truncf %79 : vector<256x64xf32> to vector<256x64xbf16>
    %81 = vector.extract_strided_slice %80 {offsets = [0, 0], sizes = [64, 64], strides = [1, 1]} : vector<256x64xbf16> to vector<64x64xbf16>
    %cst_27 = arith.constant dense<0.000000e+00> : vector<64x16xf32>
    %82 = tpu.matmul %81, %54, %cst_27 {dimension_numbers = #tpu.dot_dimension_numbers<[1], [0], [0], [1], [0, 0, 1, 1], [], []>} : vector<64x64xbf16>, vector<64x16xbf16>, vector<64x16xf32> -> vector<64x16xf32>
    %83 = vector.extract_strided_slice %80 {offsets = [64, 0], sizes = [64, 64], strides = [1, 1]} : vector<256x64xbf16> to vector<64x64xbf16>
    %cst_28 = arith.constant dense<0.000000e+00> : vector<64x16xf32>
    %84 = tpu.matmul %83, %58, %cst_28 {dimension_numbers = #tpu.dot_dimension_numbers<[1], [0], [0], [1], [0, 0, 1, 1], [], []>} : vector<64x64xbf16>, vector<64x16xbf16>, vector<64x16xf32> -> vector<64x16xf32>
    %85 = vector.extract_strided_slice %80 {offsets = [128, 0], sizes = [64, 64], strides = [1, 1]} : vector<256x64xbf16> to vector<64x64xbf16>
    %cst_29 = arith.constant dense<0.000000e+00> : vector<64x16xf32>
    %86 = tpu.matmul %85, %62, %cst_29 {dimension_numbers = #tpu.dot_dimension_numbers<[1], [0], [0], [1], [0, 0, 1, 1], [], []>} : vector<64x64xbf16>, vector<64x16xbf16>, vector<64x16xf32> -> vector<64x16xf32>
    %87 = vector.extract_strided_slice %80 {offsets = [192, 0], sizes = [64, 64], strides = [1, 1]} : vector<256x64xbf16> to vector<64x64xbf16>
    %cst_30 = arith.constant dense<0.000000e+00> : vector<64x16xf32>
    %88 = tpu.matmul %87, %66, %cst_30 {dimension_numbers = #tpu.dot_dimension_numbers<[1], [0], [0], [1], [0, 0, 1, 1], [], []>} : vector<64x64xbf16>, vector<64x16xbf16>, vector<64x16xf32> -> vector<64x16xf32>
    %89 = tpu.concatenate %82, %84, %86, %88 in 1 : vector<64x16xf32>, vector<64x16xf32>, vector<64x16xf32>, vector<64x16xf32> -> vector<64x64xf32>
    %90 = vector.shape_cast %89 : vector<64x64xf32> to vector<1x8x8x64xf32>
    %91 = arith.truncf %90 : vector<1x8x8x64xf32> to vector<1x8x8x64xbf16>
    %c0_31 = arith.constant 0 : index
    %c0_32 = arith.constant 0 : index
    %c8 = arith.constant 8 : index
    %c0_33 = arith.constant 0 : index
    %92 = vector.load %arg5[%c0_31, %c0_32, %c8, %c0_33] : memref<1x8x16x64xbf16, #tpu.memory_space<vmem>>, vector<1x8x8x64xbf16>
    tpu.vector_store %arg5[%c0_31, %c0_32, %c8, %c0_33], %91 {strides = array<i32>} : memref<1x8x16x64xbf16, #tpu.memory_space<vmem>>, vector<1x8x8x64xbf16>,
    return
  }
  func.func @transform_0(%arg0: i32, %arg1: i32) -> (i32, i32, i32, i32) {
    %c0_i32 = arith.constant 0 : i32
    %c0_i32_0 = arith.constant 0 : i32
    %c0_i32_1 = arith.constant 0 : i32
    return %arg0, %arg1, %c0_i32, %c0_i32_0 : i32, i32, i32, i32
  }
  func.func @transform_1(%arg0: i32, %arg1: i32) -> (i32, i32) {
    %c0_i32 = arith.constant 0 : i32
    %c0_i32_0 = arith.constant 0 : i32
    %c0_i32_1 = arith.constant 0 : i32
    return %c0_i32, %c0_i32_0 : i32, i32
  }
  func.func @transform_2(%arg0: i32, %arg1: i32) -> (i32, i32) {
    %c0_i32 = arith.constant 0 : i32
    %c0_i32_0 = arith.constant 0 : i32
    %c0_i32_1 = arith.constant 0 : i32
    return %c0_i32, %c0_i32_0 : i32, i32
  }
  func.func @transform_3(%arg0: i32, %arg1: i32) -> (i32, i32, i32, i32) {
    %c0_i32 = arith.constant 0 : i32
    %c0_i32_0 = arith.constant 0 : i32
    %c0_i32_1 = arith.constant 0 : i32
    return %arg0, %arg1, %c0_i32, %c0_i32_0 : i32, i32, i32, i32
  }
}

</mosaic_0001>

<bundles_post_ra>
// kernel: tpu_custom_call.1
= control target key start
LH: loop header
LB: loop body
LE: loop exit
PB: predicated region body
PF: predicated region fallthrough
CT: control target
= control target key end

     0   :  { %8 = vsyncpa [#allocation3], 0  ;;  %s6175_s0 = inlined_call_operand.vmem [shape: bf16[2,16,16,64], index: 0, kind: input, shape index: {}]   ;;  %s6176_s1 = inlined_call_operand.vmem [shape: bf16[64,192], index: 1, kind: input, shape index: {}]   ;;  %s6177_s2 = inlined_call_operand.vmem [shape: f32[256,64], index: 2, kind: input, shape index: {}]   ;;  %s6178_s3 = inlined_call_operand.hbm [shape: bf16[2,16,16,64], index: 3, kind: output, shape index: {}]  }
   0x1   :  { %10 = vsyncpa [#allocation3 + $0x1], 0  ;;  %s4452_s12 = smov 0   ;;  %s4454_s13 = smov 0  }
   0x2   :  { %s4456_s14 = smov 0   ;;  %s4458_s15 = smov 0  }
   0x3   :  { %s4460_s16 = smov 0   ;;  %s4462_s17 = smov 0  }
   0x4   :  { %s4464_s18 = smov 0   ;;  %s4466_s19 = smov 0  }
   0x5 LB: > { %s3256_s20 = sadd.s32 4294967295, %s4420_s19   ;;  %s3257_s21 = sadd.s32 4294967294, %s4420_s19   ;;  %s4420_s19 = sphi %s4466_s19, %s16_s19   ;;  %s4416_s18 = sphi %s4464_s18, %s6299_s18   ;;  %s4412_s17 = sphi %s4462_s17, %s6298_s17   ;;  %s4408_s16 = sphi %s4460_s16, %s6297_s16   ;;  %s4404_s15 = sphi %s4458_s15, %s6296_s15   ;;  %s4400_s14 = sphi %s4456_s14, %s6295_s14   ;;  %s4396_s13 = sphi %s4454_s13, %s6294_s13   ;;  %s4392_s12 = sphi %s4452_s12, %s6293_s12  }
   0x6   : > { %s25_s22 = sadd.s32 1, %s4412_s17  ;;  %s28_s23 = sadd.s32 1, %s4416_s18 }
   0x7   : > { %p26_p0 = scmp.ge.s32.totalorder %s25_s22, 2  ;;  %p117_p1 = scmp.ne.s32.totalorder %s4400_s14, %s4396_s13 }
   0x8   : > { %p118_p2 = scmp.eq.s32.totalorder %s3256_s20, 3  ;;  %p123_p5 = scmp.ne.s32.totalorder %s4396_s13, %s4392_s12 }
   0x9   : > { %s6301_s22 = smov (%p26_p0, %s25_s22), 0  ;;  %s6303_s23 = smov (!%p26_p0, %s28_s23), %s4416_s18 }
   0xa   : > { %s103_s24 = ssub.s32 %s4412_s17, %s6301_s22  ;;  %p4503_p3 = por %p118_p2, %p117_p1 }
   0xb   : > { %p30_p4 = scmp.ge.s32.totalorder %s6303_s23, 2  ;;  %p124_p6 = scmp.eq.s32.totalorder %s3257_s21, 3 }
   0xc   : > { %p3260_p7 = scmp.ge.s32.totalorder %s4420_s19, 1  ;;  %p162_p9 = scmp.lt.s32.totalorder %s4420_s19, 5 }
   0xd   : > { %s6305_s23 = smov (%p30_p4, %s6303_s23), 0  ;;  %p4512_p8 = por %p124_p6, %p123_p5 }
   0xe   : > { %s102_s27 = ssub.s32 %s4416_s18, %s6305_s23  ;;  %s107_s28 = sadd.s32 1, %s4400_s14 }
   0xf   : > { %s104_s29 = sor.u32 %s103_s24, %s102_s27  ;;  %p163_p10 = pnand %p3260_p7, %p162_p9 }
  0x10   : > { %p105_p11 = scmp.eq.s32.totalorder %s104_s29, 0 }
  0x11   : > { %166 = sbr.rel (%p163_p10) target bundleno = 2096 (0x830), region = 32 }
  0x12   : > { %s4521_s30 = scalar_select %p105_p11, %s4400_s14, %s107_s28  }
  0x18   : > { %v4018_v0 = vld [vmem:[%s6176_s1 + $0x4] ss:$8 sps:$4 sm:$0xff]   ;;  %s3262_s6 = sshll.u32 %s4404_s15, 3  ;;  %v4020_v1 = vld [vmem:[%s6176_s1] ss:$8 sps:$4 sm:$0xff]   ;;  %v4422_v2 = vmov 0  }
  0x19   : > { %365 = vmatprep.mubr.bf16.mxu0 %v4422_v2  ;;  %p192_p12 = scmp.lt.s32.totalorder %s4408_s16, 1  ;;  %p194_p13 = scmp.lt.s32.totalorder %s3262_s6, 15  ;;  %333 = vmatprep.subr.bf16.mxu0 %v4018_v0  ;;  %v4021_v3 = vld [vmem:[%s6176_s1 + $0x14] ss:$8 sps:$4 sm:$0xff]   ;;  %v4023_v4 = vld [vmem:[%s6176_s1 + $0x10] ss:$8 sps:$4 sm:$0xff]  }
  0x1a   : > { %334 = vmatpush1.bf16.msra.mxu0 %v4020_v1  ;;  %v4024_v5 = vld [vmem:[%s6176_s1 + $0x24] ss:$8 sps:$4 sm:$0xff]   ;;  %v4026_v6 = vld [vmem:[%s6176_s1 + $0x20] ss:$8 sps:$4 sm:$0xff]   ;;  %v4027_v7 = vld [vmem:[%s6176_s1 + $0x34] ss:$8 sps:$4 sm:$0xff]  }
  0x1b   : > { %s193_s21 = scalar_select %p192_p12, %s4408_s16, 1  ;;  %335 = vmatprep.subr.bf16.mxu0 %v4021_v3  ;;  %v4029_v8 = vld [vmem:[%s6176_s1 + $0x30] ss:$8 sps:$4 sm:$0xff]   ;;  %vm308_vm0 = vcmask 523264   ;;  %vm538_vm1 = vcmask 130048   ;;  %vm1799_vm2 = vcmask 261120  }
  0x1c   : > { %s6307_s6 = smov (!%p194_p13, %s3262_s6), 15  ;;  %s4426_s4 = smov 112   ;;  %vm1808_vm3 = vcmask 392192   ;;  %vm1825_vm4 = vcmask 519168  }
  0x1d   : > { %s3264_s28 = sshll.u32 %s193_s21, 5  ;;  %s3263_s29 = sshll.u32 %s6307_s6, 1 }
  0x1e   : > { %336 = vmatpush1.bf16.msra.mxu0 %v4023_v4  ;;  %s198_s7 = sadd.s32 %s3264_s28, %s3263_s29  ;;  %s4423_s6 = smov 64  }
  0x1f   : > { %337 = vmatprep.subr.bf16.mxu0 %v4024_v5  ;;  %s3265_s10 = sshll.u32 %s198_s7, 2  ;;  %s4424_s28 = smov 48  }
  0x20   : > { %s200_s24 = scalar_lea.vmem %s6175_s0, %s3265_s10  ;;  %s4425_s29 = smov 32  }
  0x21   : > { %v4030_v9 = vld [vmem:[%s200_s24] sm:$0xff]   ;;  %v4031_v10 = vld [vmem:[%s200_s24 + $0x8] sm:$0xff]   ;;  %v4032_v11 = vld [vmem:[%s200_s24 + $0x10] sm:$0xff]   ;;  %s4427_s5 = smov 16   ;;  %s4428_s7 = smov 96  }
  0x22   : > { %338 = vmatpush1.bf16.msra.mxu0 %v4026_v6  ;;  %v4033_v12 = vld [vmem:[%s200_s24 + $0x18] sm:$0xff]   ;;  %v4034_v13 = vld [vmem:[%s200_s24 + $0x20] sm:$0xff]   ;;  %v4035_v14 = vld [vmem:[%s200_s24 + $0x28] sm:$0xff]   ;;  %s6179_s8 = smov 80   ;;  %s4430_s9 = smov [#allocation2]  }
  0x23   : > { %339 = vmatprep.subr.bf16.mxu0 %v4027_v7  ;;  %v4036_v15 = vld [vmem:[%s200_s24 + $0x30] sm:$0xff]   ;;  %v4037_v16 = vld [vmem:[%s200_s24 + $0x38] sm:$0xff]  }
  0x26   : > { %340 = vmatpush1.bf16.msra.mxu0 %v4029_v8 }
  0x29   : > { %3282 = vmatmul.mubr.msk.bf16.vlgmr.msra.gmra.mrb[0].mxu0 %vm308_vm0, %v4030_v9 }
  0x2a   : > { %375 = vmatprep.mubr.bf16.mxu0 %v4422_v2 }
  0x31   : > { %3283 = vmatmul.mubr.msk.bf16.gmra.mrb[4].mxu0 %vm308_vm0, %v4031_v10 }
  0x32   : > { %385 = vmatprep.mubr.bf16.mxu0 %v4422_v2 }
  0x39   : > { %3284 = vmatmul.mubr.msk.bf16.gmra.mrb[8].mxu0 %vm308_vm0, %v4032_v11 }
  0x3a   : > { %395 = vmatprep.mubr.bf16.mxu0 %v4422_v2 }
  0x41   : > { %3285 = vmatmul.mubr.msk.bf16.gmra.mrb[12].mxu0 %vm308_vm0, %v4033_v12 }
  0x42   : > { %405 = vmatprep.mubr.bf16.mxu0 %v4422_v2 }
  0x49   : > { %3286 = vmatmul.mubr.msk.bf16.gmra.mrb[16].mxu0 %vm308_vm0, %v4034_v13 }
  0x4a   : > { %415 = vmatprep.mubr.bf16.mxu0 %v4422_v2 }
  0x51   : > { %3287 = vmatmul.mubr.msk.bf16.gmra.mrb[20].mxu0 %vm308_vm0, %v4035_v14 }
  0x52   : > { %425 = vmatprep.mubr.bf16.mxu0 %v4422_v2 }
  0x59   : > { %3288 = vmatmul.mubr.msk.bf16.gmra.mrb[24].mxu0 %vm308_vm0, %v4036_v15 }
  0x5a   : > { %435 = vmatprep.mubr.bf16.mxu0 %v4422_v2 }
  0x61   : > { %3289 = vmatmul.mubr.msk.bf16.gmra.mrb[28].mxu0 %vm308_vm0, %v4037_v16 }
  0xfc   : > { %v367_v17 = vpop.f32.mrb[0].mxu0 }
  0xfd   : > { %v369_v18 = vpop.f32.mrb[1].mxu0 }
  0xfe   : > { %v371_v19 = vpop.f32.mrb[2].mxu0 }
  0xff   : > { %v373_v20 = vpop.f32.mrb[3].mxu0 }
 0x104   : > { %v377_v21 = vpop.f32.mrb[4].mxu0 }
 0x105   : > { %v4561_v22 = vpack.c.bf16 %v377_v21, %v367_v17  ;;  %v379_v23 = vpop.f32.mrb[5].mxu0 }
 0x106   : > { %v4563_v24 = vpack.c.bf16 %v379_v23, %v369_v18  ;;  %v381_v25 = vpop.f32.mrb[6].mxu0 }
 0x107   : > { %v4565_v26 = vpack.c.bf16 %v381_v25, %v371_v19  ;;  %530 = vrot.lane.b32.xlu0 %v4561_v22, %s4423_s6  ;;  %v383_v27 = vpop.f32.mrb[7].mxu0  ;;  %3530 = vmatprep.mubr.msk.bf16.mxu1 %vm538_vm1, %v4561_v22 }
 0x108   : > { %v4571_v28 = vpack.c.bf16 %v383_v27, %v373_v20 }
 0x10a   : > { %6210 = vst [vmem:[#allocation5_spill] sm:$0xff] %v4571_v28 }
 0x10c   : > { %v387_v29 = vpop.f32.mrb[8].mxu0 }
 0x10d   : > { %v389_v30 = vpop.f32.mrb[9].mxu0 }
 0x10e   : > { %v391_v31 = vpop.f32.mrb[10].mxu0 }
 0x10f   : > { %v393_v32 = vpop.f32.mrb[11].mxu0 }
 0x114   : > { %v397_v33 = vpop.f32.mrb[12].mxu0 }
 0x115   : > { %v4573_v34 = vpack.c.bf16 %v397_v33, %v387_v29  ;;  %v399_v35 = vpop.f32.mrb[13].mxu0 }
 0x116   : > { %v4575_v36 = vpack.c.bf16 %v399_v35, %v389_v30  ;;  %v401_v37 = vpop.f32.mrb[14].mxu0 }
 0x117   : > { %v4577_v38 = vpack.c.bf16 %v401_v37, %v391_v31  ;;  %532 = vrot.lane.b32.xlu0 %v4573_v34, %s4423_s6  ;;  %v403_v39 = vpop.f32.mrb[15].mxu0 }
 0x118   : > { %v4581_v40 = vpack.c.bf16 %v403_v39, %v393_v32 }
 0x11a   : > { %6211 = vst [vmem:[#allocation6_spill] sm:$0xff] %v4581_v40 }
 0x11b   : > { %636 = vrot.lane.b32.xlu0 %v4561_v22, %s4424_s28 }
 0x11c   : > { %v407_v41 = vpop.f32.mrb[16].mxu0 }
 0x11d   : > { %v409_v42 = vpop.f32.mrb[17].mxu0 }
 0x11e   : > { %v411_v43 = vpop.f32.mrb[18].mxu0 }
 0x11f   : > { %v413_v44 = vpop.f32.mrb[19].mxu0 }
 0x124   : > { %v417_v45 = vpop.f32.mrb[20].mxu0 }
 0x125   : > { %v4585_v46 = vpack.c.bf16 %v417_v45, %v407_v41  ;;  %v419_v47 = vpop.f32.mrb[21].mxu0 }
 0x126   : > { %v4587_v48 = vpack.c.bf16 %v419_v47, %v409_v42  ;;  %v421_v49 = vpop.f32.mrb[22].mxu0 }
 0x127   : > { %v4589_v50 = vpack.c.bf16 %v421_v49, %v411_v43  ;;  %640 = vrot.lane.b32.xlu0 %v4585_v46, %s4424_s28  ;;  %534 = vrot.lane.b32.xlu1 %v4585_v46, %s4423_s6  ;;  %v423_v51 = vpop.f32.mrb[23].mxu0 }
 0x128   : > { %v4595_v52 = vpack.c.bf16 %v423_v51, %v413_v44 }
 0x12a   : > { %6212 = vst [vmem:[#allocation7_spill] sm:$0xff] %v4595_v52 }
 0x12b   : > { %741 = vrot.lane.b32.xlu0 %v4561_v22, %s4425_s29 }
 0x12c   : > { %v427_v53 = vpop.f32.mrb[24].mxu0 }
 0x12d   : > { %v429_v54 = vpop.f32.mrb[25].mxu0 }
 0x12e   : > { %v431_v55 = vpop.f32.mrb[26].mxu0 }
 0x12f   : > { %743 = vrot.lane.b32.xlu0 %v4573_v34, %s4425_s29  ;;  %v433_v56 = vpop.f32.mrb[27].mxu0 }
 0x133   : > { %630 = vrot.lane.b32.xlu0 %v4573_v34, %s4426_s4 }
 0x134   : > { %v437_v57 = vpop.f32.mrb[28].mxu0 }
 0x135   : > { %v4603_v58 = vpack.c.bf16 %v437_v57, %v427_v53  ;;  %v439_v59 = vpop.f32.mrb[29].mxu0 }
 0x136   : > { %v4605_v60 = vpack.c.bf16 %v439_v59, %v429_v54  ;;  %v441_v61 = vpop.f32.mrb[30].mxu0 }
 0x137   : > { %v4607_v62 = vpack.c.bf16 %v441_v61, %v431_v55  ;;  %848 = vrot.lane.b32.xlu0 %v4573_v34, %s4427_s5  ;;  %536 = vrot.lane.b32.xlu1 %v4603_v58, %s4423_s6  ;;  %v443_v63 = vpop.f32.mrb[31].mxu0 }
 0x138   : > { %v4613_v0 = vpack.c.bf16 %v443_v63, %v433_v56 }
 0x13a   : > { %6213 = vst [vmem:[#allocation8_spill] sm:$0xff] %v4613_v0 }
 0x13b   : > { %850 = vrot.lane.b32.xlu0 %v4585_v46, %s4427_s5  ;;  %638 = vrot.lane.b32.xlu1 %v4573_v34, %s4424_s28 }
 0x13f   : > { %733 = vrot.lane.b32.xlu0 %v4561_v22, %s4428_s7  ;;  %642 = vrot.lane.b32.xlu1 %v4603_v58, %s4424_s28 }
 0x143   : > { %735 = vrot.lane.b32.xlu0 %v4573_v34, %s4428_s7  ;;  %628 = vrot.lane.b32.xlu1 %v4561_v22, %s4426_s4 }
 0x147   : > { %838 = vrot.lane.b32.xlu0 %v4561_v22, %s6179_s8  ;;  %846 = vrot.lane.b32.xlu1 %v4561_v22, %s4427_s5 }
 0x14b   : > { %737 = vrot.lane.b32.xlu0 %v4585_v46, %s4428_s7  ;;  %745 = vrot.lane.b32.xlu1 %v4585_v46, %s4425_s29 }
 0x14f   : > { %842 = vrot.lane.b32.xlu0 %v4585_v46, %s6179_s8  ;;  %632 = vrot.lane.b32.xlu1 %v4585_v46, %s4426_s4 }
 0x153   : > { %1432 = vrot.lane.b32.xlu0 %v4587_v48, %s4426_s4  ;;  %747 = vrot.lane.b32.xlu1 %v4603_v58, %s4425_s29 }
 0x157   : > { %1517 = vrot.lane.b32.xlu0 %v4563_v24, %s4428_s7  ;;  %634 = vrot.lane.b32.xlu1 %v4603_v58, %s4426_s4 }
 0x15b   : > { %1521 = vrot.lane.b32.xlu0 %v4587_v48, %s4428_s7  ;;  %852 = vrot.lane.b32.xlu1 %v4603_v58, %s4427_s5 }
 0x15f   : > { %1856 = vrot.lane.b32.xlu0 %v4577_v38, %s4423_s6  ;;  %840 = vrot.lane.b32.xlu1 %v4573_v34, %s6179_s8 }
 0x163   : > { %1961 = vrot.lane.b32.xlu0 %v4577_v38, %s4424_s28  ;;  %739 = vrot.lane.b32.xlu1 %v4603_v58, %s4428_s7 }
 0x167   : > { %844 = vrot.lane.b32.xlu1 %v4603_v58, %s6179_s8  ;;  %1612 = vrot.lane.b32.xlu0 %v4605_v60, %s6179_s8 }
 0x16b   : > { %1428 = vrot.lane.b32.xlu1 %v4563_v24, %s4426_s4 }
 0x16f   : > { %1430 = vrot.lane.b32.xlu1 %v4575_v36, %s4426_s4 }
 0x173   : > { %1519 = vrot.lane.b32.xlu1 %v4575_v36, %s4428_s7 }
 0x177   : > { %1606 = vrot.lane.b32.xlu1 %v4563_v24, %s6179_s8 }
 0x179   : > { %v531_v1 = vpop.permute.xlu0 %530 }
 0x17a   : > { %3786 = vmatprep.subr.msk.bf16.mxu1 %vm538_vm1, %v531_v1  ;;  %v552_v2 = vsel %vm538_vm1, %v531_v1, 0 }
 0x17b   : > { %3523 = vmatpush3.bf16.xpose.msra.mxu1 %v552_v2  ;;  %1608 = vrot.lane.b32.xlu1 %v4575_v36, %s6179_s8 }
 0x17f   : > { %1610 = vrot.lane.b32.xlu1 %v4587_v48, %s6179_s8  ;;  %s6222_s8 = smov 80  }
 0x183   : > { %1854 = vrot.lane.b32.xlu1 %v4565_v26, %s4423_s6 }
 0x187   : > { %1959 = vrot.lane.b32.xlu1 %v4565_v26, %s4424_s28 }
 0x189   : > { %v533_v3 = vpop.permute.xlu0 %532 }
 0x18a   : > { %3787 = vmatprep.subr.msk.bf16.mxu1 %vm538_vm1, %v533_v3  ;;  %v555_v4 = vsel %vm538_vm1, %v533_v3, 0  ;;  %v464_v3 = vld [vmem:[%s6177_s2 + $0x10] sm:$0xff] }
 0x18b   : > { %3525 = vmatpush3.bf16.xpose.msra.mxu1 %v555_v4  ;;  %1858 = vrot.lane.b32.xlu1 %v4589_v50, %s4423_s6 }
 0x18d   : > { %v637_v5 = vpop.permute.xlu0 %636 }
 0x18e   : > { %v657_v21 = vsel %vm538_vm1, %v637_v5, 0 }
 0x18f   : > { %1434 = vrot.lane.b32.xlu1 %v4605_v60, %s4426_s4 }
 0x193   : > { %1523 = vrot.lane.b32.xlu1 %v4605_v60, %s4428_s7 }
 0x199   : > { %v641_v6 = vpop.permute.xlu0 %640  ;;  %v535_v7 = vpop.permute.xlu1 %534 }
 0x19a   : > { %3788 = vmatprep.subr.msk.bf16.mxu1 %vm538_vm1, %v535_v7  ;;  %v558_v8 = vsel %vm538_vm1, %v535_v7, 0  ;;  %v663_v32 = vsel %vm538_vm1, %v641_v6, 0 }
 0x19b   : > { %3527 = vmatpush3.bf16.xpose.msra.mxu1 %v558_v8 }
 0x19d   : > { %v742_v9 = vpop.permute.xlu0 %741 }
 0x19e   : > { %3794 = vmatprep.subr.msk.bf16.mxu0 %vm538_vm1, %v742_v9  ;;  %v762_v10 = vsel %vm538_vm1, %v742_v9, 0 }
 0x19f   : > { %3555 = vmatpush3.bf16.xpose.msra.mxu0 %v762_v10 }
 0x1a1   : > { %v744_v11 = vpop.permute.xlu0 %743 }
 0x1a2   : > { %3795 = vmatprep.subr.msk.bf16.mxu0 %vm538_vm1, %v744_v11  ;;  %v765_v13 = vsel %vm538_vm1, %v744_v11, 0 }
 0x1a5   : > { %v631_v12 = vpop.permute.xlu0 %630 }
 0x1a7   : > { %3557 = vmatpush3.bf16.xpose.msra.mxu0 %v765_v13 }
 0x1a9   : > { %v849_v14 = vpop.permute.xlu0 %848  ;;  %v537_v15 = vpop.permute.xlu1 %536 }
 0x1aa   : > { %3789 = vmatprep.subr.msk.bf16.mxu1 %vm538_vm1, %v537_v15  ;;  %v561_v16 = vsel %vm538_vm1, %v537_v15, 0 }
 0x1ab   : > { %3529 = vmatpush3.bf16.xpose.msra.mxu1 %v561_v16 }
 0x1ac   : > { %3790 = vmatprep.subr.msk.bf16.mxu1 %vm538_vm1, %v637_v5  ;;  %v462_v5 = vld [vmem:[%s6177_s2] sm:$0xff] }
 0x1ad   : > { %v4698_v17 = vpop.permute.xlu0 %850  ;;  %v639_v18 = vpop.permute.xlu1 %638 }
 0x1ae   : > { %v660_v25 = vsel %vm538_vm1, %v639_v18, 0  ;;  %v873_v49 = vsel %vm538_vm1, %v4698_v17, 0 }
 0x1b1   : > { %v734_v19 = vpop.permute.xlu0 %733  ;;  %v643_v20 = vpop.permute.xlu1 %642 }
 0x1b2   : > { %3531 = vmatmul.mubr.msk.bf16.vlgmr.msra.gmra.mrb[0].mxu1 %vm538_vm1, %v4573_v34  ;;  %3562 = vmatprep.mubr.msk.bf16.mxu0 %vm538_vm1, %v734_v19  ;;  %v666_v39 = vsel %vm538_vm1, %v643_v20, 0 }
 0x1b3   : > { %3534 = vmatprep.mubr.msk.bf16.mxu1 %vm538_vm1, %v4585_v46  ;;  %3539 = vmatpush3.bf16.xpose.msra.mxu1 %v657_v21  ;;  %v870_v46 = vsel %vm538_vm1, %v849_v14, 0 }
 0x1b4   : > { %3791 = vmatprep.subr.msk.bf16.mxu1 %vm538_vm1, %v639_v18 }
 0x1b5   : > { %v629_v22 = vpop.permute.xlu1 %628  ;;  %v736_v31 = vpop.permute.xlu0 %735 }
 0x1b9   : > { %v847_v23 = vpop.permute.xlu1 %846  ;;  %v839_v35 = vpop.permute.xlu0 %838 }
 0x1ba   : > { %3535 = vmatmul.mubr.msk.bf16.gmra.mrb[4].mxu1 %vm538_vm1, %v4603_v58  ;;  %v867_v44 = vsel %vm538_vm1, %v847_v23, 0 }
 0x1bb   : > { %3541 = vmatpush3.bf16.xpose.msra.mxu1 %v660_v25  ;;  %3546 = vmatprep.mubr.msk.bf16.mxu1 %vm538_vm1, %v629_v22  ;;  %v478_v22 = vld [vmem:[%s6177_s2 + $0x80] sm:$0xff] }
 0x1bc   : > { %3792 = vmatprep.subr.msk.bf16.mxu1 %vm538_vm1, %v641_v6 }
 0x1bd   : > { %v746_v27 = vpop.permute.xlu1 %745  ;;  %v738_v42 = vpop.permute.xlu0 %737 }
 0x1be   : > { %3796 = vmatprep.subr.msk.bf16.mxu0 %vm538_vm1, %v746_v27  ;;  %v768_v29 = vsel %vm538_vm1, %v746_v27, 0 }
 0x1bf   : > { %3559 = vmatpush3.bf16.xpose.msra.mxu0 %v768_v29 }
 0x1c1   : > { %v633_v30 = vpop.permute.xlu1 %632  ;;  %v843_v47 = vpop.permute.xlu0 %842 }
 0x1c3   : > { %3543 = vmatpush3.bf16.xpose.msra.mxu1 %v663_v32 }
 0x1c4   : > { %3793 = vmatprep.subr.msk.bf16.mxu1 %vm538_vm1, %v643_v20  ;;  %v480_v20 = vld [vmem:[%s6177_s2 + $0x90] sm:$0xff] }
 0x1c5   : > { %v748_v33 = vpop.permute.xlu1 %747  ;;  %v4748_v51 = vpop.permute.xlu0 %1432 }
 0x1c6   : > { %3797 = vmatprep.subr.msk.bf16.mxu0 %vm538_vm1, %v748_v33  ;;  %v771_v34 = vsel %vm538_vm1, %v748_v33, 0 }
 0x1c7   : > { %3561 = vmatpush3.bf16.xpose.msra.mxu0 %v771_v34 }
 0x1c8   : > { %3586 = vmatprep.subr.bf16.mxu0 %v4563_v24 }
 0x1c9   : > { %v635_v37 = vpop.permute.xlu1 %634  ;;  %v1518_v56 = vpop.permute.xlu0 %1517 }
 0x1cb   : > { %3545 = vmatpush3.bf16.xpose.msra.mxu1 %v666_v39 }
 0x1cc   : > { %3798 = vmatprep.subr.msk.bf16.mxu1 %vm538_vm1, %v847_v23  ;;  %v481_v23 = vld [vmem:[%s6177_s2 + $0x98] sm:$0xff] }
 0x1cd   : > { %v853_v41 = vpop.permute.xlu1 %852 }
 0x1ce   : > { %3563 = vmatmul.mubr.msk.bf16.vlgmr.msra.gmra.mrb[32].mxu0 %vm538_vm1, %v736_v31  ;;  %v876_v55 = vsel %vm538_vm1, %v853_v41, 0 }
 0x1cf   : > { %3566 = vmatprep.mubr.msk.bf16.mxu0 %vm538_vm1, %v738_v42  ;;  %3587 = vmatpush3.bf16.msra.mxu0 %v4563_v24 }
 0x1d0   : > { %3588 = vmatprep.subr.bf16.mxu0 %v4575_v36 }
 0x1d1   : > { %v841_v43 = vpop.permute.xlu1 %840 }
 0x1d2   : > { %3547 = vmatmul.mubr.msk.bf16.vlgmr.msra.gmra.mrb[8].mxu1 %vm538_vm1, %v631_v12  ;;  %v465_v12 = vld [vmem:[%s6177_s2 + $0x18] sm:$0xff] }
 0x1d3   : > { %3550 = vmatprep.mubr.msk.bf16.mxu1 %vm538_vm1, %v633_v30  ;;  %3571 = vmatpush3.bf16.xpose.msra.mxu1 %v867_v44  ;;  %v479_v30 = vld [vmem:[%s6177_s2 + $0x88] sm:$0xff] }
 0x1d4   : > { %3589 = vmatpush3.bf16.msra.mxu0 %v4575_v36  ;;  %3799 = vmatprep.subr.msk.bf16.mxu1 %vm538_vm1, %v849_v14 }
 0x1d5   : > { %3590 = vmatprep.subr.bf16.mxu0 %v4587_v48  ;;  %v740_v45 = vpop.permute.xlu1 %739 }
 0x1d6   : > { %3567 = vmatmul.mubr.msk.bf16.gmra.mrb[36].mxu0 %vm538_vm1, %v740_v45 }
 0x1d8   : > { %3591 = vmatpush3.bf16.msra.mxu0 %v4587_v48 }
 0x1d9   : > { %3592 = vmatprep.subr.bf16.mxu0 %v4605_v60  ;;  %v845_v24 = vpop.permute.xlu1 %844 }
 0x1da   : > { %3551 = vmatmul.mubr.msk.bf16.gmra.mrb[12].mxu1 %vm538_vm1, %v635_v37 }
 0x1db   : > { %3573 = vmatpush3.bf16.xpose.msra.mxu1 %v870_v46  ;;  %3578 = vmatprep.mubr.msk.bf16.mxu1 %vm538_vm1, %v839_v35  ;;  %v463_v35 = vld [vmem:[%s6177_s2 + $0x8] sm:$0xff] }
 0x1dc   : > { %3593 = vmatpush3.bf16.msra.mxu0 %v4605_v60  ;;  %3800 = vmatprep.subr.msk.bf16.mxu1 %vm538_vm1, %v4698_v17  ;;  %v1522_v60 = vpop.permute.xlu0 %1521 }
 0x1dd   : > { %v4740_v36 = vpop.permute.xlu1 %1428 }
 0x1de   : > { %3602 = vmatprep.subr.bf16.mxu0 %v4740_v36 }
 0x1e1   : > { %v4743_v48 = vpop.permute.xlu1 %1430 }
 0x1e3   : > { %3575 = vmatpush3.bf16.xpose.msra.mxu1 %v873_v49 }
 0x1e4   : > { %3801 = vmatprep.subr.msk.bf16.mxu1 %vm538_vm1, %v853_v41 }
 0x1e5   : > { %v1520_v53 = vpop.permute.xlu1 %1519 }
 0x1e9   : > { %v4750_v54 = vpop.permute.xlu1 %1606 }
 0x1eb   : > { %3577 = vmatpush3.bf16.xpose.msra.mxu1 %v876_v55 }
 0x1ec   : > { %3618 = vmatprep.subr.bf16.mxu1 %v1518_v56 }
 0x1ed   : > { %v4753_v57 = vpop.permute.xlu1 %1608 }
 0x1f1   : > { %v4755_v58 = vpop.permute.xlu1 %1610 }
 0x1f2   : > { %3579 = vmatmul.mubr.msk.bf16.vlgmr.msra.gmra.mrb[16].mxu1 %vm538_vm1, %v841_v43  ;;  %v469_v43 = vld [vmem:[%s6177_s2 + $0x38] sm:$0xff] }
 0x1f3   : > { %3582 = vmatprep.mubr.msk.bf16.mxu1 %vm538_vm1, %v843_v47  ;;  %3619 = vmatpush3.bf16.msra.mxu1 %v1518_v56  ;;  %v468_v47 = vld [vmem:[%s6177_s2 + $0x30] sm:$0xff] }
 0x1f4   : > { %3620 = vmatprep.subr.bf16.mxu1 %v1520_v53 }
 0x1f5   : > { %v4759_v59 = vpop.permute.xlu1 %1854 }
 0x1f7   : > { %3621 = vmatpush3.bf16.msra.mxu1 %v1520_v53 }
 0x1f8   : > { %3622 = vmatprep.subr.bf16.mxu1 %v1522_v60 }
 0x1f9   : > { %v4761_v61 = vpop.permute.xlu1 %1959 }
 0x1fa   : > { %6214 = vst [vmem:[#allocation9_spill] sm:$0xff] %v4761_v61  ;;  %3583 = vmatmul.mubr.msk.bf16.gmra.mrb[20].mxu1 %vm538_vm1, %v845_v24 }
 0x1fb   : > { %3623 = vmatpush3.bf16.msra.mxu1 %v1522_v60  ;;  %v485_v60 = vld [vmem:[%s6177_s2 + $0xb8] sm:$0xff] }
 0x1fd   : > { %v4764_v63 = vpop.permute.xlu1 %1858 }
 0x201   : > { %v4766_v1 = vpop.permute.xlu1 %1434 }
 0x205   : > { %v1524_v2 = vpop.permute.xlu1 %1523 }
 0x206   : > { %3624 = vmatprep.subr.bf16.mxu1 %v1524_v2 }
 0x207   : > { %3625 = vmatpush3.bf16.msra.mxu1 %v1524_v2 }
 0x208   : > { %3802 = vmatprep.subr.msk.bf16.mxu1 %vm538_vm1, %v4759_v59 }
 0x285   : > { %v3532_v4 = vpop.f32.mrb[0].mxu1 }
 0x286   : > { %v4776_v6 = vadd.f32 %v3532_v4, %v464_v3  ;;  %v597_v7 = vpop.f32.mrb[1].mxu1 }
 0x287   : > { %v3533_v8 = vpop.f32.mrb[2].mxu1  ;;  %v4778_v9 = vadd.f32 %v597_v7, %v462_v5  ;;  %v484_v7 = vld [vmem:[%s6177_s2 + $0xb0] sm:$0xff] }
 0x288   : > { %v600_v10 = vpop.f32.mrb[3].mxu1  ;;  %v981_v11 = vsel %vm308_vm0, %v4776_v6, -inf  ;;  %v4785_v13 = vadd.f32 %v3533_v8, %v465_v12 }
 0x289   : > { %982 = vmax.xlane.f32.xlu0 %v981_v11  ;;  %v975_v14 = vsel %vm308_vm0, %v4778_v9, -inf  ;;  %v4821_v45 = vadd.f32 %v600_v10, %v463_v35  ;;  %v473_v35 = vld [vmem:[%s6177_s2 + $0x58] sm:$0xff] }
 0x28a   : > { %v984_v19 = vsel %vm308_vm0, %v4785_v13, -inf }
 0x28b   : > { %v978_v5 = vsel %vm308_vm0, %v4821_v45, -inf }
 0x28d   : > { %v3536_v15 = vpop.f32.mrb[4].mxu1  ;;  %976 = vmax.xlane.f32.xlu0 %v975_v14  ;;  %v467_v14 = vld [vmem:[%s6177_s2 + $0x28] sm:$0xff] }
 0x28e   : > { %v613_v16 = vpop.f32.mrb[5].mxu1  ;;  %v4835_v3 = vadd.f32 %v3536_v15, %v468_v47 }
 0x28f   : > { %v3537_v17 = vpop.f32.mrb[6].mxu1 }
 0x290   : > { %v616_v18 = vpop.f32.mrb[7].mxu1  ;;  %v4828_v53 = vadd.f32 %v3537_v17, %v469_v43  ;;  %v472_v43 = vld [vmem:[%s6177_s2 + $0x50] sm:$0xff] }
 0x291   : > { %985 = vmax.xlane.f32.xlu0 %v984_v19 }
 0x292   : > { %v996_v12 = vsel %vm308_vm0, %v4828_v53, -inf }
 0x2a1   : > { %v3564_v21 = vpop.f32.mrb[32].mxu0 }
 0x2a2   : > { %v4800_v25 = vadd.f32 %v3564_v21, %v480_v20  ;;  %v807_v27 = vpop.f32.mrb[33].mxu0  ;;  %v993_v20 = vsel %vm308_vm0, %v4835_v3, -inf  ;;  %v466_v21 = vld [vmem:[%s6177_s2 + $0x20] sm:$0xff] }
 0x2a3   : > { %v3565_v29 = vpop.f32.mrb[34].mxu0  ;;  %v4805_v31 = vadd.f32 %v807_v27, %v478_v22  ;;  %v4860_v22 = vadd.f32 %v616_v18, %v467_v14  ;;  %v483_v27 = vld [vmem:[%s6177_s2 + $0xa8] sm:$0xff] }
 0x2a4   : > { %v4807_v32 = vadd.f32 %v3565_v29, %v481_v23  ;;  %v810_v33 = vpop.f32.mrb[35].mxu0  ;;  %v1029_v34 = vsel %vm308_vm0, %v4800_v25, -inf  ;;  %v4867_v29 = vadd.f32 %v613_v16, %v466_v21 }
 0x2a5   : > { %v3548_v37 = vpop.f32.mrb[8].mxu1  ;;  %1030 = vmax.xlane.f32.xlu1 %v1029_v34  ;;  %v4814_v39 = vadd.f32 %v810_v33, %v479_v30  ;;  %v1023_v46 = vsel %vm308_vm0, %v4805_v31, -inf  ;;  %v482_v33 = vld [vmem:[%s6177_s2 + $0xa0] sm:$0xff]  ;;  %v990_v34 = vsel %vm308_vm0, %v4860_v22, -inf }
 0x2a6   : > { %v702_v41 = vpop.f32.mrb[9].mxu1  ;;  %v1032_v42 = vsel %vm308_vm0, %v4807_v32, -inf }
 0x2a7   : > { %v3549_v44 = vpop.f32.mrb[10].mxu1  ;;  %1033 = vmax.xlane.f32.xlu0 %v1032_v42  ;;  %v1026_v56 = vsel %vm308_vm0, %v4814_v39, -inf  ;;  %v987_v42 = vsel %vm308_vm0, %v4867_v29, -inf }
 0x2a8   : > { %v705_v24 = vpop.f32.mrb[11].mxu1 }
 0x2a9   : > { %1024 = vmax.xlane.f32.xlu1 %v1023_v46  ;;  %v3568_v49 = vpop.f32.mrb[36].mxu0  ;;  %v4888_v46 = vadd.f32 %v3549_v44, %v473_v35 }
 0x2aa   : > { %v823_v55 = vpop.f32.mrb[37].mxu0  ;;  %v4853_v17 = vadd.f32 %v3568_v49, %v484_v7  ;;  %v471_v49 = vld [vmem:[%s6177_s2 + $0x48] sm:$0xff] }
 0x2ab   : > { %1027 = vmax.xlane.f32.xlu0 %v1026_v56  ;;  %v3569_v2 = vpop.f32.mrb[38].mxu0  ;;  %v4881_v16 = vadd.f32 %v823_v55, %v482_v33  ;;  %v4895_v55 = vadd.f32 %v3548_v37, %v472_v43  ;;  %v4902_v44 = vadd.f32 %v705_v24, %v471_v49  ;;  %v493_v49 = vld [vmem:[%s6177_s2 + $0xf8] sm:$0xff] }
 0x2ac   : > { %v826_v4 = vpop.f32.mrb[39].mxu0  ;;  %v4844_v10 = vadd.f32 %v3569_v2, %v485_v60  ;;  %v1041_v30 = vsel %vm308_vm0, %v4853_v17, -inf  ;;  %v470_v60 = vld [vmem:[%s6177_s2 + $0x40] sm:$0xff]  ;;  %v1008_v2 = vsel %vm308_vm0, %v4888_v46, -inf }
 0x2ad   : > { %v4842_v8 = vpop.f32.mrb[12].mxu1  ;;  %979 = vmax.xlane.f32.xlu1 %v978_v5  ;;  %v4874_v18 = vadd.f32 %v826_v4, %v483_v27  ;;  %v1035_v56 = vsel %vm308_vm0, %v4881_v16, -inf  ;;  %v477_v4 = vld [vmem:[%s6177_s2 + $0x78] sm:$0xff]  ;;  %v4909_v37 = vadd.f32 %v702_v41, %v470_v60  ;;  %v1005_v5 = vsel %vm308_vm0, %v4895_v55, -inf }
 0x2ae   : > { %v4846_v11 = vpop.f32.mrb[13].mxu1  ;;  %v1044_v23 = vsel %vm308_vm0, %v4844_v10, -inf  ;;  %v1002_v24 = vsel %vm308_vm0, %v4902_v44, -inf }
 0x2af   : > { %v3553_v15 = vpop.f32.mrb[14].mxu1  ;;  %997 = vmax.xlane.f32.xlu0 %v996_v12  ;;  %v1038_v47 = vsel %vm308_vm0, %v4874_v18, -inf  ;;  %v475_v12 = vld [vmem:[%s6177_s2 + $0x68] sm:$0xff]  ;;  %v999_v14 = vsel %vm308_vm0, %v4909_v37, -inf }
 0x2b0   : > { %v721_v19 = vpop.f32.mrb[15].mxu1  ;;  %v4913_v7 = vadd.f32 %v3553_v15, %v477_v4 }
 0x2b1   : > { %994 = vmax.xlane.f32.xlu1 %v993_v20  ;;  %v4922_v41 = vadd.f32 %v721_v19, %v475_v12  ;;  %v487_v19 = vld [vmem:[%s6177_s2 + $0xc8] sm:$0xff] }
 0x2b2   : > { %v1020_v15 = vsel %vm308_vm0, %v4913_v7, -inf }
 0x2b3   : > { %1045 = vmax.xlane.f32.xlu0 %v1044_v23  ;;  %v489_v23 = vld [vmem:[%s6177_s2 + $0xd8] sm:$0xff] }
 0x2b5   : > { %1042 = vmax.xlane.f32.xlu1 %v1041_v30 }
 0x2b7   : > { %991 = vmax.xlane.f32.xlu0 %v990_v34  ;;  %v1014_v34 = vsel %vm308_vm0, %v4922_v41, -inf }
 0x2b9   : > { %988 = vmax.xlane.f32.xlu1 %v987_v42 }
 0x2bb   : > { %1039 = vmax.xlane.f32.xlu0 %v1038_v47 }
 0x2bd   : > { %1036 = vmax.xlane.f32.xlu1 %v1035_v56 }
 0x2bf   : > { %1009 = vmax.xlane.f32.xlu0 %v1008_v2 }
 0x2c1   : > { %1006 = vmax.xlane.f32.xlu1 %v1005_v5  ;;  %v491_v5 = vld [vmem:[%s6177_s2 + $0xe8] sm:$0xff] }
 0x2c3   : > { %1003 = vmax.xlane.f32.xlu0 %v1002_v24 }
 0x2c5   : > { %v3580_v20 = vpop.f32.mrb[16].mxu1  ;;  %1000 = vmax.xlane.f32.xlu1 %v999_v14 }
 0x2c6   : > { %v912_v21 = vpop.f32.mrb[17].mxu1 }
 0x2c7   : > { %v3581_v27 = vpop.f32.mrb[18].mxu1  ;;  %1021 = vmax.xlane.f32.xlu0 %v1020_v15  ;;  %v476_v15 = vld [vmem:[%s6177_s2 + $0x70] sm:$0xff] }
 0x2c8   : > { %v915_v30 = vpop.f32.mrb[19].mxu1  ;;  %v4929_v33 = vadd.f32 %v3581_v27, %v489_v23  ;;  %v4962_v23 = vadd.f32 %v4842_v8, %v476_v15  ;;  %v474_v27 = vld [vmem:[%s6177_s2 + $0x60] sm:$0xff] }
 0x2c9   : > { %v4936_v42 = vadd.f32 %v915_v30, %v487_v19  ;;  %v4968_v30 = vadd.f32 %v4846_v11, %v474_v27  ;;  %v488_v19 = vld [vmem:[%s6177_s2 + $0xd0] sm:$0xff] }
 0x2ca   : > { %v1056_v47 = vsel %vm308_vm0, %v4929_v33, -inf }
 0x2cb   : > { %1015 = vmax.xlane.f32.xlu0 %v1014_v34  ;;  %v1050_v4 = vsel %vm308_vm0, %v4936_v42, -inf  ;;  %v1017_v34 = vsel %vm308_vm0, %v4962_v23, -inf  ;;  %v1011_v8 = vsel %vm308_vm0, %v4968_v30, -inf }
 0x2cd   : > { %v3584_v35 = vpop.f32.mrb[20].mxu1 }
 0x2ce   : > { %v928_v43 = vpop.f32.mrb[21].mxu1 }
 0x2cf   : > { %v3585_v56 = vpop.f32.mrb[22].mxu1  ;;  %1057 = vmax.xlane.f32.xlu0 %v1056_v47  ;;  %v4975_v47 = vadd.f32 %v3580_v20, %v488_v19 }
 0x2d0   : > { %v931_v60 = vpop.f32.mrb[23].mxu1  ;;  %v4943_v2 = vadd.f32 %v3585_v56, %v493_v49  ;;  %v486_v49 = vld [vmem:[%s6177_s2 + $0xc0] sm:$0xff] }
 0x2d1   : > { %v4950_v24 = vadd.f32 %v931_v60, %v491_v5  ;;  %v4982_v11 = vadd.f32 %v912_v21, %v486_v49  ;;  %v1053_v56 = vsel %vm308_vm0, %v4975_v47, -inf  ;;  %v492_v60 = vld [vmem:[%s6177_s2 + $0xf0] sm:$0xff]  ;;  %v4993_v5 = vpop.permute.xlu0 %1856  ;;  %v490_v21 = vld [vmem:[%s6177_s2 + $0xe0] sm:$0xff] }
 0x2d2   : > { %v1068_v12 = vsel %vm308_vm0, %v4943_v2, -inf  ;;  %v4989_v20 = vadd.f32 %v3584_v35, %v492_v60 }
 0x2d3   : > { %1051 = vmax.xlane.f32.xlu0 %v1050_v4  ;;  %v1062_v14 = vsel %vm308_vm0, %v4950_v24, -inf  ;;  %v1047_v4 = vsel %vm308_vm0, %v4982_v11, -inf }
 0x2d5   : > { %v5002_v15 = vpop.permute.xlu0 %1961 }
 0x2d6   : > { %1860 = vrot.lane.b32.xlu1 %v4607_v62, %s4423_s6  ;;  %6215 = vst [vmem:[#allocation10_spill] sm:$0xff] %v5002_v15 }
 0x2d7   : > { %1069 = vmax.xlane.f32.xlu0 %v1068_v12  ;;  %v4998_v12 = vadd.f32 %v928_v43, %v490_v21 }
 0x2d9   : > { %v1059_v35 = vsel %vm308_vm0, %v4998_v12, -inf  ;;  %v5006_v27 = vpop.permute.xlu0 %1612 }
 0x2db   : > { %1063 = vmax.xlane.f32.xlu0 %v1062_v14  ;;  %v1065_v14 = vsel %vm308_vm0, %v4989_v20, -inf }
 0x2fa   : > { %1018 = vmax.xlane.f32.xlu1 %v1017_v34 }
 0x2fe   : > { %1012 = vmax.xlane.f32.xlu1 %v1011_v8 }
 0x302   : > { %1054 = vmax.xlane.f32.xlu1 %v1053_v56 }
 0x306   : > { %1048 = vmax.xlane.f32.xlu1 %v1047_v4 }
 0x30a   : > { %1066 = vmax.xlane.f32.xlu1 %v1065_v14 }
 0x30e   : > { %1060 = vmax.xlane.f32.xlu1 %v1059_v35 }
 0x316   : > { %v983_v34 = vpop.xlane.xlu0 %982 }
 0x317   : > { %v1073_v19 = vsub.f32 %v4776_v6, %v983_v34 }
 0x319   : > { %v1107_v8 = vmul.f32 1.442695, %v1073_v19 }
 0x31a   : > { %v977_v49 = vpop.xlane.xlu0 %976 }
 0x31b   : > { %4038 = vpow2.f32 %v1107_v8  ;;  %v1071_v43 = vsub.f32 %v4778_v9, %v977_v49 }
 0x31d   : > { %v1103_v56 = vmul.f32 1.442695, %v1071_v43 }
 0x31e   : > { %v986_v6 = vpop.xlane.xlu0 %985 }
 0x31f   : > { %4040 = vpow2.f32 %v1103_v56  ;;  %v1074_v35 = vsub.f32 %v4785_v13, %v986_v6 }
 0x321   : > { %v1109_v8 = vmul.f32 1.442695, %v1074_v35 }
 0x325   : > { %v5010_v60 = vpop.eup %4038 }
 0x326   : > { %v1173_v4 = vsel %vm308_vm0, %v5010_v60, 0.0 }
 0x327   : > { %1174 = vadd.xlane.f32.xlu1 %v1173_v4 }
 0x329   : > { %v5014_v21 = vpop.eup %4040 }
 0x32a   : > { %v1167_v14 = vsel %vm308_vm0, %v5014_v21, 0.0 }
 0x32b   : > { %1168 = vadd.xlane.f32.xlu1 %v1167_v14 }
 0x332   : > { %v1031_v34 = vpop.xlane.xlu1 %1030 }
 0x333   : > { %v1089_v9 = vsub.f32 %v4800_v25, %v1031_v34 }
 0x334   : > { %v1034_v19 = vpop.xlane.xlu0 %1033 }
 0x335   : > { %v1139_v49 = vmul.f32 1.442695, %v1089_v9  ;;  %v1090_v43 = vsub.f32 %v4807_v32, %v1034_v19 }
 0x336   : > { %v1025_v56 = vpop.xlane.xlu1 %1024 }
 0x337   : > { %4042 = vpow2.f32 %v1139_v49  ;;  %v1087_v4 = vsub.f32 %v4805_v31, %v1025_v56  ;;  %v1141_v0 = vmul.f32 1.442695, %v1090_v43 }
 0x338   : > { %v1028_v15 = vpop.xlane.xlu0 %1027  ;;  %4044 = vpow2.f32 %v1109_v8 }
 0x339   : > { %v1135_v52 = vmul.f32 1.442695, %v1087_v4  ;;  %v1088_v25 = vsub.f32 %v4814_v39, %v1028_v15 }
 0x33a   : > { %v980_v14 = vpop.xlane.xlu1 %979 }
 0x33b   : > { %4046 = vpow2.f32 %v1135_v52  ;;  %v1072_v13 = vsub.f32 %v4821_v45, %v980_v14  ;;  %v1137_v31 = vmul.f32 1.442695, %v1088_v25 }
 0x33c   : > { %v998_v6 = vpop.xlane.xlu0 %997  ;;  %4048 = vpow2.f32 %v1141_v0 }
 0x33d   : > { %v1105_v35 = vmul.f32 1.442695, %v1072_v13 }
 0x33e   : > { %v995_v34 = vpop.xlane.xlu1 %994 }
 0x33f   : > { %v1077_v32 = vsub.f32 %v4835_v3, %v995_v34  ;;  %4050 = vpow2.f32 %v1105_v35  ;;  %v1078_v3 = vsub.f32 %v4828_v53, %v998_v6 }
 0x340   : > { %v1046_v9 = vpop.xlane.xlu0 %1045 }
 0x341   : > { %v5025_v19 = vpop.eup %4042  ;;  %v1115_v8 = vmul.f32 1.442695, %v1077_v32  ;;  %v1094_v35 = vsub.f32 %v4844_v10, %v1046_v9 }
 0x342   : > { %v1043_v49 = vpop.xlane.xlu1 %1042  ;;  %v1221_v52 = vsel %vm308_vm0, %v5025_v19, 0.0  ;;  %v5029_v43 = vpop.eup %4044 }
 0x343   : > { %4052 = vpow2.f32 %v1115_v8  ;;  %v1093_v0 = vsub.f32 %v4853_v17, %v1043_v49  ;;  %1222 = vadd.xlane.f32.xlu0 %v1221_v52  ;;  %v1176_v14 = vsel %vm308_vm0, %v5029_v43, 0.0  ;;  %v1117_v17 = vmul.f32 1.442695, %v1078_v3 }
 0x344   : > { %v992_v39 = vpop.xlane.xlu0 %991  ;;  %4054 = vpow2.f32 %v1137_v31 }
 0x345   : > { %v5032_v45 = vpop.eup %4046  ;;  %v1147_v15 = vmul.f32 1.442695, %v1093_v0  ;;  %v1076_v52 = vsub.f32 %v4860_v22, %v992_v39 }
 0x346   : > { %v989_v56 = vpop.xlane.xlu1 %988  ;;  %v1215_v4 = vsel %vm308_vm0, %v5032_v45, 0.0  ;;  %v5039_v13 = vpop.eup %4048 }
 0x347   : > { %v1075_v25 = vsub.f32 %v4867_v29, %v989_v56  ;;  %1216 = vadd.xlane.f32.xlu1 %v1215_v4  ;;  %1177 = vadd.xlane.f32.xlu0 %v1176_v14  ;;  %4056 = vpow2.f32 %v1147_v15  ;;  %v1224_v32 = vsel %vm308_vm0, %v5039_v13, 0.0  ;;  %v1149_v29 = vmul.f32 1.442695, %v1094_v35 }
 0x348   : > { %v1040_v53 = vpop.xlane.xlu0 %1039  ;;  %v1113_v4 = vmul.f32 1.442695, %v1076_v52 }
 0x349   : > { %v1111_v34 = vmul.f32 1.442695, %v1075_v25  ;;  %v5045_v31 = vpop.eup %4050  ;;  %v1092_v22 = vsub.f32 %v4874_v18, %v1040_v53 }
 0x34a   : > { %v1037_v6 = vpop.xlane.xlu1 %1036  ;;  %v1170_v3 = vsel %vm308_vm0, %v5045_v31, 0.0 }
 0x34b   : > { %4058 = vpow2.f32 %v1111_v34  ;;  %v1091_v8 = vsub.f32 %v4881_v16, %v1037_v6  ;;  %1225 = vadd.xlane.f32.xlu0 %v1224_v32 }
 0x34c   : > { %4060 = vpow2.f32 %v1117_v17  ;;  %v1010_v56 = vpop.xlane.xlu0 %1009 }
 0x34d   : > { %v5048_v49 = vpop.eup %4052  ;;  %v1143_v10 = vmul.f32 1.442695, %v1091_v8  ;;  %v1082_v6 = vsub.f32 %v4888_v46, %v1010_v56 }
 0x34e   : > { %v1007_v9 = vpop.xlane.xlu1 %1006  ;;  %v1185_v0 = vsel %vm308_vm0, %v5048_v49, 0.0  ;;  %v5055_v15 = vpop.eup %4054 }
 0x34f   : > { %4062 = vpow2.f32 %v1143_v10  ;;  %v1081_v16 = vsub.f32 %v4895_v55, %v1007_v9  ;;  %1186 = vadd.xlane.f32.xlu1 %v1185_v0  ;;  %1171 = vadd.xlane.f32.xlu0 %v1170_v3  ;;  %v1218_v25 = vsel %vm308_vm0, %v5055_v15, 0.0  ;;  %v1145_v55 = vmul.f32 1.442695, %v1092_v22 }
 0x350   : > { %4064 = vpow2.f32 %v1149_v29  ;;  %v1004_v8 = vpop.xlane.xlu0 %1003  ;;  %v1125_v52 = vmul.f32 1.442695, %v1082_v6 }
 0x351   : > { %v1123_v39 = vmul.f32 1.442695, %v1081_v16  ;;  %v5061_v17 = vpop.eup %4056  ;;  %v1080_v10 = vsub.f32 %v4902_v44, %v1004_v8 }
 0x352   : > { %v1001_v14 = vpop.xlane.xlu1 %1000  ;;  %v1233_v53 = vsel %vm308_vm0, %v5061_v17, 0.0 }
 0x353   : > { %4066 = vpow2.f32 %v1123_v39  ;;  %v1079_v35 = vsub.f32 %v4909_v37, %v1001_v14  ;;  %1219 = vadd.xlane.f32.xlu0 %v1218_v25  ;;  %v1121_v16 = vmul.f32 1.442695, %v1080_v10 }
 0x354   : > { %4068 = vpow2.f32 %v1113_v4 }
 0x355   : > { %v5064_v34 = vpop.eup %4058  ;;  %v1119_v32 = vmul.f32 1.442695, %v1079_v35 }
 0x356   : > { %v1179_v18 = vsel %vm308_vm0, %v5064_v34, 0.0  ;;  %v5071_v29 = vpop.eup %4060 }
 0x357   : > { %4070 = vpow2.f32 %v1119_v32  ;;  %1180 = vadd.xlane.f32.xlu1 %v1179_v18  ;;  %1234 = vadd.xlane.f32.xlu0 %v1233_v53  ;;  %v1188_v9 = vsel %vm308_vm0, %v5071_v29, 0.0  ;;  %v1022_v18 = vpop.xlane.xlu0 %1021 }
 0x358   : > { %4072 = vpow2.f32 %v1145_v55 }
 0x359   : > { %v5073_v37 = vpop.eup %4062  ;;  %4074 = vpow2.f32 %v1125_v52  ;;  %v5108_v52 = vpop.permute.xlu1 %1860 }
 0x35a   : > { %v1227_v46 = vsel %vm308_vm0, %v5073_v37, 0.0  ;;  %v5080_v0 = vpop.eup %4064  ;;  %4076 = vpow2.f32 %v1121_v16 }
 0x35b   : > { %1228 = vadd.xlane.f32.xlu1 %v1227_v46  ;;  %1189 = vadd.xlane.f32.xlu0 %v1188_v9  ;;  %v1236_v44 = vsel %vm308_vm0, %v5080_v0, 0.0  ;;  %v1016_v53 = vpop.xlane.xlu0 %1015  ;;  %v1086_v46 = vsub.f32 %v4913_v7, %v1022_v18 }
 0x35d   : > { %v5082_v3 = vpop.eup %4066 }
 0x35e   : > { %v1197_v56 = vsel %vm308_vm0, %v5082_v3, 0.0  ;;  %v5088_v4 = vpop.eup %4068 }
 0x35f   : > { %1198 = vadd.xlane.f32.xlu1 %v1197_v56  ;;  %1237 = vadd.xlane.f32.xlu0 %v1236_v44  ;;  %v1182_v14 = vsel %vm308_vm0, %v5088_v4, 0.0  ;;  %v1058_v10 = vpop.xlane.xlu0 %1057  ;;  %v1084_v56 = vsub.f32 %v4922_v41, %v1016_v53  ;;  %v1133_v44 = vmul.f32 1.442695, %v1086_v46 }
 0x361   : > { %v5090_v22 = vpop.eup %4070  ;;  %v1129_v40 = vmul.f32 1.442695, %v1084_v56 }
 0x362   : > { %v1191_v39 = vsel %vm308_vm0, %v5090_v22, 0.0  ;;  %v5096_v25 = vpop.eup %4072 }
 0x363   : > { %1192 = vadd.xlane.f32.xlu1 %v1191_v39  ;;  %1183 = vadd.xlane.f32.xlu0 %v1182_v14  ;;  %v1230_v35 = vsel %vm308_vm0, %v5096_v25, 0.0  ;;  %v5100_v55 = vpop.eup %4074  ;;  %v1098_v39 = vsub.f32 %v4929_v33, %v1058_v10  ;;  %v1052_v14 = vpop.xlane.xlu0 %1051 }
 0x364   : > { %v1200_v6 = vsel %vm308_vm0, %v5100_v55, 0.0  ;;  %v5104_v32 = vpop.eup %4076  ;;  %v1096_v61 = vsub.f32 %v4936_v42, %v1052_v14 }
 0x365   : > { %v1194_v8 = vsel %vm308_vm0, %v5104_v32, 0.0  ;;  %v1157_v28 = vmul.f32 1.442695, %v1098_v39 }
 0x366   : > { %v1153_v41 = vmul.f32 1.442695, %v1096_v61 }
 0x367   : > { %1231 = vadd.xlane.f32.xlu0 %v1230_v35 }
 0x36b   : > { %1201 = vadd.xlane.f32.xlu0 %v1200_v6 }
 0x36f   : > { %1195 = vadd.xlane.f32.xlu0 %v1194_v8 }
 0x387   : > { %v1019_v9 = vpop.xlane.xlu1 %1018 }
 0x388   : > { %v1085_v16 = vsub.f32 %v4962_v23, %v1019_v9 }
 0x38a   : > { %v1131_v35 = vmul.f32 1.442695, %v1085_v16 }
 0x38b   : > { %v1013_v6 = vpop.xlane.xlu1 %1012 }
 0x38c   : > { %4078 = vpow2.f32 %v1131_v35  ;;  %v1083_v8 = vsub.f32 %v4968_v30, %v1013_v6 }
 0x38d   : > { %4080 = vpow2.f32 %v1133_v44 }
 0x38e   : > { %v1127_v7 = vmul.f32 1.442695, %v1083_v8 }
 0x38f   : > { %v1055_v18 = vpop.xlane.xlu1 %1054 }
 0x390   : > { %4082 = vpow2.f32 %v1127_v7  ;;  %v1097_v23 = vsub.f32 %v4975_v47, %v1055_v18  ;;  %v1070_v7 = vpop.xlane.xlu0 %1069 }
 0x391   : > { %4084 = vpow2.f32 %v1129_v40 }
 0x392   : > { %4086 = vpow2.f32 %v1157_v28  ;;  %v1155_v33 = vmul.f32 1.442695, %v1097_v23 }
 0x393   : > { %v1049_v53 = vpop.xlane.xlu1 %1048  ;;  %4088 = vpow2.f32 %v1153_v41 }
 0x394   : > { %v1095_v10 = vsub.f32 %v4982_v11, %v1049_v53  ;;  %4090 = vpow2.f32 %v1155_v33  ;;  %v1064_v23 = vpop.xlane.xlu0 %1063 }
 0x395   : > { %v1100_v53 = vsub.f32 %v4950_v24, %v1064_v23 }
 0x396   : > { %v5118_v46 = vpop.eup %4078  ;;  %v1151_v30 = vmul.f32 1.442695, %v1095_v10 }
 0x397   : > { %v1209_v42 = vsel %vm308_vm0, %v5118_v46, 0.0  ;;  %v5122_v9 = vpop.eup %4080  ;;  %v1067_v18 = vpop.xlane.xlu1 %1066 }
 0x398   : > { %1210 = vadd.xlane.f32.xlu0 %v1209_v42  ;;  %4092 = vpow2.f32 %v1151_v30  ;;  %v1212_v61 = vsel %vm308_vm0, %v5122_v9, 0.0  ;;  %v1101_v41 = vsub.f32 %v4989_v20, %v1067_v18  ;;  %v1161_v42 = vmul.f32 1.442695, %v1100_v53 }
 0x39a   : > { %v5124_v16 = vpop.eup %4082  ;;  %v1163_v10 = vmul.f32 1.442695, %v1101_v41 }
 0x39b   : > { %v5126_v40 = vpop.eup %4084  ;;  %v1203_v28 = vsel %vm308_vm0, %v5124_v16, 0.0  ;;  %v1061_v33 = vpop.xlane.xlu1 %1060 }
 0x39c   : > { %v5132_v47 = vpop.eup %4086  ;;  %1204 = vadd.xlane.f32.xlu1 %v1203_v28  ;;  %1213 = vadd.xlane.f32.xlu0 %v1212_v61  ;;  %v1206_v56 = vsel %vm308_vm0, %v5126_v40, 0.0  ;;  %v1099_v30 = vsub.f32 %v4998_v12, %v1061_v33  ;;  %v1102_v28 = vsub.f32 %v4943_v2, %v1070_v7  ;;  %4094 = vpow2.f32 %v1163_v10 }
 0x39d   : > { %6216 = vst [vmem:[#allocation11_spill] sm:$0xff] %v5132_v47  ;;  %v5134_v11 = vpop.eup %4088  ;;  %v1248_v44 = vsel %vm308_vm0, %v5132_v47, 0.0  ;;  %4096 = vpow2.f32 %v1161_v42 }
 0x39e   : > { %6217 = vst [vmem:[#allocation12_spill] sm:$0xff] %v5134_v11  ;;  %v5140_v39 = vpop.eup %4090  ;;  %v1242_v35 = vsel %vm308_vm0, %v5134_v11, 0.0  ;;  %v1159_v61 = vmul.f32 1.442695, %v1099_v30 }
 0x39f   : > { %v1245_v14 = vsel %vm308_vm0, %v5140_v39, 0.0 }
 0x3a0   : > { %1207 = vadd.xlane.f32.xlu0 %v1206_v56  ;;  %1249 = vadd.xlane.f32.xlu1 %v1248_v44  ;;  %v1165_v56 = vmul.f32 1.442695, %v1102_v28  ;;  %4098 = vpow2.f32 %v1159_v61 }
 0x3a2   : > { %v5146_v6 = vpop.eup %4092  ;;  %4100 = vpow2.f32 %v1165_v56 }
 0x3a3   : > { %v1239_v8 = vsel %vm308_vm0, %v5146_v6, 0.0 }
 0x3a4   : > { %1246 = vadd.xlane.f32.xlu0 %v1245_v14  ;;  %1243 = vadd.xlane.f32.xlu1 %v1242_v35 }
 0x3a8   : > { %1240 = vadd.xlane.f32.xlu0 %v1239_v8  ;;  %v5158_v8 = vpop.eup %4094 }
 0x3a9   : > { %6218 = vst [vmem:[#allocation13_spill] sm:$0xff] %v5158_v8  ;;  %v5160_v20 = vpop.eup %4096  ;;  %v1257_v12 = vsel %vm308_vm0, %v5158_v8, 0.0 }
 0x3aa   : > { %6219 = vst [vmem:[#allocation14_spill] sm:$0xff] %v5160_v20  ;;  %v5164_v23 = vpop.eup %4098  ;;  %v1254_v33 = vsel %vm308_vm0, %v5160_v20, 0.0 }
 0x3ab   : > { %6220 = vst [vmem:[#allocation15_spill] sm:$0xff] %v5164_v23  ;;  %v1251_v41 = vsel %vm308_vm0, %v5164_v23, 0.0 }
 0x3ac   : > { %v5170_v53 = vpop.eup %4100 }
 0x3ad   : > { %6221 = vst [vmem:[#allocation16_spill] sm:$0xff] %v5170_v53  ;;  %v1260_v30 = vsel %vm308_vm0, %v5170_v53, 0.0 }
 0x3b4   : > { %v1175_v14 = vpop.xlane.xlu1 %1174 }
 0x3b5   : > { %1965 = vrot.lane.b32.xlu1 %v4607_v62, %s4424_s28  ;;  %4102 = vrcp.f32 %v1175_v14 }
 0x3b8   : > { %v1169_v24 = vpop.xlane.xlu1 %1168 }
 0x3be   : > { %1963 = vrot.lane.b32.xlu0 %v4589_v50, %s4424_s28 }
 0x3bf   : > { %v4103_v28 = vpop.eup %4102 }
 0x3d0   : > { %v1223_v44 = vpop.xlane.xlu0 %1222 }
 0x3d4   : > { %v1178_v35 = vpop.xlane.xlu0 %1177  ;;  %v1217_v2 = vpop.xlane.xlu1 %1216 }
 0x3d5   : > { %4104 = vrcp.f32 %v1178_v35 }
 0x3d6   : > { %4106 = vrcp.f32 %v1169_v24 }
 0x3d8   : > { %v1226_v18 = vpop.xlane.xlu0 %1225 }
 0x3d9   : > { %1258 = vadd.xlane.f32.xlu1 %v1257_v12  ;;  %4108 = vrcp.f32 %v1226_v18 }
 0x3dc   : > { %v1172_v7 = vpop.xlane.xlu0 %1171  ;;  %v1187_v42 = vpop.xlane.xlu1 %1186 }
 0x3dd   : > { %1252 = vadd.xlane.f32.xlu1 %v1251_v41  ;;  %1255 = vadd.xlane.f32.xlu0 %v1254_v33  ;;  %4110 = vrcp.f32 %v1172_v7 }
 0x3de   : > { %4112 = vrcp.f32 %v1217_v2 }
 0x3df   : > { %4114 = vrcp.f32 %v1223_v44  ;;  %v4105_v56 = vpop.eup %4104 }
 0x3e0   : > { %v1220_v10 = vpop.xlane.xlu0 %1219  ;;  %v4107_v14 = vpop.eup %4106  ;;  %v1298_v18 = vmul.f32 %v4105_v56, %v5029_v43 }
 0x3e1   : > { %4116 = vrcp.f32 %v1220_v10  ;;  %1261 = vadd.xlane.f32.xlu1 %v1260_v30  ;;  %v1295_v44 = vmul.f32 %v4107_v14, %v5014_v21  ;;  %v1297_v10 = vmul.f32 %v4103_v28, %v5010_v60 }
 0x3e2   : > { %4118 = vrcp.f32 %v1187_v42 }
 0x3e3   : > { %v4109_v24 = vpop.eup %4108  ;;  %v1328_v20 = vpack.c.bf16 %v1298_v18, %v1297_v10 }
 0x3e4   : > { %v1235_v61 = vpop.xlane.xlu0 %1234  ;;  %v1181_v35 = vpop.xlane.xlu1 %1180  ;;  %v1314_v53 = vmul.f32 %v4109_v24, %v5039_v13 }
 0x3e7   : > { %v4111_v12 = vpop.eup %4110 }
 0x3e8   : > { %v1190_v41 = vpop.xlane.xlu0 %1189  ;;  %v4113_v7 = vpop.eup %4112  ;;  %v1296_v2 = vmul.f32 %v4111_v12, %v5045_v31 }
 0x3e9   : > { %v4115_v33 = vpop.eup %4114  ;;  %v1229_v23 = vpop.xlane.xlu1 %1228  ;;  %v1311_v11 = vmul.f32 %v4113_v7, %v5032_v45  ;;  %4120 = vrcp.f32 %v1190_v41 }
 0x3ea   : > { %v1327_v8 = vpack.c.bf16 %v1296_v2, %v1295_v44  ;;  %v1313_v56 = vmul.f32 %v4115_v33, %v5025_v19  ;;  %4122 = vrcp.f32 %v1181_v35  ;;  %v1875_v19 = vsel %vm538_vm1, %v4759_v59, 0 }
 0x3eb   : > { %v4117_v30 = vpop.eup %4116  ;;  %v1884_v2 = vsel %vm538_vm1, %v5108_v52, 0 }
 0x3ec   : > { %v1238_v47 = vpop.xlane.xlu0 %1237  ;;  %v1312_v43 = vmul.f32 %v4117_v30, %v5055_v15  ;;  %3594 = vmatprep.mubr.msk.bf16.mxu0 %vm308_vm0, %v1327_v8  ;;  %v1336_v60 = vpack.c.bf16 %v1314_v53, %v1313_v56  ;;  %v4119_v59 = vpop.eup %4118 }
 0x3ed   : > { %3595 = vmatmul.mubr.msk.bf16.vlgmr.msra.gmra.mrb[40].mxu0 %vm308_vm0, %v1328_v20  ;;  %4124 = vrcp.f32 %v1238_v47  ;;  %v1199_v13 = vpop.xlane.xlu1 %1198  ;;  %v1878_v47 = vsel %vm538_vm1, %v4993_v5, 0  ;;  %v1301_v28 = vmul.f32 %v4119_v59, %v5048_v49 }
 0x3ee   : > { %v1335_v21 = vpack.c.bf16 %v1312_v43, %v1311_v11  ;;  %3603 = vmatpush3.bf16.msra.mxu0 %v4740_v36 }
 0x3ef   : > { %3604 = vmatprep.subr.bf16.mxu0 %v4743_v48 }
 0x3f0   : > { %3626 = vmatprep.mubr.msk.bf16.mxu1 %vm308_vm0, %v1335_v21  ;;  %v1184_v45 = vpop.xlane.xlu0 %1183 }
 0x3f1   : > { %3627 = vmatmul.mubr.msk.bf16.vlgmr.msra.gmra.mrb[24].mxu1 %vm308_vm0, %v1336_v60  ;;  %4126 = vrcp.f32 %v1184_v45  ;;  %v1193_v31 = vpop.xlane.xlu1 %1192 }
 0x3f2   : > { %3651 = vmatpush3.bf16.xpose.msra.mxu1 %v1875_v19  ;;  %1951 = vrot.lane.b32.xlu1 %v4565_v26, %s4426_s4  ;;  %4128 = vrcp.f32 %v1229_v23 }
 0x3f3   : > { %3605 = vmatpush3.bf16.msra.mxu0 %v4743_v48  ;;  %3803 = vmatprep.subr.msk.bf16.mxu1 %vm538_vm1, %v4993_v5  ;;  %4130 = vrcp.f32 %v1235_v61  ;;  %v4121_v15 = vpop.eup %4120 }
 0x3f4   : > { %3606 = vmatprep.subr.bf16.mxu0 %v4748_v51  ;;  %2064 = vrot.lane.b32.xlu0 %v4565_v26, %s4425_s29  ;;  %v1232_v36 = vpop.xlane.xlu0 %1231  ;;  %v4123_v11 = vpop.eup %4122  ;;  %v1302_v20 = vmul.f32 %v4121_v15, %v5071_v29 }
 0x3f5   : > { %4132 = vrcp.f32 %v1232_v36  ;;  %v1299_v53 = vmul.f32 %v4123_v11, %v5064_v34 }
 0x3f6   : > { %2169 = vrot.lane.b32.xlu1 %v4565_v26, %s4427_s5  ;;  %v1330_v29 = vpack.c.bf16 %v1302_v20, %v1301_v28 }
 0x3f7   : > { %3607 = vmatpush3.bf16.msra.mxu0 %v4748_v51  ;;  %v4125_v8 = vpop.eup %4124 }
 0x3f8   : > { %3608 = vmatprep.subr.bf16.mxu0 %v4766_v1  ;;  %2066 = vrot.lane.b32.xlu0 %v4577_v38, %s4425_s29  ;;  %v1202_v48 = vpop.xlane.xlu0 %1201  ;;  %v1318_v35 = vmul.f32 %v4125_v8, %v5080_v0  ;;  %v6228_v8 = vld [vmem:[#allocation12_spill] sm:$0xff] }
 0x3f9   : > { %4134 = vrcp.f32 %v1202_v48 }
 0x3fa   : > { %3653 = vmatpush3.bf16.xpose.msra.mxu1 %v1878_v47  ;;  %2068 = vrot.lane.b32.xlu1 %v4589_v50, %s4425_s29  ;;  %4136 = vrcp.f32 %v1193_v31 }
 0x3fb   : > { %3609 = vmatpush3.bf16.msra.mxu0 %v4766_v1  ;;  %3804 = vmatprep.subr.msk.bf16.mxu1 %vm538_vm1, %v4764_v63  ;;  %v4127_v51 = vpop.eup %4126  ;;  %4138 = vrcp.f32 %v1199_v13 }
 0x3fc   : > { %3634 = vmatprep.subr.bf16.mxu0 %v4750_v54  ;;  %1953 = vrot.lane.b32.xlu0 %v4577_v38, %s4426_s4  ;;  %v1196_v5 = vpop.xlane.xlu0 %1195  ;;  %v4129_v23 = vpop.eup %4128  ;;  %v1300_v42 = vmul.f32 %v4127_v51, %v5088_v4  ;;  %v1881_v4 = vsel %vm538_vm1, %v4764_v63, 0  ;;  %v6229_v51 = vld [vmem:[#allocation11_spill] sm:$0xff] }
 0x3fd   : > { %4140 = vrcp.f32 %v1196_v5  ;;  %v4131_v1 = vpop.eup %4130  ;;  %v1315_v24 = vmul.f32 %v4129_v23, %v5073_v37  ;;  %v6230_v23 = vld [vmem:[#allocation10_spill] sm:$0xff] }
 0x3fe   : > { %2070 = vrot.lane.b32.xlu1 %v4607_v62, %s4425_s29  ;;  %v1329_v14 = vpack.c.bf16 %v1300_v42, %v1299_v53  ;;  %v1317_v12 = vmul.f32 %v4131_v1, %v5061_v17 }
 0x3ff   : > { %v4133_v61 = vpop.eup %4132 }
 0x400   : > { %2171 = vrot.lane.b32.xlu0 %v4577_v38, %s4427_s5  ;;  %v1316_v34 = vmul.f32 %v4133_v61, %v5096_v25  ;;  %3598 = vmatprep.mubr.msk.bf16.mxu0 %vm308_vm0, %v1329_v14  ;;  %v1338_v37 = vpack.c.bf16 %v1318_v35, %v1317_v12 }
 0x401   : > { %3599 = vmatmul.mubr.msk.bf16.gmra.mrb[44].mxu0 %vm308_vm0, %v1330_v29 }
 0x402   : > { %3655 = vmatpush3.bf16.xpose.msra.mxu1 %v1881_v4  ;;  %v1337_v49 = vpack.c.bf16 %v1316_v34, %v1315_v24  ;;  %1955 = vrot.lane.b32.xlu1 %v4589_v50, %s4426_s4 }
 0x403   : > { %3805 = vmatprep.subr.msk.bf16.mxu1 %vm538_vm1, %v5108_v52  ;;  %v4135_v0 = vpop.eup %4134 }
 0x404   : > { %2173 = vrot.lane.b32.xlu0 %v4589_v50, %s4427_s5  ;;  %3630 = vmatprep.mubr.msk.bf16.mxu1 %vm308_vm0, %v1337_v49  ;;  %v4137_v63 = vpop.eup %4136  ;;  %v1306_v18 = vmul.f32 %v4135_v0, %v5100_v55 }
 0x405   : > { %3631 = vmatmul.mubr.msk.bf16.gmra.mrb[28].mxu1 %vm308_vm0, %v1338_v37  ;;  %v4139_v17 = vpop.eup %4138  ;;  %v1303_v41 = vmul.f32 %v4137_v63, %v5090_v22  ;;  %v6231_v63 = vld [vmem:[#allocation15_spill] sm:$0xff] }
 0x406   : > { %3658 = vmatprep.mubr.msk.bf16.mxu1 %vm538_vm1, %v4565_v26  ;;  %1957 = vrot.lane.b32.xlu1 %v4607_v62, %s4426_s4  ;;  %v1305_v44 = vmul.f32 %v4139_v17, %v5082_v3 }
 0x407   : > { %v4141_v25 = vpop.eup %4140 }
 0x408   : > { %2056 = vrot.lane.b32.xlu0 %v4565_v26, %s4428_s7  ;;  %v1304_v7 = vmul.f32 %v4141_v25, %v5104_v32  ;;  %v1332_v10 = vpack.c.bf16 %v1306_v18, %v1305_v44 }
 0x40a   : > { %3657 = vmatpush3.bf16.xpose.msra.mxu1 %v1884_v2  ;;  %v1331_v33 = vpack.c.bf16 %v1304_v7, %v1303_v41  ;;  %2175 = vrot.lane.b32.xlu1 %v4607_v62, %s4427_s5  ;;  %v6232_v41 = vld [vmem:[#allocation14_spill] sm:$0xff] }
 0x40c   : > { %2058 = vrot.lane.b32.xlu0 %v4577_v38, %s4428_s7  ;;  %3610 = vmatprep.mubr.msk.bf16.mxu0 %vm308_vm0, %v1331_v33 }
 0x40d   : > { %3611 = vmatmul.mubr.msk.bf16.vlgmr.msra.gmra.mrb[48].mxu0 %vm308_vm0, %v1332_v10 }
 0x40e   : > { %3635 = vmatpush3.bf16.msra.mxu0 %v4750_v54  ;;  %2161 = vrot.lane.b32.xlu1 %v4565_v26, %s6222_s8  ;;  %v6223_v26 = vld [vmem:[#allocation5_spill] sm:$0xff]  ;;  %v6225_v54 = vld [vmem:[#allocation6_spill] sm:$0xff] }
 0x40f   : > { %3636 = vmatprep.subr.bf16.mxu0 %v4753_v57 }
 0x410   : > { %2060 = vrot.lane.b32.xlu0 %v4589_v50, %s4428_s7 }
 0x411   : > { %3659 = vmatmul.mubr.msk.bf16.vlgmr.msra.gmra.mrb[32].mxu1 %vm538_vm1, %v4577_v38 }
 0x412   : > { %3637 = vmatpush3.bf16.msra.mxu0 %v4753_v57  ;;  %3662 = vmatprep.mubr.msk.bf16.mxu1 %vm538_vm1, %v4589_v50 }
 0x413   : > { %2163 = vrot.lane.b32.xlu1 %v4577_v38, %s6222_s8  ;;  %3638 = vmatprep.subr.bf16.mxu0 %v4755_v58  ;;  %v6224_v38 = vld [vmem:[#allocation9_spill] sm:$0xff] }
 0x414   : > { %2062 = vrot.lane.b32.xlu0 %v4607_v62, %s4428_s7  ;;  %v1980_v20 = vsel %vm538_vm1, %v6224_v38, 0 }
 0x416   : > { %3639 = vmatpush3.bf16.msra.mxu0 %v4755_v58 }
 0x417   : > { %2167 = vrot.lane.b32.xlu1 %v4607_v62, %s6222_s8  ;;  %3640 = vmatprep.subr.bf16.mxu0 %v5006_v27 }
 0x418   : > { %2165 = vrot.lane.b32.xlu0 %v4589_v50, %s6222_s8  ;;  %v6226_v50 = vld [vmem:[#allocation7_spill] sm:$0xff] }
 0x419   : > { %3663 = vmatmul.mubr.msk.bf16.gmra.mrb[36].mxu1 %vm538_vm1, %v4607_v62  ;;  %v6227_v62 = vld [vmem:[#allocation8_spill] sm:$0xff] }
 0x41a   : > { %3641 = vmatpush3.bf16.msra.mxu0 %v5006_v27 }
 0x41b   : > { %2751 = vrot.lane.b32.xlu1 %v6223_v26, %s4426_s4  ;;  %3806 = vmatprep.subr.msk.bf16.mxu0 %vm538_vm1, %v6224_v38  ;;  %v6233_v38 = vld [vmem:[#allocation13_spill] sm:$0xff] }
 0x41c   : > { %2840 = vrot.lane.b32.xlu0 %v6223_v26, %s4428_s7 }
 0x41f   : > { %2753 = vrot.lane.b32.xlu1 %v6225_v54, %s4426_s4 }
 0x420   : > { %2842 = vrot.lane.b32.xlu0 %v6225_v54, %s4428_s7 }
 0x423   : > { %2755 = vrot.lane.b32.xlu1 %v6226_v50, %s4426_s4 }
 0x424   : > { %2757 = vrot.lane.b32.xlu0 %v6227_v62, %s4426_s4  ;;  %s4330_s4 = sshll.u32 %s4430_s9, 4  ;;  %s4331_s4 = int_to_ptr.vmem [resolvable:$false] %s4330_s4 }
 0x425   : > { %v1211_v57 = vpop.xlane.xlu0 %1210 }
 0x427   : > { %2844 = vrot.lane.b32.xlu1 %v6226_v50, %s4428_s7 }
 0x429   : > { %v1205_v58 = vpop.xlane.xlu1 %1204  ;;  %v1214_v27 = vpop.xlane.xlu0 %1213 }
 0x42a   : > { %4142 = vrcp.f32 %v1214_v27 }
 0x42b   : > { %2846 = vrot.lane.b32.xlu1 %v6227_v62, %s4428_s7  ;;  %4144 = vrcp.f32 %v1205_v58  ;;  %v6234_v58 = vld [vmem:[#allocation16_spill] sm:$0xff] }
 0x42c   : > { %4146 = vrcp.f32 %v1211_v57 }
 0x42d   : > { %v1250_v3 = vpop.xlane.xlu1 %1249  ;;  %v1208_v22 = vpop.xlane.xlu0 %1207 }
 0x42e   : > { %4148 = vrcp.f32 %v1208_v22 }
 0x431   : > { %v1244_v55 = vpop.xlane.xlu1 %1243  ;;  %v1247_v32 = vpop.xlane.xlu0 %1246 }
 0x432   : > { %4150 = vrcp.f32 %v1244_v55 }
 0x433   : > { %4152 = vrcp.f32 %v1247_v32 }
 0x434   : > { %4154 = vrcp.f32 %v1250_v3  ;;  %v4143_v30 = vpop.eup %4142 }
 0x435   : > { %v1241_v52 = vpop.xlane.xlu0 %1240  ;;  %v4145_v43 = vpop.eup %4144  ;;  %v1310_v60 = vmul.f32 %v4143_v30, %v5122_v9 }
 0x436   : > { %4156 = vrcp.f32 %v1241_v52  ;;  %v4147_v56 = vpop.eup %4146  ;;  %v1307_v45 = vmul.f32 %v4145_v43, %v5124_v16  ;;  %v1966_v42 = vpop.permute.xlu1 %1965 }
 0x437   : > { %v1309_v13 = vmul.f32 %v4147_v56, %v5118_v46  ;;  %v1989_v1 = vsel %vm538_vm1, %v1966_v42, 0 }
 0x438   : > { %v4149_v21 = vpop.eup %4148 }
 0x439   : > { %v1308_v19 = vmul.f32 %v4149_v21, %v5126_v40  ;;  %v1334_v31 = vpack.c.bf16 %v1310_v60, %v1309_v13 }
 0x43b   : > { %v1333_v36 = vpack.c.bf16 %v1308_v19, %v1307_v45 }
 0x43c   : > { %v4151_v59 = vpop.eup %4150 }
 0x43d   : > { %v4153_v48 = vpop.eup %4152  ;;  %3614 = vmatprep.mubr.msk.bf16.mxu0 %vm308_vm0, %v1333_v36  ;;  %v1320_v16 = vmul.f32 %v4151_v59, %v6228_v8 }
 0x43e   : > { %v4155_v15 = vpop.eup %4154  ;;  %3615 = vmatmul.mubr.msk.bf16.gmra.mrb[52].mxu0 %vm308_vm0, %v1334_v31  ;;  %v1321_v11 = vmul.f32 %v4153_v48, %v5140_v39  ;;  %v1983_v39 = vsel %vm538_vm1, %v6230_v23, 0 }
 0x43f   : > { %v1322_v40 = vmul.f32 %v4155_v15, %v6229_v51 }
 0x440   : > { %v4157_v47 = vpop.eup %4156 }
 0x441   : > { %v1319_v9 = vmul.f32 %v4157_v47, %v5146_v6  ;;  %v1340_v46 = vpack.c.bf16 %v1322_v40, %v1321_v11  ;;  %v1964_v6 = vpop.permute.xlu0 %1963 }
 0x442   : > { %v1986_v53 = vsel %vm538_vm1, %v1964_v6, 0 }
 0x443   : > { %v1339_v5 = vpack.c.bf16 %v1320_v16, %v1319_v9 }
 0x445   : > { %3642 = vmatprep.mubr.msk.bf16.mxu0 %vm308_vm0, %v1339_v5 }
 0x446   : > { %3643 = vmatmul.mubr.msk.bf16.vlgmr.msra.gmra.mrb[56].mxu0 %vm308_vm0, %v1340_v46 }
 0x447   : > { %3667 = vmatpush3.bf16.xpose.msra.mxu0 %v1980_v20 }
 0x448   : > { %3807 = vmatprep.subr.msk.bf16.mxu0 %vm538_vm1, %v6230_v23 }
 0x44f   : > { %3669 = vmatpush3.bf16.xpose.msra.mxu0 %v1983_v39 }
 0x450   : > { %3808 = vmatprep.subr.msk.bf16.mxu0 %vm538_vm1, %v1964_v6 }
 0x457   : > { %3671 = vmatpush3.bf16.xpose.msra.mxu0 %v1986_v53 }
 0x458   : > { %3809 = vmatprep.subr.msk.bf16.mxu0 %vm538_vm1, %v1966_v42 }
 0x45f   : > { %3673 = vmatpush3.bf16.xpose.msra.mxu0 %v1989_v1 }
 0x466   : > { %v1259_v28 = vpop.xlane.xlu1 %1258 }
 0x46a   : > { %v1253_v61 = vpop.xlane.xlu1 %1252  ;;  %v1256_v14 = vpop.xlane.xlu0 %1255 }
 0x46b   : > { %4158 = vrcp.f32 %v1253_v61 }
 0x46c   : > { %4160 = vrcp.f32 %v1256_v14 }
 0x46d   : > { %4162 = vrcp.f32 %v1259_v28 }
 0x46e   : > { %v1262_v35 = vpop.xlane.xlu1 %1261  ;;  %v2065_v29 = vpop.permute.xlu0 %2064 }
 0x46f   : > { %4164 = vrcp.f32 %v1262_v35  ;;  %3810 = vmatprep.subr.msk.bf16.mxu1 %vm538_vm1, %v2065_v29  ;;  %v2085_v24 = vsel %vm538_vm1, %v2065_v29, 0 }
 0x470   : > { %3683 = vmatpush3.bf16.xpose.msra.mxu1 %v2085_v24 }
 0x472   : > { %v1952_v34 = vpop.permute.xlu1 %1951  ;;  %v2067_v4 = vpop.permute.xlu0 %2066 }
 0x473   : > { %3811 = vmatprep.subr.msk.bf16.mxu1 %vm538_vm1, %v2067_v4  ;;  %v2088_v18 = vsel %vm538_vm1, %v2067_v4, 0 }
 0x475   : > { %v4159_v12 = vpop.eup %4158 }
 0x476   : > { %v4161_v49 = vpop.eup %4160  ;;  %v2170_v37 = vpop.permute.xlu1 %2169  ;;  %v1323_v17 = vmul.f32 %v4159_v12, %v6231_v63 }
 0x477   : > { %v1954_v0 = vpop.permute.xlu0 %1953  ;;  %v4163_v25 = vpop.eup %4162  ;;  %3814 = vmatprep.subr.msk.bf16.mxu0 %vm538_vm1, %v2170_v37  ;;  %v1324_v7 = vmul.f32 %v4161_v49, %v6232_v41  ;;  %v2190_v56 = vsel %vm538_vm1, %v2170_v37, 0 }
 0x478   : > { %3685 = vmatpush3.bf16.xpose.msra.mxu1 %v2088_v18  ;;  %v1325_v57 = vmul.f32 %v4163_v25, %v6233_v38 }
 0x479   : > { %v4165_v44 = vpop.eup %4164  ;;  %v1341_v2 = vpack.c.bf16 %v1324_v7, %v1323_v17  ;;  %v4304_v7 = vld [vmem:[%s6177_s2 + $0x98] sm:$0xff] }
 0x47a   : > { %v2069_v33 = vpop.permute.xlu1 %2068  ;;  %v1326_v27 = vmul.f32 %v4165_v44, %v6234_v58 }
 0x47b   : > { %v2172_v10 = vpop.permute.xlu0 %2171  ;;  %3646 = vmatprep.mubr.msk.bf16.mxu0 %vm308_vm0, %v1341_v2  ;;  %3812 = vmatprep.subr.msk.bf16.mxu1 %vm538_vm1, %v2069_v33  ;;  %v2091_v32 = vsel %vm538_vm1, %v2069_v33, 0  ;;  %v4294_v2 = vld [vmem:[%s6177_s2 + $0x10] sm:$0xff] }
 0x47c   : > { %v1342_v3 = vpack.c.bf16 %v1326_v27, %v1325_v57  ;;  %v2193_v36 = vsel %vm538_vm1, %v2172_v10, 0  ;;  %v4295_v57 = vld [vmem:[%s6177_s2] sm:$0xff] }
 0x47e   : > { %v2071_v22 = vpop.permute.xlu1 %2070  ;;  %3647 = vmatmul.mubr.msk.bf16.gmra.mrb[60].mxu0 %vm308_vm0, %v1342_v3 }
 0x47f   : > { %v2174_v55 = vpop.permute.xlu0 %2173  ;;  %3674 = vmatprep.mubr.msk.bf16.mxu0 %vm538_vm1, %v1952_v34  ;;  %v2094_v60 = vsel %vm538_vm1, %v2071_v22, 0 }
 0x480   : > { %3687 = vmatpush3.bf16.xpose.msra.mxu1 %v2091_v32  ;;  %v2196_v48 = vsel %vm538_vm1, %v2174_v55, 0 }
 0x481   : > { %3813 = vmatprep.subr.msk.bf16.mxu1 %vm538_vm1, %v2071_v22  ;;  %v4296_v22 = vld [vmem:[%s6177_s2 + $0x8] sm:$0xff] }
 0x482   : > { %v1956_v52 = vpop.permute.xlu1 %1955 }
 0x483   : > { %v2057_v30 = vpop.permute.xlu0 %2056 }
 0x484   : > { %3690 = vmatprep.mubr.msk.bf16.mxu1 %vm538_vm1, %v2057_v30 }
 0x486   : > { %v1958_v43 = vpop.permute.xlu1 %1957  ;;  %3675 = vmatmul.mubr.msk.bf16.vlgmr.msra.gmra.mrb[64].mxu0 %vm538_vm1, %v1954_v0  ;;  %v4302_v0 = vld [vmem:[%s6177_s2 + $0x90] sm:$0xff] }
 0x487   : > { %v2059_v21 = vpop.permute.xlu0 %2058  ;;  %3699 = vmatpush3.bf16.xpose.msra.mxu0 %v2190_v56  ;;  %3678 = vmatprep.mubr.msk.bf16.mxu0 %vm538_vm1, %v1956_v52  ;;  %v4297_v52 = vld [vmem:[%s6177_s2 + $0x18] sm:$0xff] }
 0x488   : > { %3815 = vmatprep.subr.msk.bf16.mxu0 %vm538_vm1, %v2172_v10  ;;  %3689 = vmatpush3.bf16.xpose.msra.mxu1 %v2094_v60 }
 0x489   : > { %3714 = vmatprep.subr.bf16.mxu1 %v6223_v26 }
 0x48a   : > { %v2176_v45 = vpop.permute.xlu1 %2175 }
 0x48b   : > { %v2061_v19 = vpop.permute.xlu0 %2060  ;;  %v2199_v9 = vsel %vm538_vm1, %v2176_v45, 0 }
 0x48e   : > { %v2162_v13 = vpop.permute.xlu1 %2161  ;;  %3679 = vmatmul.mubr.msk.bf16.gmra.mrb[68].mxu0 %vm538_vm1, %v1958_v43 }
 0x48f   : > { %3701 = vmatpush3.bf16.xpose.msra.mxu0 %v2193_v36  ;;  %3691 = vmatmul.mubr.msk.bf16.vlgmr.msra.gmra.mrb[40].mxu1 %vm538_vm1, %v2059_v21  ;;  %v2063_v59 = vpop.permute.xlu0 %2062  ;;  %v4298_v21 = vld [vmem:[%s6177_s2 + $0x30] sm:$0xff] }
 0x490   : > { %3816 = vmatprep.subr.msk.bf16.mxu0 %vm538_vm1, %v2174_v55  ;;  %3706 = vmatprep.mubr.msk.bf16.mxu0 %vm538_vm1, %v2162_v13  ;;  %v4299_v13 = vld [vmem:[%s6177_s2 + $0x20] sm:$0xff] }
 0x491   : > { %3694 = vmatprep.mubr.msk.bf16.mxu1 %vm538_vm1, %v2061_v19  ;;  %3715 = vmatpush3.bf16.msra.mxu1 %v6223_v26 }
 0x492   : > { %3716 = vmatprep.subr.bf16.mxu1 %v6225_v54  ;;  %v2164_v31 = vpop.permute.xlu1 %2163 }
 0x493   : > { %v2166_v15 = vpop.permute.xlu0 %2165 }
 0x495   : > { %3717 = vmatpush3.bf16.msra.mxu1 %v6225_v54 }
 0x496   : > { %3718 = vmatprep.subr.bf16.mxu1 %v6226_v50  ;;  %v2168_v47 = vpop.permute.xlu1 %2167 }
 0x497   : > { %3703 = vmatpush3.bf16.xpose.msra.mxu0 %v2196_v48  ;;  %3695 = vmatmul.mubr.msk.bf16.gmra.mrb[44].mxu1 %vm538_vm1, %v2063_v59  ;;  %v5358_v11 = vpop.permute.xlu0 %2840  ;;  %v4300_v59 = vld [vmem:[%s6177_s2 + $0x38] sm:$0xff] }
 0x498   : > { %3817 = vmatprep.subr.msk.bf16.mxu0 %vm538_vm1, %v2176_v45  ;;  %6235 = vst [vmem:[#allocation5_spill] sm:$0xff] %v5358_v11 }
 0x499   : > { %3719 = vmatpush3.bf16.msra.mxu1 %v6226_v50 }
 0x49a   : > { %3720 = vmatprep.subr.bf16.mxu1 %v6227_v62  ;;  %v2752_v8 = vpop.permute.xlu1 %2751 }
 0x49b   : > { %v5365_v51 = vpop.permute.xlu0 %2842 }
 0x49c   : > { %6236 = vst [vmem:[#allocation9_spill] sm:$0xff] %v5365_v51 }
 0x49d   : > { %3721 = vmatpush3.bf16.msra.mxu1 %v6227_v62 }
 0x49e   : > { %3746 = vmatprep.subr.bf16.mxu1 %v5358_v11  ;;  %v2754_v16 = vpop.permute.xlu1 %2753 }
 0x49f   : > { %3705 = vmatpush3.bf16.xpose.msra.mxu0 %v2199_v9  ;;  %v2758_v5 = vpop.permute.xlu0 %2757  ;;  %v4301_v9 = vld [vmem:[%s6177_s2 + $0x28] sm:$0xff] }
 0x4a0   : > { %3730 = vmatprep.subr.bf16.mxu0 %v2752_v8 }
 0x4a2   : > { %v2756_v40 = vpop.permute.xlu1 %2755 }
 0x4a6   : > { %3707 = vmatmul.mubr.msk.bf16.vlgmr.msra.gmra.mrb[72].mxu0 %vm538_vm1, %v2164_v31 }
 0x4a7   : > { %3710 = vmatprep.mubr.msk.bf16.mxu0 %vm538_vm1, %v2166_v15  ;;  %3731 = vmatpush3.bf16.msra.mxu0 %v2752_v8 }
 0x4a8   : > { %3732 = vmatprep.subr.bf16.mxu0 %v2754_v16 }
 0x4ab   : > { %3733 = vmatpush3.bf16.msra.mxu0 %v2754_v16 }
 0x4ac   : > { %3734 = vmatprep.subr.bf16.mxu0 %v2756_v40 }
 0x4ae   : > { %3711 = vmatmul.mubr.msk.bf16.gmra.mrb[76].mxu0 %vm538_vm1, %v2168_v47 }
 0x4af   : > { %3735 = vmatpush3.bf16.msra.mxu0 %v2756_v40 }
 0x4b0   : > { %3736 = vmatprep.subr.bf16.mxu0 %v2758_v5 }
 0x4b3   : > { %3737 = vmatpush3.bf16.msra.mxu0 %v2758_v5 }
 0x4c0   : > { %v5368_v46 = vpop.f32.mrb[40].mxu0 }
 0x4c1   : > { %6237 = vst [vmem:[#allocation6_spill] sm:$0xff] %v5368_v46  ;;  %v5370_v20 = vpop.f32.mrb[41].mxu0 }
 0x4c2   : > { %6238 = vst [vmem:[#allocation7_spill] sm:$0xff] %v5370_v20  ;;  %v5372_v23 = vpop.f32.mrb[42].mxu0 }
 0x4c3   : > { %6239 = vst [vmem:[#allocation8_spill] sm:$0xff] %v5372_v23  ;;  %v5374_v39 = vpop.f32.mrb[43].mxu0 }
 0x4c4   : > { %6240 = vst [vmem:[#allocation12_spill] sm:$0xff] %v5374_v39  ;;  %v5376_v6 = vpop.f32.mrb[24].mxu1 }
 0x4c5   : > { %v5378_v53 = vpop.f32.mrb[25].mxu1 }
 0x4c6   : > { %6241 = vst [vmem:[#allocation11_spill] sm:$0xff] %v5378_v53  ;;  %v5380_v42 = vpop.f32.mrb[26].mxu1 }
 0x4c7   : > { %v5384_v28 = vpop.f32.mrb[27].mxu1 }
 0x4d4   : > { %v5388_v14 = vpop.f32.mrb[44].mxu0 }
 0x4d5   : > { %6242 = vst [vmem:[#allocation10_spill] sm:$0xff] %v5388_v14  ;;  %v5390_v35 = vpop.f32.mrb[45].mxu0 }
 0x4d6   : > { %6243 = vst [vmem:[#allocation15_spill] sm:$0xff] %v5390_v35  ;;  %v5392_v29 = vpop.f32.mrb[46].mxu0 }
 0x4d7   : > { %6244 = vst [vmem:[#allocation14_spill] sm:$0xff] %v5392_v29  ;;  %v5394_v24 = vpop.f32.mrb[47].mxu0 }
 0x4d8   : > { %6245 = vst [vmem:[#allocation13_spill] sm:$0xff] %v5394_v24  ;;  %v5396_v34 = vpop.f32.mrb[28].mxu1 }
 0x4d9   : > { %v5398_v4 = vpop.f32.mrb[29].mxu1 }
 0x4da   : > { %6246 = vst [vmem:[#allocation16_spill] sm:$0xff] %v5398_v4  ;;  %v5400_v12 = vpop.f32.mrb[30].mxu1 }
 0x4db   : > { %v5404_v37 = vpop.f32.mrb[31].mxu1 }
 0x4dc   : > { %6247 = vst [vmem:[#allocation17_spill] sm:$0xff] %v5404_v37 }
 0x4e0   : > { %v5408_v63 = vpop.f32.mrb[48].mxu0 }
 0x4e1   : > { %v5410_v17 = vpop.f32.mrb[49].mxu0 }
 0x4e2   : > { %v5412_v25 = vpop.f32.mrb[50].mxu0 }
 0x4e3   : > { %v5416_v41 = vpop.f32.mrb[51].mxu0 }
 0x4e4   : > { %v3660_v44 = vpop.f32.mrb[32].mxu1 }
 0x4e5   : > { %v5423_v33 = vadd.f32 %v4294_v2, %v3660_v44  ;;  %v1920_v10 = vpop.f32.mrb[33].mxu1 }
 0x4e6   : > { %v3661_v38 = vpop.f32.mrb[34].mxu1  ;;  %v5428_v58 = vadd.f32 %v4295_v57, %v1920_v10 }
 0x4e7   : > { %v1923_v27 = vpop.f32.mrb[35].mxu1  ;;  %v2304_v3 = vsel %vm308_vm0, %v5423_v33, -inf  ;;  %v5442_v30 = vadd.f32 %v4297_v52, %v3661_v38 }
 0x4e8   : > { %v5435_v55 = vadd.f32 %v4296_v22, %v1923_v27  ;;  %2305 = vmax.xlane.f32.xlu0 %v2304_v3  ;;  %v2298_v43 = vsel %vm308_vm0, %v5428_v58, -inf }
 0x4e9   : > { %v2307_v15 = vsel %vm308_vm0, %v5442_v30, -inf }
 0x4ea   : > { %v2301_v32 = vsel %vm308_vm0, %v5435_v55, -inf }
 0x4eb   : > { %2302 = vmax.xlane.f32.xlu1 %v2301_v32 }
 0x4ec   : > { %2299 = vmax.xlane.f32.xlu0 %v2298_v43  ;;  %v3664_v56 = vpop.f32.mrb[36].mxu1 }
 0x4ed   : > { %v5449_v60 = vadd.f32 %v4298_v21, %v3664_v56  ;;  %v1936_v45 = vpop.f32.mrb[37].mxu1 }
 0x4ee   : > { %v3665_v19 = vpop.f32.mrb[38].mxu1  ;;  %v5454_v36 = vadd.f32 %v4299_v13, %v1936_v45 }
 0x4ef   : > { %v5459_v31 = vadd.f32 %v4300_v59, %v3665_v19  ;;  %v1939_v48 = vpop.f32.mrb[39].mxu1  ;;  %v2316_v47 = vsel %vm308_vm0, %v5449_v60, -inf }
 0x4f0   : > { %2308 = vmax.xlane.f32.xlu0 %v2307_v15  ;;  %2317 = vmax.xlane.f32.xlu1 %v2316_v47  ;;  %v5468_v8 = vadd.f32 %v4301_v9, %v1939_v48  ;;  %v2310_v16 = vsel %vm308_vm0, %v5454_v36, -inf  ;;  %v4303_v48 = vld [vmem:[%s6177_s2 + $0x80] sm:$0xff] }
 0x4f1   : > { %v2319_v40 = vsel %vm308_vm0, %v5459_v31, -inf }
 0x4f2   : > { %v2313_v5 = vsel %vm308_vm0, %v5468_v8, -inf }
 0x4f4   : > { %2311 = vmax.xlane.f32.xlu1 %v2310_v16  ;;  %2320 = vmax.xlane.f32.xlu0 %v2319_v40 }
 0x4f8   : > { %2314 = vmax.xlane.f32.xlu0 %v2313_v5 }
 0x511   : > { %v5476_v44 = vpop.f32.mrb[52].mxu0 }
 0x512   : > { %v5478_v2 = vpop.f32.mrb[53].mxu0 }
 0x513   : > { %v5480_v10 = vpop.f32.mrb[54].mxu0 }
 0x514   : > { %v5484_v57 = vpop.f32.mrb[55].mxu0 }
 0x519   : > { %v5488_v3 = vpop.f32.mrb[56].mxu0 }
 0x51a   : > { %6248 = vst [vmem:[#allocation18_spill] sm:$0xff] %v5488_v3  ;;  %v5490_v22 = vpop.f32.mrb[57].mxu0 }
 0x51b   : > { %6249 = vst [vmem:[#allocation19_spill] sm:$0xff] %v5490_v22  ;;  %v5492_v32 = vpop.f32.mrb[58].mxu0 }
 0x51c   : > { %6250 = vst [vmem:[#allocation20_spill] sm:$0xff] %v5492_v32  ;;  %v5496_v43 = vpop.f32.mrb[59].mxu0 }
 0x51d   : > { %6251 = vst [vmem:[#allocation21_spill] sm:$0xff] %v5496_v43 }
 0x551   : > { %v5500_v21 = vpop.f32.mrb[60].mxu0 }
 0x552   : > { %6252 = vst [vmem:[#allocation22_spill] sm:$0xff] %v5500_v21  ;;  %v5502_v45 = vpop.f32.mrb[61].mxu0 }
 0x553   : > { %6253 = vst [vmem:[#allocation23_spill] sm:$0xff] %v5502_v45  ;;  %v5504_v19 = vpop.f32.mrb[62].mxu0 }
 0x554   : > { %6254 = vst [vmem:[#allocation24_spill] sm:$0xff] %v5504_v19  ;;  %v5508_v59 = vpop.f32.mrb[63].mxu0 }
 0x555   : > { %6255 = vst [vmem:[#allocation25_spill] sm:$0xff] %v5508_v59 }
 0x559   : > { %v3676_v15 = vpop.f32.mrb[64].mxu0 }
 0x55a   : > { %v2025_v47 = vpop.f32.mrb[65].mxu0 }
 0x55b   : > { %v3677_v9 = vpop.f32.mrb[66].mxu0 }
 0x55c   : > { %v2028_v16 = vpop.f32.mrb[67].mxu0 }
 0x561   : > { %v3680_v40 = vpop.f32.mrb[68].mxu0 }
 0x562   : > { %v5512_v5 = vpop.f32.mrb[69].mxu0  ;;  %v3692_v56 = vpop.f32.mrb[40].mxu1 }
 0x563   : > { %v5517_v52 = vadd.f32 %v4302_v0, %v3692_v56  ;;  %v3681_v13 = vpop.f32.mrb[70].mxu0  ;;  %v2130_v61 = vpop.f32.mrb[41].mxu1  ;;  %v4305_v56 = vld [vmem:[%s6177_s2 + $0x88] sm:$0xff] }
 0x564   : > { %v5519_v49 = vpop.f32.mrb[71].mxu0  ;;  %v3693_v27 = vpop.f32.mrb[42].mxu1  ;;  %v5524_v1 = vadd.f32 %v4303_v48, %v2130_v61 }
 0x565   : > { %v5529_v38 = vadd.f32 %v4304_v7, %v3693_v27  ;;  %v2133_v18 = vpop.f32.mrb[43].mxu1  ;;  %v2352_v0 = vsel %vm308_vm0, %v5517_v52, -inf  ;;  %v4306_v27 = vld [vmem:[%s6177_s2 + $0xb0] sm:$0xff] }
 0x566   : > { %2353 = vmax.xlane.f32.xlu1 %v2352_v0  ;;  %v5536_v35 = vadd.f32 %v4305_v56, %v2133_v18  ;;  %v2346_v48 = vsel %vm308_vm0, %v5524_v1, -inf }
 0x567   : > { %v2355_v61 = vsel %vm308_vm0, %v5529_v38, -inf }
 0x568   : > { %2356 = vmax.xlane.f32.xlu0 %v2355_v61  ;;  %v2349_v18 = vsel %vm308_vm0, %v5536_v35, -inf  ;;  %v4307_v61 = vld [vmem:[%s6177_s2 + $0xa0] sm:$0xff] }
 0x56a   : > { %2347 = vmax.xlane.f32.xlu1 %v2346_v48  ;;  %v3696_v7 = vpop.f32.mrb[44].mxu1  ;;  %v4308_v48 = vld [vmem:[%s6177_s2 + $0xb8] sm:$0xff] }
 0x56b   : > { %v5545_v0 = vadd.f32 %v4306_v27, %v3696_v7  ;;  %v2146_v24 = vpop.f32.mrb[45].mxu1 }
 0x56c   : > { %2350 = vmax.xlane.f32.xlu0 %v2349_v18  ;;  %v3697_v56 = vpop.f32.mrb[46].mxu1  ;;  %v5552_v14 = vadd.f32 %v4307_v61, %v2146_v24  ;;  %v4309_v18 = vld [vmem:[%s6177_s2 + $0xa8] sm:$0xff] }
 0x56d   : > { %v5557_v29 = vadd.f32 %v4308_v48, %v3697_v56  ;;  %v2149_v7 = vpop.f32.mrb[47].mxu1  ;;  %v2364_v27 = vsel %vm308_vm0, %v5545_v0, -inf  ;;  %v4310_v56 = vld [vmem:[%s6177_s2 + $0x50] sm:$0xff] }
 0x56e   : > { %2365 = vmax.xlane.f32.xlu1 %v2364_v27  ;;  %v5564_v20 = vadd.f32 %v4309_v18, %v2149_v7  ;;  %v5571_v61 = vadd.f32 %v4310_v56, %v3676_v15  ;;  %v2358_v48 = vsel %vm308_vm0, %v5552_v14, -inf  ;;  %v4311_v27 = vld [vmem:[%s6177_s2 + $0x58] sm:$0xff] }
 0x56f   : > { %v2367_v24 = vsel %vm308_vm0, %v5557_v29, -inf  ;;  %v5578_v7 = vadd.f32 %v4311_v27, %v3677_v9 }
 0x570   : > { %2368 = vmax.xlane.f32.xlu0 %v2367_v24  ;;  %v2361_v18 = vsel %vm308_vm0, %v5564_v20, -inf  ;;  %v4312_v24 = vld [vmem:[%s6177_s2 + $0x40] sm:$0xff]  ;;  %v2328_v56 = vsel %vm308_vm0, %v5571_v61, -inf }
 0x571   : > { %v5585_v15 = vadd.f32 %v4312_v24, %v2025_v47  ;;  %v2331_v27 = vsel %vm308_vm0, %v5578_v7, -inf }
 0x572   : > { %2359 = vmax.xlane.f32.xlu1 %v2358_v48  ;;  %v4313_v48 = vld [vmem:[%s6177_s2 + $0x48] sm:$0xff] }
 0x573   : > { %v5592_v9 = vadd.f32 %v4313_v48, %v2028_v16  ;;  %v4315_v16 = vld [vmem:[%s6177_s2 + $0x78] sm:$0xff] }
 0x574   : > { %2362 = vmax.xlane.f32.xlu0 %v2361_v18  ;;  %v4314_v18 = vld [vmem:[%s6177_s2 + $0x70] sm:$0xff]  ;;  %v5606_v48 = vadd.f32 %v4315_v16, %v3681_v13  ;;  %v4317_v13 = vld [vmem:[%s6177_s2 + $0x68] sm:$0xff] }
 0x575   : > { %v5599_v47 = vadd.f32 %v4314_v18, %v3680_v40  ;;  %v4316_v40 = vld [vmem:[%s6177_s2 + $0x60] sm:$0xff]  ;;  %v5622_v16 = vadd.f32 %v4317_v13, %v5519_v49  ;;  %v4319_v49 = vld [vmem:[%s6177_s2 + $0xd8] sm:$0xff] }
 0x576   : > { %2329 = vmax.xlane.f32.xlu1 %v2328_v56  ;;  %v2322_v56 = vsel %vm308_vm0, %v5585_v15, -inf  ;;  %v5614_v18 = vadd.f32 %v4316_v40, %v5512_v5  ;;  %v4318_v5 = vld [vmem:[%s6177_s2 + $0xd0] sm:$0xff] }
 0x578   : > { %2332 = vmax.xlane.f32.xlu0 %v2331_v27  ;;  %v2325_v27 = vsel %vm308_vm0, %v5592_v9, -inf }
 0x579   : > { %v3708_v24 = vpop.f32.mrb[72].mxu0 }
 0x57a   : > { %v2235_v39 = vpop.f32.mrb[73].mxu0  ;;  %2323 = vmax.xlane.f32.xlu1 %v2322_v56  ;;  %v2340_v56 = vsel %vm308_vm0, %v5599_v47, -inf  ;;  %v5629_v40 = vadd.f32 %v4318_v5, %v3708_v24  ;;  %v4320_v24 = vld [vmem:[%s6177_s2 + $0xc0] sm:$0xff] }
 0x57b   : > { %v3709_v46 = vpop.f32.mrb[74].mxu0  ;;  %v5643_v5 = vadd.f32 %v4320_v24, %v2235_v39 }
 0x57c   : > { %v2238_v23 = vpop.f32.mrb[75].mxu0  ;;  %2326 = vmax.xlane.f32.xlu0 %v2325_v27  ;;  %v2343_v27 = vsel %vm308_vm0, %v5606_v48, -inf  ;;  %v5636_v13 = vadd.f32 %v4319_v49, %v3709_v46  ;;  %v4321_v46 = vld [vmem:[%s6177_s2 + $0xc8] sm:$0xff] }
 0x57d   : > { %v5650_v49 = vadd.f32 %v4321_v46, %v2238_v23  ;;  %v2370_v24 = vsel %vm308_vm0, %v5643_v5, -inf }
 0x57e   : > { %2341 = vmax.xlane.f32.xlu1 %v2340_v56  ;;  %v2334_v56 = vsel %vm308_vm0, %v5614_v18, -inf  ;;  %v2379_v22 = vsel %vm308_vm0, %v5636_v13, -inf }
 0x57f   : > { %v2373_v46 = vsel %vm308_vm0, %v5650_v49, -inf }
 0x580   : > { %2344 = vmax.xlane.f32.xlu0 %v2343_v27  ;;  %v2337_v27 = vsel %vm308_vm0, %v5622_v16, -inf }
 0x581   : > { %v3712_v51 = vpop.f32.mrb[76].mxu0 }
 0x582   : > { %v2251_v11 = vpop.f32.mrb[77].mxu0  ;;  %2335 = vmax.xlane.f32.xlu1 %v2334_v56  ;;  %v2376_v56 = vsel %vm308_vm0, %v5629_v40, -inf }
 0x583   : > { %v3713_v45 = vpop.f32.mrb[78].mxu0 }
 0x584   : > { %v2254_v59 = vpop.f32.mrb[79].mxu0  ;;  %2338 = vmax.xlane.f32.xlu0 %v2337_v27  ;;  %v4322_v27 = vld [vmem:[%s6177_s2 + $0xf0] sm:$0xff] }
 0x585   : > { %v5657_v39 = vadd.f32 %v4322_v27, %v3712_v51 }
 0x586   : > { %2377 = vmax.xlane.f32.xlu1 %v2376_v56  ;;  %v4323_v56 = vld [vmem:[%s6177_s2 + $0xf8] sm:$0xff] }
 0x587   : > { %v5664_v23 = vadd.f32 %v4323_v56, %v3713_v45  ;;  %v2388_v27 = vsel %vm308_vm0, %v5657_v39, -inf }
 0x588   : > { %2380 = vmax.xlane.f32.xlu0 %v2379_v22  ;;  %v4324_v22 = vld [vmem:[%s6177_s2 + $0xe0] sm:$0xff] }
 0x589   : > { %v5671_v51 = vadd.f32 %v4324_v22, %v2251_v11  ;;  %v2391_v56 = vsel %vm308_vm0, %v5664_v23, -inf  ;;  %v5688_v22 = vpop.permute.xlu1 %2844 }
 0x58a   : > { %2371 = vmax.xlane.f32.xlu1 %v2370_v24  ;;  %v4325_v24 = vld [vmem:[%s6177_s2 + $0xe8] sm:$0xff]  ;;  %6256 = vst [vmem:[#allocation26_spill] sm:$0xff] %v5688_v22 }
 0x58b   : > { %v5678_v45 = vadd.f32 %v4325_v24, %v2254_v59 }
 0x58c   : > { %2374 = vmax.xlane.f32.xlu0 %v2373_v46  ;;  %v2382_v46 = vsel %vm308_vm0, %v5671_v51, -inf }
 0x58d   : > { %v2385_v11 = vsel %vm308_vm0, %v5678_v45, -inf  ;;  %v5690_v59 = vpop.permute.xlu1 %2846 }
 0x58e   : > { %2389 = vmax.xlane.f32.xlu1 %v2388_v27  ;;  %v2306_v27 = vpop.xlane.xlu0 %2305  ;;  %6257 = vst [vmem:[#allocation27_spill] sm:$0xff] %v5690_v59 }
 0x590   : > { %2392 = vmax.xlane.f32.xlu0 %v2391_v56 }
 0x591   : > { %v2303_v56 = vpop.xlane.xlu1 %2302 }
 0x592   : > { %2383 = vmax.xlane.f32.xlu1 %v2382_v46  ;;  %v2300_v24 = vpop.xlane.xlu0 %2299  ;;  %v2396_v46 = vsub.f32 %v5423_v33, %v2306_v27  ;;  %v2395_v22 = vsub.f32 %v5435_v55, %v2303_v56 }
 0x593   : > { %v2394_v4 = vsub.f32 %v5428_v58, %v2300_v24 }
 0x594   : > { %2386 = vmax.xlane.f32.xlu0 %v2385_v11  ;;  %v2430_v11 = vmul.f32 1.442695, %v2396_v46 }
 0x595   : > { %v2318_v19 = vpop.xlane.xlu1 %2317  ;;  %v2426_v59 = vmul.f32 1.442695, %v2394_v4 }
 0x596   : > { %v2309_v43 = vpop.xlane.xlu0 %2308  ;;  %4166 = vpow2.f32 %v2430_v11  ;;  %v2400_v3 = vsub.f32 %v5449_v60, %v2318_v19 }
 0x597   : > { %v2397_v21 = vsub.f32 %v5442_v30, %v2309_v43 }
 0x598   : > { %v2438_v30 = vmul.f32 1.442695, %v2400_v3 }
 0x599   : > { %v2432_v37 = vmul.f32 1.442695, %v2397_v21  ;;  %v2312_v32 = vpop.xlane.xlu1 %2311 }
 0x59a   : > { %v2398_v43 = vsub.f32 %v5454_v36, %v2312_v32 }
 0x59b   : > { %4168 = vpow2.f32 %v2432_v37 }
 0x59c   : > { %4170 = vpow2.f32 %v2426_v59  ;;  %v2434_v55 = vmul.f32 1.442695, %v2398_v43 }
 0x5a0   : > { %v5702_v21 = vpop.eup %4166 }
 0x5a1   : > { %v2496_v37 = vsel %vm308_vm0, %v5702_v21, 0.0 }
 0x5a3   : > { %2931 = vrot.lane.b32.xlu1 %v6225_v54, %s6222_s8  ;;  %v2321_v54 = vpop.xlane.xlu0 %2320 }
 0x5a4   : > { %v2401_v53 = vsub.f32 %v5459_v31, %v2321_v54 }
 0x5a5   : > { %v5704_v60 = vpop.eup %4168 }
 0x5a6   : > { %v2440_v58 = vmul.f32 1.442695, %v2401_v53  ;;  %v5708_v31 = vpop.eup %4170  ;;  %v2499_v53 = vsel %vm308_vm0, %v5704_v60, 0.0 }
 0x5a7   : > { %v2315_v33 = vpop.xlane.xlu0 %2314 }
 0x5a8   : > { %v2399_v27 = vsub.f32 %v5468_v8, %v2315_v33  ;;  %v2490_v8 = vsel %vm308_vm0, %v5708_v31, 0.0 }
 0x5aa   : > { %2929 = vrot.lane.b32.xlu0 %v6223_v26, %s6222_s8  ;;  %v2428_v26 = vmul.f32 1.442695, %v2395_v22  ;;  %v2436_v4 = vmul.f32 1.442695, %v2399_v27 }
 0x5ac   : > { %4172 = vpow2.f32 %v2428_v26 }
 0x5ad   : > { %4174 = vpow2.f32 %v2438_v30 }
 0x5ae   : > { %4176 = vpow2.f32 %v2440_v58 }
 0x5af   : > { %4178 = vpow2.f32 %v2434_v55 }
 0x5b0   : > { %4180 = vpow2.f32 %v2436_v4 }
 0x5b6   : > { %v5712_v36 = vpop.eup %4172 }
 0x5b7   : > { %v5716_v3 = vpop.eup %4174  ;;  %v2493_v32 = vsel %vm308_vm0, %v5712_v36, 0.0 }
 0x5b8   : > { %v5720_v19 = vpop.eup %4176  ;;  %v2508_v22 = vsel %vm308_vm0, %v5716_v3, 0.0 }
 0x5b9   : > { %v5724_v59 = vpop.eup %4178  ;;  %v2511_v24 = vsel %vm308_vm0, %v5720_v19, 0.0 }
 0x5ba   : > { %v5728_v56 = vpop.eup %4180  ;;  %v2502_v46 = vsel %vm308_vm0, %v5724_v59, 0.0 }
 0x5bb   : > { %v2505_v11 = vsel %vm308_vm0, %v5728_v56, 0.0 }
 0x5c7   : > { %2497 = vadd.xlane.f32.xlu1 %v2496_v37 }
 0x5c9   : > { %2500 = vadd.xlane.f32.xlu0 %v2499_v53 }
 0x5cb   : > { %2491 = vadd.xlane.f32.xlu1 %v2490_v8 }
 0x5cd   : > { %2494 = vadd.xlane.f32.xlu0 %v2493_v32 }
 0x5cf   : > { %2509 = vadd.xlane.f32.xlu1 %v2508_v22 }
 0x5d1   : > { %2512 = vadd.xlane.f32.xlu0 %v2511_v24 }
 0x5d3   : > { %2503 = vadd.xlane.f32.xlu1 %v2502_v46 }
 0x5d5   : > { %2506 = vadd.xlane.f32.xlu0 %v2505_v11 }
 0x5f3   : > { %v2354_v54 = vpop.xlane.xlu1 %2353 }
 0x5f4   : > { %v2412_v26 = vsub.f32 %v5517_v52, %v2354_v54 }
 0x5f5   : > { %v2357_v33 = vpop.xlane.xlu0 %2356 }
 0x5f6   : > { %v2462_v30 = vmul.f32 1.442695, %v2412_v26  ;;  %v2413_v43 = vsub.f32 %v5529_v38, %v2357_v33 }
 0x5f7   : > { %v2348_v58 = vpop.xlane.xlu1 %2347 }
 0x5f8   : > { %4182 = vpow2.f32 %v2462_v30  ;;  %v2464_v27 = vmul.f32 1.442695, %v2413_v43  ;;  %v2410_v55 = vsub.f32 %v5524_v1, %v2348_v58 }
 0x5f9   : > { %v2351_v4 = vpop.xlane.xlu0 %2350 }
 0x5fa   : > { %4184 = vpow2.f32 %v2464_v27  ;;  %v2458_v37 = vmul.f32 1.442695, %v2410_v55  ;;  %v2411_v53 = vsub.f32 %v5536_v35, %v2351_v4 }
 0x5fb   : > { %v2366_v8 = vpop.xlane.xlu1 %2365 }
 0x5fc   : > { %4186 = vpow2.f32 %v2458_v37  ;;  %v2460_v32 = vmul.f32 1.442695, %v2411_v53  ;;  %v2416_v22 = vsub.f32 %v5545_v0, %v2366_v8 }
 0x5fd   : > { %v2369_v52 = vpop.xlane.xlu0 %2368 }
 0x5fe   : > { %4188 = vpow2.f32 %v2460_v32  ;;  %v2470_v24 = vmul.f32 1.442695, %v2416_v22  ;;  %v2417_v38 = vsub.f32 %v5557_v29, %v2369_v52 }
 0x5ff   : > { %v2360_v46 = vpop.xlane.xlu1 %2359 }
 0x600   : > { %4190 = vpow2.f32 %v2470_v24  ;;  %v2472_v11 = vmul.f32 1.442695, %v2417_v38  ;;  %v2414_v1 = vsub.f32 %v5552_v14, %v2360_v46 }
 0x601   : > { %v2363_v54 = vpop.xlane.xlu0 %2362 }
 0x602   : > { %v5741_v26 = vpop.eup %4182  ;;  %4192 = vpow2.f32 %v2472_v11  ;;  %v2466_v35 = vmul.f32 1.442695, %v2414_v1  ;;  %v2415_v33 = vsub.f32 %v5564_v20, %v2363_v54 }
 0x603   : > { %v2330_v30 = vpop.xlane.xlu1 %2329  ;;  %v2544_v0 = vsel %vm308_vm0, %v5741_v26, 0.0 }
 0x604   : > { %v5746_v43 = vpop.eup %4184  ;;  %4194 = vpow2.f32 %v2466_v35  ;;  %v2468_v29 = vmul.f32 1.442695, %v2415_v33  ;;  %v2404_v58 = vsub.f32 %v5571_v61, %v2330_v30  ;;  %2545 = vadd.xlane.f32.xlu1 %v2544_v0 }
 0x605   : > { %v2333_v27 = vpop.xlane.xlu0 %2332  ;;  %v2547_v14 = vsel %vm308_vm0, %v5746_v43, 0.0 }
 0x606   : > { %v5751_v55 = vpop.eup %4186  ;;  %4196 = vpow2.f32 %v2468_v29  ;;  %v2446_v4 = vmul.f32 1.442695, %v2404_v58  ;;  %v2405_v20 = vsub.f32 %v5578_v7, %v2333_v27  ;;  %2548 = vadd.xlane.f32.xlu0 %v2547_v14 }
 0x607   : > { %v2324_v37 = vpop.xlane.xlu1 %2323  ;;  %v2538_v53 = vsel %vm308_vm0, %v5751_v55, 0.0 }
 0x608   : > { %v5756_v8 = vpop.eup %4188  ;;  %4198 = vpow2.f32 %v2446_v4  ;;  %v2448_v61 = vmul.f32 1.442695, %v2405_v20  ;;  %v2402_v32 = vsub.f32 %v5585_v15, %v2324_v37  ;;  %2539 = vadd.xlane.f32.xlu1 %v2538_v53 }
 0x609   : > { %v2327_v22 = vpop.xlane.xlu0 %2326  ;;  %v2541_v52 = vsel %vm308_vm0, %v5756_v8, 0.0 }
 0x60a   : > { %v5761_v24 = vpop.eup %4190  ;;  %4200 = vpow2.f32 %v2448_v61  ;;  %v2442_v7 = vmul.f32 1.442695, %v2402_v32  ;;  %v2403_v38 = vsub.f32 %v5592_v9, %v2327_v22  ;;  %2542 = vadd.xlane.f32.xlu0 %v2541_v52 }
 0x60b   : > { %v2342_v46 = vpop.xlane.xlu1 %2341  ;;  %v2556_v11 = vsel %vm308_vm0, %v5761_v24, 0.0 }
 0x60c   : > { %v5766_v1 = vpop.eup %4192  ;;  %4202 = vpow2.f32 %v2442_v7  ;;  %v2444_v15 = vmul.f32 1.442695, %v2403_v38  ;;  %v2408_v54 = vsub.f32 %v5599_v47, %v2342_v46  ;;  %2557 = vadd.xlane.f32.xlu1 %v2556_v11 }
 0x60d   : > { %v2345_v35 = vpop.xlane.xlu0 %2344  ;;  %v2559_v33 = vsel %vm308_vm0, %v5766_v1, 0.0 }
 0x60e   : > { %v5771_v30 = vpop.eup %4194  ;;  %4204 = vpow2.f32 %v2444_v15  ;;  %v2454_v9 = vmul.f32 1.442695, %v2408_v54  ;;  %v2409_v0 = vsub.f32 %v5606_v48, %v2345_v35  ;;  %2560 = vadd.xlane.f32.xlu0 %v2559_v33 }
 0x60f   : > { %v2336_v29 = vpop.xlane.xlu1 %2335  ;;  %v2550_v58 = vsel %vm308_vm0, %v5771_v30, 0.0 }
 0x610   : > { %v5776_v27 = vpop.eup %4196  ;;  %4206 = vpow2.f32 %v2454_v9  ;;  %v2456_v47 = vmul.f32 1.442695, %v2409_v0  ;;  %v2406_v14 = vsub.f32 %v5614_v18, %v2336_v29  ;;  %2551 = vadd.xlane.f32.xlu1 %v2550_v58 }
 0x611   : > { %v2339_v4 = vpop.xlane.xlu0 %2338  ;;  %v2553_v20 = vsel %vm308_vm0, %v5776_v27, 0.0 }
 0x612   : > { %v5781_v37 = vpop.eup %4198  ;;  %4208 = vpow2.f32 %v2456_v47  ;;  %v2450_v48 = vmul.f32 1.442695, %v2406_v14  ;;  %v2407_v53 = vsub.f32 %v5622_v16, %v2339_v4  ;;  %2554 = vadd.xlane.f32.xlu0 %v2553_v20 }
 0x613   : > { %v2378_v61 = vpop.xlane.xlu1 %2377  ;;  %v2520_v32 = vsel %vm308_vm0, %v5781_v37, 0.0 }
 0x614   : > { %v5786_v22 = vpop.eup %4200  ;;  %4210 = vpow2.f32 %v2450_v48  ;;  %v2452_v18 = vmul.f32 1.442695, %v2407_v53  ;;  %v2420_v52 = vsub.f32 %v5629_v40, %v2378_v61  ;;  %2521 = vadd.xlane.f32.xlu1 %v2520_v32 }
 0x615   : > { %v2381_v7 = vpop.xlane.xlu0 %2380  ;;  %v2523_v38 = vsel %vm308_vm0, %v5786_v22, 0.0 }
 0x616   : > { %v5791_v46 = vpop.eup %4202  ;;  %4212 = vpow2.f32 %v2452_v18  ;;  %v2478_v16 = vmul.f32 1.442695, %v2420_v52  ;;  %v2421_v11 = vsub.f32 %v5636_v13, %v2381_v7  ;;  %2524 = vadd.xlane.f32.xlu0 %v2523_v38 }
 0x617   : > { %v2372_v15 = vpop.xlane.xlu1 %2371  ;;  %v2514_v54 = vsel %vm308_vm0, %v5791_v46, 0.0 }
 0x618   : > { %v5796_v35 = vpop.eup %4204  ;;  %4214 = vpow2.f32 %v2478_v16  ;;  %v2480_v40 = vmul.f32 1.442695, %v2421_v11  ;;  %v2418_v33 = vsub.f32 %v5643_v5, %v2372_v15  ;;  %2515 = vadd.xlane.f32.xlu1 %v2514_v54 }
 0x619   : > { %v2375_v9 = vpop.xlane.xlu0 %2374  ;;  %v2517_v0 = vsel %vm308_vm0, %v5796_v35, 0.0 }
 0x61a   : > { %v5801_v29 = vpop.eup %4206  ;;  %4216 = vpow2.f32 %v2480_v40  ;;  %v2474_v13 = vmul.f32 1.442695, %v2418_v33  ;;  %v2419_v58 = vsub.f32 %v5650_v49, %v2375_v9  ;;  %2518 = vadd.xlane.f32.xlu0 %v2517_v0 }
 0x61b   : > { %v2390_v47 = vpop.xlane.xlu1 %2389  ;;  %v2532_v14 = vsel %vm308_vm0, %v5801_v29, 0.0 }
 0x61c   : > { %v5806_v4 = vpop.eup %4208  ;;  %4218 = vpow2.f32 %v2474_v13  ;;  %v2476_v5 = vmul.f32 1.442695, %v2419_v58  ;;  %v2424_v20 = vsub.f32 %v5657_v39, %v2390_v47  ;;  %2533 = vadd.xlane.f32.xlu1 %v2532_v14 }
 0x61d   : > { %v2393_v48 = vpop.xlane.xlu0 %2392  ;;  %v2535_v53 = vsel %vm308_vm0, %v5806_v4, 0.0 }
 0x61e   : > { %v5811_v61 = vpop.eup %4210  ;;  %4220 = vpow2.f32 %v2476_v5  ;;  %v2486_v49 = vmul.f32 1.442695, %v2424_v20  ;;  %v2425_v32 = vsub.f32 %v5664_v23, %v2393_v48  ;;  %2536 = vadd.xlane.f32.xlu0 %v2535_v53 }
 0x61f   : > { %v2384_v18 = vpop.xlane.xlu1 %2383  ;;  %v2526_v52 = vsel %vm308_vm0, %v5811_v61, 0.0 }
 0x620   : > { %v5816_v7 = vpop.eup %4212  ;;  %4222 = vpow2.f32 %v2486_v49  ;;  %v2488_v39 = vmul.f32 1.442695, %v2425_v32  ;;  %v2422_v38 = vsub.f32 %v5671_v51, %v2384_v18  ;;  %2527 = vadd.xlane.f32.xlu1 %v2526_v52  ;;  %v6258_v52 = vpack.i.bf16 %v5412_v25, %v5408_v63 }
 0x621   : > { %v2387_v16 = vpop.xlane.xlu0 %2386  ;;  %v2529_v11 = vsel %vm308_vm0, %v5816_v7, 0.0  ;;  %v6263_v25 = vpack.i.bf16 %v5400_v12, %v5396_v34  ;;  %v6272_v34 = vld [vmem:[#allocation24_spill] sm:$0xff]  ;;  %v6273_v12 = vld [vmem:[#allocation22_spill] sm:$0xff] }
 0x622   : > { %v5821_v15 = vpop.eup %4214  ;;  %4224 = vpow2.f32 %v2488_v39  ;;  %v2482_v23 = vmul.f32 1.442695, %v2422_v38  ;;  %v2423_v54 = vsub.f32 %v5678_v45, %v2387_v16  ;;  %2530 = vadd.xlane.f32.xlu0 %v2529_v11  ;;  %v6259_v39 = vpack.i.bf16 %v5480_v10, %v5476_v44  ;;  %v6270_v11 = vld [vmem:[#allocation16_spill] sm:$0xff] }
 0x623   : > { %v2568_v40 = vsel %vm308_vm0, %v5821_v15, 0.0  ;;  %v6260_v38 = vpack.i.bf16 %v5416_v41, %v5410_v17  ;;  %v5877_v63 = vpop.permute.xlu1 %2931  ;;  %v6264_v17 = vld [vmem:[#allocation11_spill] sm:$0xff] }
 0x624   : > { %v5826_v33 = vpop.eup %4216  ;;  %4226 = vpow2.f32 %v2482_v23  ;;  %v2484_v9 = vmul.f32 1.442695, %v2423_v54  ;;  %2569 = vadd.xlane.f32.xlu1 %v2568_v40  ;;  %v6265_v41 = vpack.i.bf16 %v5384_v28, %v6264_v17  ;;  %v6274_v54 = vpack.i.bf16 %v6272_v34, %v6273_v12  ;;  %v6283_v12 = vld [vmem:[#allocation26_spill] sm:$0xff] }
 0x625   : > { %v5828_v51 = vpop.permute.xlu0 %2929  ;;  %v2571_v0 = vsel %vm308_vm0, %v5826_v33, 0.0 }
 0x626   : > { %v5832_v13 = vpop.eup %4218  ;;  %4228 = vpow2.f32 %v2484_v9  ;;  %2572 = vadd.xlane.f32.xlu0 %v2571_v0  ;;  %3762 = vmatprep.subr.bf16.mxu0 %v5828_v51  ;;  %v6275_v9 = vld [vmem:[#allocation21_spill] sm:$0xff]  ;;  %v6276_v0 = vld [vmem:[#allocation19_spill] sm:$0xff] }
 0x627   : > { %v2562_v45 = vsel %vm308_vm0, %v5832_v13, 0.0 }
 0x628   : > { %v5837_v58 = vpop.eup %4220  ;;  %2563 = vadd.xlane.f32.xlu1 %v2562_v45  ;;  %v6277_v45 = vpack.i.bf16 %v6275_v9, %v6276_v0 }
 0x629   : > { %v2565_v47 = vsel %vm308_vm0, %v5837_v58, 0.0 }
 0x62a   : > { %v5841_v14 = vpop.eup %4222  ;;  %2566 = vadd.xlane.f32.xlu0 %v2565_v47 }
 0x62b   : > { %v2580_v5 = vsel %vm308_vm0, %v5841_v14, 0.0 }
 0x62c   : > { %v5845_v20 = vpop.eup %4224  ;;  %2581 = vadd.xlane.f32.xlu1 %v2580_v5 }
 0x62d   : > { %v2583_v48 = vsel %vm308_vm0, %v5845_v20, 0.0 }
 0x62e   : > { %v5849_v53 = vpop.eup %4226  ;;  %2584 = vadd.xlane.f32.xlu0 %v2583_v48  ;;  %v6278_v48 = vld [vmem:[#allocation25_spill] sm:$0xff] }
 0x62f   : > { %v2574_v49 = vsel %vm308_vm0, %v5849_v53, 0.0 }
 0x630   : > { %v5853_v32 = vpop.eup %4228  ;;  %2575 = vadd.xlane.f32.xlu1 %v2574_v49  ;;  %v6279_v49 = vld [vmem:[#allocation23_spill] sm:$0xff] }
 0x631   : > { %v2577_v18 = vsel %vm308_vm0, %v5853_v32, 0.0 }
 0x632   : > { %2578 = vadd.xlane.f32.xlu0 %v2577_v18  ;;  %v6280_v18 = vpack.i.bf16 %v6278_v48, %v6279_v49 }
 0x641   : > { %2935 = vrot.lane.b32.xlu1 %v6227_v62, %s6222_s8  ;;  %v6261_v62 = vpack.i.bf16 %v5380_v42, %v5376_v6  ;;  %v6266_v6 = vld [vmem:[#allocation20_spill] sm:$0xff]  ;;  %v6267_v42 = vld [vmem:[#allocation18_spill] sm:$0xff] }
 0x642   : > { %v6268_v10 = vpack.i.bf16 %v6266_v6, %v6267_v42 }
 0x645   : > { %3904 = vrot.lane.b32.xlu1 %v6258_v52, %s4427_s5 }
 0x648   : > { %2933 = vrot.lane.b32.xlu0 %v6226_v50, %s6222_s8  ;;  %v6262_v50 = vpack.i.bf16 %v5484_v57, %v5478_v2  ;;  %v6269_v57 = vld [vmem:[#allocation17_spill] sm:$0xff]  ;;  %s188_s8 = sand.u32 1, %s4396_s13  }
 0x649   : > { %3914 = vrot.lane.b32.xlu1 %v6259_v39, %s4427_s5  ;;  %v6271_v23 = vpack.i.bf16 %v6269_v57, %v6270_v11  ;;  %v6281_v57 = vld [vmem:[#allocation5_spill] sm:$0xff]  ;;  %s3261_s7 = sshll.u32 %s188_s8, 6  ;;  %s6121_s27 = scalar_lea.sflag [#allocation3], %s188_s8 }
 0x64a   : > { %s6002_s10 = scalar_lea.vmem [#allocation2], %s3261_s7  ;;  %s4332_s7 = scalar_lea.vmem %s4331_s4, 2048 }
 0x64c   : > { %3899 = vrot.lane.b32.xlu0 %v6260_v38, %s4427_s5 }
 0x64d   : > { %3924 = vrot.lane.b32.xlu1 %v6261_v62, %s4425_s29 }
 0x650   : > { %3909 = vrot.lane.b32.xlu0 %v6262_v50, %s4427_s5 }
 0x651   : > { %3934 = vrot.lane.b32.xlu1 %v6263_v25, %s4425_s29 }
 0x654   : > { %v2498_v44 = vpop.xlane.xlu1 %2497  ;;  %3919 = vrot.lane.b32.xlu0 %v6265_v41, %s4425_s29 }
 0x655   : > { %3944 = vrot.lane.b32.xlu1 %v6268_v10, %s4424_s28 }
 0x656   : > { %v2501_v16 = vpop.xlane.xlu0 %2500 }
 0x657   : > { %4230 = vrcp.f32 %v2501_v16 }
 0x658   : > { %v2492_v2 = vpop.xlane.xlu1 %2491  ;;  %3929 = vrot.lane.b32.xlu0 %v6271_v23, %s4425_s29  ;;  %v6282_v23 = vld [vmem:[#allocation9_spill] sm:$0xff] }
 0x659   : > { %4232 = vrcp.f32 %v2492_v2  ;;  %3954 = vrot.lane.b32.xlu1 %v6274_v54, %s4424_s28 }
 0x65a   : > { %4234 = vrcp.f32 %v2498_v44  ;;  %v2495_v28 = vpop.xlane.xlu0 %2494 }
 0x65b   : > { %4236 = vrcp.f32 %v2495_v28  ;;  %v6284_v28 = vld [vmem:[#allocation27_spill] sm:$0xff] }
 0x65c   : > { %v2510_v40 = vpop.xlane.xlu1 %2509  ;;  %3939 = vrot.lane.b32.xlu0 %v6277_v45, %s4424_s28 }
 0x65e   : > { %v2513_v47 = vpop.xlane.xlu0 %2512 }
 0x65f   : > { %4238 = vrcp.f32 %v2513_v47 }
 0x660   : > { %v2504_v5 = vpop.xlane.xlu1 %2503  ;;  %3949 = vrot.lane.b32.xlu0 %v6280_v18, %s4424_s28 }
 0x661   : > { %4240 = vrcp.f32 %v2504_v5  ;;  %v4231_v52 = vpop.eup %4230 }
 0x662   : > { %4242 = vrcp.f32 %v2510_v40  ;;  %v2507_v39 = vpop.xlane.xlu0 %2506  ;;  %v2621_v25 = vmul.f32 %v4231_v52, %v5704_v60 }
 0x663   : > { %v4233_v38 = vpop.eup %4232  ;;  %4244 = vrcp.f32 %v2507_v39 }
 0x664   : > { %v4235_v62 = vpop.eup %4234  ;;  %v2618_v44 = vmul.f32 %v4233_v38, %v5708_v31 }
 0x665   : > { %v4237_v50 = vpop.eup %4236  ;;  %v2620_v41 = vmul.f32 %v4235_v62, %v5702_v21 }
 0x666   : > { %v2619_v17 = vmul.f32 %v4237_v50, %v5712_v36 }
 0x667   : > { %v2651_v42 = vpack.c.bf16 %v2621_v25, %v2620_v41 }
 0x668   : > { %v2650_v6 = vpack.c.bf16 %v2619_v17, %v2618_v44 }
 0x669   : > { %v4239_v10 = vpop.eup %4238 }
 0x66a   : > { %3722 = vmatprep.mubr.msk.bf16.mxu1 %vm308_vm0, %v2650_v6  ;;  %v2625_v60 = vmul.f32 %v4239_v10, %v5720_v19 }
 0x66b   : > { %v4241_v16 = vpop.eup %4240  ;;  %3723 = vmatmul.mubr.msk.bf16.vlgmr.msra.gmra.mrb[48].mxu1 %vm308_vm0, %v2651_v42 }
 0x66c   : > { %v4243_v2 = vpop.eup %4242  ;;  %3747 = vmatpush3.bf16.msra.mxu1 %v6281_v57  ;;  %v2622_v31 = vmul.f32 %v4241_v16, %v5724_v59 }
 0x66d   : > { %v4245_v11 = vpop.eup %4244  ;;  %3748 = vmatprep.subr.bf16.mxu1 %v6282_v23  ;;  %v2624_v36 = vmul.f32 %v4243_v2, %v5716_v3 }
 0x66e   : > { %v2623_v21 = vmul.f32 %v4245_v11, %v5728_v56 }
 0x66f   : > { %v2653_v54 = vpack.c.bf16 %v2625_v60, %v2624_v36 }
 0x670   : > { %3749 = vmatpush3.bf16.msra.mxu1 %v6282_v23  ;;  %v2652_v34 = vpack.c.bf16 %v2623_v21, %v2622_v31 }
 0x671   : > { %3750 = vmatprep.subr.bf16.mxu1 %v6283_v12 }
 0x672   : > { %3726 = vmatprep.mubr.msk.bf16.mxu1 %vm308_vm0, %v2652_v34 }
 0x673   : > { %3727 = vmatmul.mubr.msk.bf16.gmra.mrb[52].mxu1 %vm308_vm0, %v2653_v54 }
 0x674   : > { %3751 = vmatpush3.bf16.msra.mxu1 %v6283_v12 }
 0x675   : > { %3752 = vmatprep.subr.bf16.mxu1 %v6284_v28 }
 0x678   : > { %3753 = vmatpush3.bf16.msra.mxu1 %v6284_v28 }
 0x679   : > { %3778 = vmatprep.subr.bf16.mxu1 %v5828_v51 }
 0x691   : > { %v2546_v19 = vpop.xlane.xlu1 %2545 }
 0x693   : > { %v2549_v3 = vpop.xlane.xlu0 %2548 }
 0x694   : > { %4246 = vrcp.f32 %v2549_v3 }
 0x695   : > { %v2540_v59 = vpop.xlane.xlu1 %2539 }
 0x696   : > { %4248 = vrcp.f32 %v2540_v59 }
 0x697   : > { %4250 = vrcp.f32 %v2546_v19  ;;  %v2543_v56 = vpop.xlane.xlu0 %2542 }
 0x698   : > { %4252 = vrcp.f32 %v2543_v56 }
 0x699   : > { %v2558_v40 = vpop.xlane.xlu1 %2557 }
 0x69b   : > { %v2561_v9 = vpop.xlane.xlu0 %2560 }
 0x69c   : > { %4254 = vrcp.f32 %v2561_v9 }
 0x69d   : > { %v2552_v0 = vpop.xlane.xlu1 %2551 }
 0x69e   : > { %4256 = vrcp.f32 %v2552_v0  ;;  %v4247_v45 = vpop.eup %4246 }
 0x69f   : > { %4258 = vrcp.f32 %v2558_v40  ;;  %v2555_v47 = vpop.xlane.xlu0 %2554  ;;  %v2637_v52 = vmul.f32 %v4247_v45, %v5746_v43 }
 0x6a0   : > { %v4249_v5 = vpop.eup %4248  ;;  %4260 = vrcp.f32 %v2555_v47 }
 0x6a1   : > { %v4251_v48 = vpop.eup %4250  ;;  %v2522_v49 = vpop.xlane.xlu1 %2521  ;;  %v2634_v38 = vmul.f32 %v4249_v5, %v5751_v55 }
 0x6a2   : > { %v4253_v18 = vpop.eup %4252  ;;  %v2636_v50 = vmul.f32 %v4251_v48, %v5741_v26 }
 0x6a3   : > { %v2525_v39 = vpop.xlane.xlu0 %2524  ;;  %v2635_v62 = vmul.f32 %v4253_v18, %v5756_v8 }
 0x6a4   : > { %4262 = vrcp.f32 %v2525_v39  ;;  %v2659_v17 = vpack.c.bf16 %v2637_v52, %v2636_v50 }
 0x6a5   : > { %v2516_v25 = vpop.xlane.xlu1 %2515  ;;  %v2658_v44 = vpack.c.bf16 %v2635_v62, %v2634_v38 }
 0x6a6   : > { %4264 = vrcp.f32 %v2516_v25  ;;  %v4255_v41 = vpop.eup %4254 }
 0x6a7   : > { %4266 = vrcp.f32 %v2522_v49  ;;  %3754 = vmatprep.mubr.msk.bf16.mxu1 %vm308_vm0, %v2658_v44  ;;  %v2519_v6 = vpop.xlane.xlu0 %2518  ;;  %v2641_v26 = vmul.f32 %v4255_v41, %v5766_v1 }
 0x6a8   : > { %v4257_v42 = vpop.eup %4256  ;;  %4268 = vrcp.f32 %v2519_v6  ;;  %3755 = vmatmul.mubr.msk.bf16.vlgmr.msra.gmra.mrb[56].mxu1 %vm308_vm0, %v2659_v17 }
 0x6a9   : > { %v4259_v43 = vpop.eup %4258  ;;  %3782 = vmatpush3.bf16.msra.mxu1 %v5828_v51  ;;  %v2534_v55 = vpop.xlane.xlu1 %2533  ;;  %v2638_v16 = vmul.f32 %v4257_v42, %v5771_v30 }
 0x6aa   : > { %v4261_v8 = vpop.eup %4260  ;;  %3779 = vmatprep.subr.bf16.mxu1 %v5877_v63  ;;  %v2640_v57 = vmul.f32 %v4259_v43, %v5761_v24 }
 0x6ab   : > { %v2537_v10 = vpop.xlane.xlu0 %2536  ;;  %v2639_v2 = vmul.f32 %v4261_v8, %v5776_v27 }
 0x6ac   : > { %4270 = vrcp.f32 %v2537_v10  ;;  %v2661_v60 = vpack.c.bf16 %v2641_v26, %v2640_v57 }
 0x6ad   : > { %3783 = vmatpush3.bf16.msra.mxu1 %v5877_v63  ;;  %v2528_v11 = vpop.xlane.xlu1 %2527  ;;  %v2660_v23 = vpack.c.bf16 %v2639_v2, %v2638_v16 }
 0x6ae   : > { %4272 = vrcp.f32 %v2528_v11  ;;  %v4263_v31 = vpop.eup %4262 }
 0x6af   : > { %4274 = vrcp.f32 %v2534_v55  ;;  %3758 = vmatprep.mubr.msk.bf16.mxu1 %vm308_vm0, %v2660_v23  ;;  %v2531_v21 = vpop.xlane.xlu0 %2530  ;;  %v2629_v24 = vmul.f32 %v4263_v31, %v5786_v22 }
 0x6b0   : > { %v4265_v1 = vpop.eup %4264  ;;  %4276 = vrcp.f32 %v2531_v21  ;;  %3759 = vmatmul.mubr.msk.bf16.gmra.mrb[60].mxu1 %vm308_vm0, %v2661_v60 }
 0x6b1   : > { %v4267_v30 = vpop.eup %4266  ;;  %v2570_v27 = vpop.xlane.xlu1 %2569  ;;  %v2626_v12 = vmul.f32 %v4265_v1, %v5791_v46 }
 0x6b2   : > { %v4269_v36 = vpop.eup %4268  ;;  %v2628_v28 = vmul.f32 %v4267_v30, %v5781_v37 }
 0x6b3   : > { %v2573_v34 = vpop.xlane.xlu0 %2572  ;;  %v2627_v54 = vmul.f32 %v4269_v36, %v5796_v35 }
 0x6b4   : > { %v2655_v59 = vpack.c.bf16 %v2629_v24, %v2628_v28 }
 0x6b5   : > { %v2564_v19 = vpop.xlane.xlu1 %2563  ;;  %v2654_v3 = vpack.c.bf16 %v2627_v54, %v2626_v12  ;;  %v6286_v54 = vld [vmem:[#allocation6_spill] sm:$0xff] }
 0x6b6   : > { %4278 = vrcp.f32 %v2564_v19  ;;  %v4271_v56 = vpop.eup %4270  ;;  %v6287_v19 = vld [vmem:[#allocation12_spill] sm:$0xff] }
 0x6b7   : > { %3738 = vmatprep.mubr.msk.bf16.mxu0 %vm308_vm0, %v2654_v3  ;;  %v2567_v40 = vpop.xlane.xlu0 %2566  ;;  %v2633_v37 = vmul.f32 %v4271_v56, %v5806_v4 }
 0x6b8   : > { %v4273_v9 = vpop.eup %4272  ;;  %4280 = vrcp.f32 %v2567_v40  ;;  %3739 = vmatmul.mubr.msk.bf16.vlgmr.msra.gmra.mrb[80].mxu0 %vm308_vm0, %v2655_v59  ;;  %v6288_v59 = vld [vmem:[#allocation7_spill] sm:$0xff]  ;;  %v6289_v40 = vld [vmem:[#allocation14_spill] sm:$0xff] }
 0x6b9   : > { %v4275_v22 = vpop.eup %4274  ;;  %4282 = vrcp.f32 %v2573_v34  ;;  %3763 = vmatpush3.bf16.msra.mxu0 %v5828_v51  ;;  %v2582_v46 = vpop.xlane.xlu1 %2581  ;;  %v2630_v45 = vmul.f32 %v4273_v9, %v5811_v61  ;;  %v6285_v34 = vld [vmem:[#allocation8_spill] sm:$0xff] }
 0x6ba   : > { %v4277_v35 = vpop.eup %4276  ;;  %3764 = vmatprep.subr.bf16.mxu0 %v5877_v63  ;;  %4284 = vrcp.f32 %v2570_v27  ;;  %v2632_v5 = vmul.f32 %v4275_v22, %v5801_v29  ;;  %v6290_v22 = vld [vmem:[#allocation10_spill] sm:$0xff] }
 0x6bb   : > { %v2585_v0 = vpop.xlane.xlu0 %2584  ;;  %v2631_v47 = vmul.f32 %v4277_v35, %v5816_v7  ;;  %v6291_v35 = vld [vmem:[#allocation13_spill] sm:$0xff] }
 0x6bc   : > { %4286 = vrcp.f32 %v2585_v0  ;;  %v2657_v51 = vpack.c.bf16 %v2633_v37, %v2632_v5  ;;  %v6292_v0 = vld [vmem:[#allocation15_spill] sm:$0xff] }
 0x6bd   : > { %3765 = vmatpush3.bf16.msra.mxu0 %v5877_v63  ;;  %v2576_v48 = vpop.xlane.xlu1 %2575  ;;  %v2656_v49 = vpack.c.bf16 %v2631_v47, %v2630_v45 }
 0x6be   : > { %4288 = vrcp.f32 %v2576_v48 }
 0x6bf   : > { %4290 = vrcp.f32 %v2582_v46  ;;  %3742 = vmatprep.mubr.msk.bf16.mxu0 %vm308_vm0, %v2656_v49  ;;  %v2579_v18 = vpop.xlane.xlu0 %2578 }
 0x6c0   : > { %v4279_v4 = vpop.eup %4278  ;;  %4292 = vrcp.f32 %v2579_v18  ;;  %3743 = vmatmul.mubr.msk.bf16.gmra.mrb[84].mxu0 %vm308_vm0, %v2657_v51 }
 0x6c1   : > { %v2936_v61 = vpop.permute.xlu1 %2935  ;;  %v2642_v29 = vmul.f32 %v4279_v4, %v5832_v13 }
 0x6c2   : > { %v4281_v52 = vpop.eup %4280 }
 0x6c3   : > { %v4283_v7 = vpop.eup %4282  ;;  %v2934_v39 = vpop.permute.xlu0 %2933  ;;  %v2643_v63 = vmul.f32 %v4281_v52, %v5837_v58 }
 0x6c4   : > { %3766 = vmatprep.subr.bf16.mxu0 %v2934_v39  ;;  %3780 = vmatprep.subr.bf16.mxu1 %v2934_v39  ;;  %v4285_v38 = vpop.eup %4284  ;;  %v2645_v25 = vmul.f32 %v4283_v7, %v5826_v33 }
 0x6c5   : > { %v3905_v62 = vpop.permute.xlu1 %3904  ;;  %3767 = vmatpush3.bf16.msra.mxu0 %v2934_v39  ;;  %3784 = vmatpush3.bf16.msra.mxu1 %v2934_v39  ;;  %v2662_v50 = vpack.c.bf16 %v2643_v63, %v2642_v29  ;;  %v2644_v13 = vmul.f32 %v4285_v38, %v5821_v15 }
 0x6c6   : > { %3768 = vmatprep.subr.bf16.mxu0 %v2936_v61  ;;  %3781 = vmatprep.subr.bf16.mxu1 %v2936_v61  ;;  %v4287_v44 = vpop.eup %4286  ;;  %v3907_v11 = vunpack.i.h.bf16 %v3905_v62  ;;  %v3906_v23 = vunpack.i.l.bf16 %v3905_v62 }
 0x6c7   : > { %3770 = vmatprep.mubr.msk.bf16.mxu0 %vm308_vm0, %v2662_v50  ;;  %v3900_v17 = vpop.permute.xlu0 %3899  ;;  %v2663_v43 = vpack.c.bf16 %v2645_v25, %v2644_v13  ;;  %v2649_v55 = vmul.f32 %v4287_v44, %v5845_v20 }
 0x6c8   : > { %v4289_v41 = vpop.eup %4288  ;;  %v3902_v60 = vunpack.i.h.bf16 %v3900_v17  ;;  %v3901_v20 = vunpack.i.l.bf16 %v3900_v17  ;;  %v1794_v12 = vsel %vm538_vm1, %v6285_v34, %v3907_v11  ;;  %v1793_v28 = vsel %vm538_vm1, %v6286_v54, %v3906_v23 }
 0x6c9   : > { %v4291_v6 = vpop.eup %4290  ;;  %v3915_v58 = vpop.permute.xlu1 %3914  ;;  %3769 = vmatpush3.bf16.msra.mxu0 %v2936_v61  ;;  %3785 = vmatpush3.bf16.msra.mxu1 %v2936_v61  ;;  %v2646_v33 = vmul.f32 %v4289_v41, %v5849_v53 }
 0x6ca   : > { %v4293_v42 = vpop.eup %4292  ;;  %v2648_v10 = vmul.f32 %v4291_v6, %v5841_v14  ;;  %v3917_v53 = vunpack.i.h.bf16 %v3915_v58  ;;  %v3916_v31 = vunpack.i.l.bf16 %v3915_v58  ;;  %v1792_v3 = vsel %vm538_vm1, %v6287_v19, %v3902_v60 }
 0x6cb   : > { %v3910_v8 = vpop.permute.xlu0 %3909  ;;  %v2647_v26 = vmul.f32 %v4293_v42, %v5853_v32  ;;  %v1791_v56 = vsel %vm538_vm1, %v6288_v59, %v3901_v20 }
 0x6cc   : > { %3771 = vmatmul.mubr.msk.bf16.vlgmr.msra.gmra.mrb[88].mxu0 %vm308_vm0, %v2663_v43  ;;  %v2665_v15 = vpack.c.bf16 %v2649_v55, %v2648_v10  ;;  %v3912_v32 = vunpack.i.h.bf16 %v3910_v8  ;;  %v3911_v21 = vunpack.i.l.bf16 %v3910_v8  ;;  %v1798_v9 = vsel %vm538_vm1, %v6289_v40, %v3917_v53 }
 0x6cd   : > { %v3925_v16 = vpop.permute.xlu1 %3924  ;;  %v2664_v2 = vpack.c.bf16 %v2647_v26, %v2646_v33  ;;  %v1797_v46 = vsel %vm538_vm1, %v6290_v22, %v3916_v31 }
 0x6ce   : > { %v3927_v1 = vunpack.i.h.bf16 %v3925_v16  ;;  %v3926_v30 = vunpack.i.l.bf16 %v3925_v16  ;;  %v1796_v37 = vsel %vm538_vm1, %v6291_v35, %v3912_v32  ;;  %v1795_v45 = vsel %vm538_vm1, %v6292_v0, %v3911_v21 }
 0x6cf   : > { %3774 = vmatprep.mubr.msk.bf16.mxu1 %vm308_vm0, %v2664_v2  ;;  %v3920_v57 = vpop.permute.xlu0 %3919 }
 0x6d0   : > { %3775 = vmatmul.mubr.msk.bf16.vlgmr.msra.gmra.mrb[64].mxu1 %vm308_vm0, %v2665_v15  ;;  %v3922_v27 = vunpack.i.h.bf16 %v3920_v57  ;;  %v3921_v36 = vunpack.i.l.bf16 %v3920_v57  ;;  %v1802_v5 = vsel %vm1799_vm2, %v1793_v28, %v3926_v30  ;;  %v1803_v48 = vsel %vm1799_vm2, %v1794_v12, %v3927_v1 }
 0x6d1   : > { %v3935_v14 = vpop.permute.xlu1 %3934 }
 0x6d2   : > { %v1800_v18 = vsel %vm1799_vm2, %v1791_v56, %v3921_v36  ;;  %v1801_v4 = vsel %vm1799_vm2, %v1792_v3, %v3922_v27  ;;  %v3937_v61 = vunpack.i.h.bf16 %v3935_v14  ;;  %v3936_v52 = vunpack.i.l.bf16 %v3935_v14 }
 0x6d3   : > { %v3930_v24 = vpop.permute.xlu0 %3929 }
 0x6d4   : > { %v3932_v62 = vunpack.i.h.bf16 %v3930_v24  ;;  %v3931_v50 = vunpack.i.l.bf16 %v3930_v24  ;;  %v1806_v42 = vsel %vm1799_vm2, %v1797_v46, %v3936_v52  ;;  %v1807_v43 = vsel %vm1799_vm2, %v1798_v9, %v3937_v61 }
 0x6d5   : > { %v3945_v47 = vpop.permute.xlu1 %3944 }
 0x6d6   : > { %v3947_v49 = vunpack.i.h.bf16 %v3945_v47  ;;  %v3946_v51 = vunpack.i.l.bf16 %v3945_v47  ;;  %v1804_v15 = vsel %vm1799_vm2, %v1795_v45, %v3931_v50  ;;  %v1805_v57 = vsel %vm1799_vm2, %v1796_v37, %v3932_v62 }
 0x6d7   : > { %v3940_v7 = vpop.permute.xlu0 %3939 }
 0x6d8   : > { %v1811_v39 = vsel %vm1808_vm3, %v1802_v5, %v3946_v51  ;;  %v1812_v29 = vsel %vm1808_vm3, %v1803_v48, %v3947_v49  ;;  %v3942_v63 = vunpack.i.h.bf16 %v3940_v7  ;;  %v3941_v38 = vunpack.i.l.bf16 %v3940_v7 }
 0x6d9   : > { %v1819_v25 = vpack.c.bf16 %v1811_v39, %v1811_v39  ;;  %v1820_v44 = vpack.c.bf16 %v1812_v29, %v1812_v29  ;;  %v3955_v17 = vpop.permute.xlu1 %3954 }
 0x6da   : > { %v1809_v41 = vsel %vm1808_vm3, %v1800_v18, %v3941_v38  ;;  %v1810_v13 = vsel %vm1808_vm3, %v1801_v4, %v3942_v63  ;;  %v3957_v6 = vunpack.i.h.bf16 %v3955_v17  ;;  %v3956_v58 = vunpack.i.l.bf16 %v3955_v17 }
 0x6db   : > { %1828 = vst.msk [vmem:[%s6002_s10 + $0x10] sm:$0xf] %vm1825_vm4, %v1819_v25  ;;  %1829 = vst.msk [vmem:[%s6002_s10 + $0x18] sm:$0xf] %vm1825_vm4, %v1820_v44  ;;  %v1817_v55 = vpack.c.bf16 %v1809_v41, %v1809_v41  ;;  %v1818_v8 = vpack.c.bf16 %v1810_v13, %v1810_v13  ;;  %v3950_v33 = vpop.permute.xlu0 %3949 }
 0x6dc   : > { %v1815_v26 = vsel %vm1808_vm3, %v1806_v42, %v3956_v58  ;;  %v1816_v10 = vsel %vm1808_vm3, %v1807_v43, %v3957_v6  ;;  %v3952_v16 = vunpack.i.h.bf16 %v3950_v33  ;;  %v3951_v2 = vunpack.i.l.bf16 %v3950_v33 }
 0x6dd   : > { %1826 = vst.msk [vmem:[%s6002_s10] sm:$0xf] %vm1825_vm4, %v1817_v55  ;;  %1827 = vst.msk [vmem:[%s6002_s10 + $0x8] sm:$0xf] %vm1825_vm4, %v1818_v8  ;;  %v1823_v11 = vpack.c.bf16 %v1815_v26, %v1815_v26  ;;  %v1824_v23 = vpack.c.bf16 %v1816_v10, %v1816_v10 }
 0x6de   : > { %v1813_v60 = vsel %vm1808_vm3, %v1804_v15, %v3951_v2  ;;  %v1814_v20 = vsel %vm1808_vm3, %v1805_v57, %v3952_v16 }
 0x6df   : > { %1832 = vst.msk [vmem:[%s6002_s10 + $0x30] sm:$0xf] %vm1825_vm4, %v1823_v11  ;;  %1833 = vst.msk [vmem:[%s6002_s10 + $0x38] sm:$0xf] %vm1825_vm4, %v1824_v23  ;;  %v1821_v53 = vpack.c.bf16 %v1813_v60, %v1813_v60  ;;  %v1822_v31 = vpack.c.bf16 %v1814_v20, %v1814_v20 }
 0x6e1   : > { %1830 = vst.msk [vmem:[%s6002_s10 + $0x20] sm:$0xf] %vm1825_vm4, %v1821_v53  ;;  %1831 = vst.msk [vmem:[%s6002_s10 + $0x28] sm:$0xf] %vm1825_vm4, %v1822_v31 }
 0x73e   : > { %v6026_v32 = vpop.f32.mrb[48].mxu1 }
 0x73f   : > { %v6028_v21 = vpop.f32.mrb[49].mxu1 }
 0x740   : > { %v6030_v14 = vpop.f32.mrb[50].mxu1 }
 0x741   : > { %v6032_v1 = vpop.f32.mrb[51].mxu1 }
 0x746   : > { %v6034_v30 = vpop.f32.mrb[52].mxu1 }
 0x747   : > { %v6036_v27 = vpop.f32.mrb[53].mxu1 }
 0x748   : > { %v6038_v36 = vpop.f32.mrb[54].mxu1 }
 0x749   : > { %v6040_v24 = vpop.f32.mrb[55].mxu1 }
 0x77b   : > { %v3756_v34 = vpop.f32.mrb[56].mxu1 }
 0x77c   : > { %v2898_v12 = vpop.f32.mrb[57].mxu1 }
 0x77d   : > { %v3757_v54 = vpop.f32.mrb[58].mxu1 }
 0x77e   : > { %v3958_v28 = vpack.i.bf16 %v3757_v54, %v3756_v34  ;;  %v2901_v19 = vpop.f32.mrb[59].mxu1 }
 0x77f   : > { %v3963_v3 = vpack.i.bf16 %v2901_v19, %v2898_v12 }
 0x780   : > { %3959 = vrot.lane.b32.xlu1 %v3958_v28, %s4425_s29 }
 0x781   : > { %3964 = vrot.lane.b32.xlu0 %v3963_v3, %s4425_s29 }
 0x783   : > { %v3760_v59 = vpop.f32.mrb[60].mxu1 }
 0x784   : > { %v2914_v56 = vpop.f32.mrb[61].mxu1 }
 0x785   : > { %v3761_v40 = vpop.f32.mrb[62].mxu1 }
 0x786   : > { %v3968_v9 = vpack.i.bf16 %v3761_v40, %v3760_v59  ;;  %v2917_v22 = vpop.f32.mrb[63].mxu1 }
 0x787   : > { %v3973_v46 = vpack.i.bf16 %v2917_v22, %v2914_v56 }
 0x788   : > { %3969 = vrot.lane.b32.xlu1 %v3968_v9, %s4425_s29 }
 0x789   : > { %3974 = vrot.lane.b32.xlu0 %v3973_v46, %s4425_s29  ;;  %s3373_s29 = sshll.u32 %s4408_s16, 5  ;;  %s3171_s16 = sshll.u32 %s6002_s10, 4  ;;  %s6104_s16 = int_to_ptr.vmem [resolvable:$true] %s3171_s16 }
 0x78a   : > { %s4326_s21 = scalar_lea.vmem %s6104_s16, 1024  ;;  %p4333_p4 = scmp.lt.s32.totalorder %s6104_s16, %s4331_s4 }
 0x78b   : > { %v3740_v35 = vpop.f32.mrb[80].mxu0  ;;  %p4327_p0 = scmp.ne.s32.totalorder %s6104_s16, %s4326_s21  ;;  %p4334_p5 = scmp.lt.s32.totalorder %s4332_s7, %s4326_s21 }
 0x78c   : > { %v2809_v37 = vpop.f32.mrb[81].mxu0 }
 0x78d   : > { %v3741_v0 = vpop.f32.mrb[82].mxu0  ;;  %p4328_p1 = pnand %p4327_p0, %p4503_p3  ;;  %p4335_p6 = por %p4334_p5, %p4333_p4 }
 0x78e   : > { %v3978_v45 = vpack.i.bf16 %v3741_v0, %v3740_v35  ;;  %v2812_v47 = vpop.f32.mrb[83].mxu0 }
 0x78f   : > { %v3983_v5 = vpack.i.bf16 %v2812_v47, %v2809_v37  ;;  %p4329_p2 = pneg %p4328_p1 }
 0x790   : > { %3979 = vrot.lane.b32.xlu1 %v3978_v45, %s4427_s5 }
 0x791   : > { %3984 = vrot.lane.b32.xlu0 %v3983_v5, %s4427_s5  ;;  %p4336_p7 = pnand %p4335_p6, %p4329_p2 }
 0x793   : > { %v3744_v48 = vpop.f32.mrb[84].mxu0 }
 0x794   : > { %v2825_v49 = vpop.f32.mrb[85].mxu0 }
 0x795   : > { %v3745_v51 = vpop.f32.mrb[86].mxu0 }
 0x796   : > { %v3988_v18 = vpack.i.bf16 %v3745_v51, %v3744_v48  ;;  %v2828_v4 = vpop.f32.mrb[87].mxu0 }
 0x797   : > { %v3993_v61 = vpack.i.bf16 %v2828_v4, %v2825_v49 }
 0x798   : > { %3989 = vrot.lane.b32.xlu1 %v3988_v18, %s4427_s5 }
 0x799   : > { %3994 = vrot.lane.b32.xlu0 %v3993_v61, %s4427_s5 }
 0x79f   : > { %v3772_v52 = vpop.f32.mrb[88].mxu0 }
 0x7a0   : > { %v2987_v7 = vpop.f32.mrb[89].mxu0 }
 0x7a1   : > { %v3773_v39 = vpop.f32.mrb[90].mxu0 }
 0x7a2   : > { %v3998_v29 = vpack.i.bf16 %v3773_v39, %v3772_v52  ;;  %v2990_v63 = vpop.f32.mrb[91].mxu0 }
 0x7a3   : > { %v4003_v38 = vpack.i.bf16 %v2990_v63, %v2987_v7  ;;  %v3776_v62 = vpop.f32.mrb[64].mxu1 }
 0x7a4   : > { %v3003_v50 = vpop.f32.mrb[65].mxu1  ;;  %3999 = vrot.lane.b32.xlu1 %v3998_v29, %s4424_s28 }
 0x7a5   : > { %v3777_v25 = vpop.f32.mrb[66].mxu1  ;;  %4004 = vrot.lane.b32.xlu0 %v4003_v38, %s4424_s28 }
 0x7a6   : > { %v4013_v44 = vpack.i.bf16 %v3777_v25, %v3776_v62  ;;  %v3006_v17 = vpop.f32.mrb[67].mxu1 }
 0x7a7   : > { %v4008_v41 = vpack.i.bf16 %v3006_v17, %v3003_v50 }
 0x7a8   : > { %4014 = vrot.lane.b32.xlu1 %v4013_v44, %s4424_s28 }
 0x7a9   : > { %4009 = vrot.lane.b32.xlu0 %v4008_v41, %s4424_s28  ;;  %s3393_s28 = sshll.u32 %s4404_s15, 4 }
 0x7aa   : > { %s6082_s15 = sadd.s32 %s3393_s28, %s3373_s29 }
 0x7ab   : > { %s3374_s5 = sshll.u32 %s6082_s15, 6 }
 0x7ac   : > { %s6109_s24 = scalar_lea.hbm %s6178_s3, %s3374_s5 }
 0x7f2   : > { %v3960_v13 = vpop.permute.xlu1 %3959 }
 0x7f3   : > { %v3965_v6 = vpop.permute.xlu0 %3964  ;;  %v3962_v2 = vunpack.i.h.bf16 %v3960_v13  ;;  %v3961_v15 = vunpack.i.l.bf16 %v3960_v13 }
 0x7f4   : > { %v3967_v11 = vunpack.i.h.bf16 %v3965_v6  ;;  %v3966_v23 = vunpack.i.l.bf16 %v3965_v6 }
 0x7fa   : > { %v3970_v58 = vpop.permute.xlu1 %3969 }
 0x7fb   : > { %v6054_v42 = vpop.permute.xlu0 %3974  ;;  %v3972_v54 = vunpack.i.h.bf16 %v3970_v58  ;;  %v3971_v28 = vunpack.i.l.bf16 %v3970_v58 }
 0x7fc   : > { %v3977_v59 = vunpack.i.h.bf16 %v6054_v42 }
 0x802   : > { %v3980_v43 = vpop.permute.xlu1 %3979 }
 0x803   : > { %v3985_v55 = vpop.permute.xlu0 %3984  ;;  %v3982_v8 = vunpack.i.h.bf16 %v3980_v43  ;;  %v3981_v33 = vunpack.i.l.bf16 %v3980_v43 }
 0x804   : > { %v3987_v26 = vunpack.i.h.bf16 %v3985_v55  ;;  %v3986_v10 = vunpack.i.l.bf16 %v3985_v55 }
 0x805   : > { %v3117_v60 = vsel %vm538_vm1, %v6030_v14, %v3982_v8  ;;  %v3116_v20 = vsel %vm538_vm1, %v6026_v32, %v3981_v33  ;;  %v3976_v14 = vunpack.i.l.bf16 %v6054_v42 }
 0x806   : > { %v3115_v53 = vsel %vm538_vm1, %v6032_v1, %v3987_v26  ;;  %v3114_v31 = vsel %vm538_vm1, %v6028_v21, %v3986_v10  ;;  %v3124_v56 = vsel %vm1799_vm2, %v3116_v20, %v3961_v15  ;;  %v3125_v32 = vsel %vm1799_vm2, %v3117_v60, %v3962_v2 }
 0x807   : > { %v3122_v22 = vsel %vm1799_vm2, %v3114_v31, %v3966_v23  ;;  %v3123_v46 = vsel %vm1799_vm2, %v3115_v53, %v3967_v11 }
 0x80a   : > { %v3990_v16 = vpop.permute.xlu1 %3989 }
 0x80b   : > { %v3995_v57 = vpop.permute.xlu0 %3994  ;;  %v3992_v34 = vunpack.i.h.bf16 %v3990_v16  ;;  %v3991_v12 = vunpack.i.l.bf16 %v3990_v16 }
 0x80c   : > { %v3997_v19 = vunpack.i.h.bf16 %v3995_v57  ;;  %v3996_v3 = vunpack.i.l.bf16 %v3995_v57 }
 0x80d   : > { %v3121_v35 = vsel %vm538_vm1, %v6038_v36, %v3992_v34  ;;  %v3120_v37 = vsel %vm538_vm1, %v6034_v30, %v3991_v12 }
 0x80e   : > { %v3119_v47 = vsel %vm538_vm1, %v6040_v24, %v3997_v19  ;;  %v3118_v5 = vsel %vm538_vm1, %v6036_v27, %v3996_v3  ;;  %v3128_v39 = vsel %vm1799_vm2, %v3120_v37, %v3971_v28  ;;  %v3129_v29 = vsel %vm1799_vm2, %v3121_v35, %v3972_v54 }
 0x80f   : > { %v3126_v25 = vsel %vm1799_vm2, %v3118_v5, %v3976_v14  ;;  %v3127_v44 = vsel %vm1799_vm2, %v3119_v47, %v3977_v59 }
 0x816   : > { %v4000_v40 = vpop.permute.xlu1 %3999 }
 0x817   : > { %v4002_v1 = vunpack.i.h.bf16 %v4000_v40  ;;  %v4001_v9 = vunpack.i.l.bf16 %v4000_v40  ;;  %v4005_v21 = vpop.permute.xlu0 %4004 }
 0x818   : > { %v4007_v0 = vunpack.i.h.bf16 %v4005_v21  ;;  %v4006_v45 = vunpack.i.l.bf16 %v4005_v21 }
 0x819   : > { %v3133_v48 = vsel %vm1808_vm3, %v3125_v32, %v4002_v1  ;;  %v3132_v49 = vsel %vm1808_vm3, %v3124_v56, %v4001_v9 }
 0x81a   : > { %v3141_v36 = vpack.c.bf16 %v3133_v48, %v3133_v48  ;;  %v3140_v51 = vpack.c.bf16 %v3132_v49, %v3132_v49  ;;  %v3130_v30 = vsel %vm1808_vm3, %v3122_v22, %v4006_v45  ;;  %v3131_v18 = vsel %vm1808_vm3, %v3123_v46, %v4007_v0  ;;  %v4015_v24 = vpop.permute.xlu1 %4014 }
 0x81b   : > { %v3138_v4 = vpack.c.bf16 %v3130_v30, %v3130_v30  ;;  %v3139_v61 = vpack.c.bf16 %v3131_v18, %v3131_v18  ;;  %v4017_v27 = vunpack.i.h.bf16 %v4015_v24  ;;  %v4016_v52 = vunpack.i.l.bf16 %v4015_v24  ;;  %v4010_v7 = vpop.permute.xlu0 %4009 }
 0x81c   : > { %3148 = vst.msk [vmem:[%s6002_s10 + $0x14] sm:$0xf] %vm1825_vm4, %v3140_v51  ;;  %3149 = vst.msk [vmem:[%s6002_s10 + $0x1c] sm:$0xf] %vm1825_vm4, %v3141_v36  ;;  %v4012_v63 = vunpack.i.h.bf16 %v4010_v7  ;;  %v4011_v38 = vunpack.i.l.bf16 %v4010_v7 }
 0x81d   : > { %3146 = vst.msk [vmem:[%s6002_s10 + $0x4] sm:$0xf] %vm1825_vm4, %v3138_v4  ;;  %3147 = vst.msk [vmem:[%s6002_s10 + $0xc] sm:$0xf] %vm1825_vm4, %v3139_v61  ;;  %v3137_v62 = vsel %vm1808_vm3, %v3129_v29, %v4017_v27  ;;  %v3136_v50 = vsel %vm1808_vm3, %v3128_v39, %v4016_v52 }
 0x81e   : > { %v3145_v17 = vpack.c.bf16 %v3137_v62, %v3137_v62  ;;  %v3144_v41 = vpack.c.bf16 %v3136_v50, %v3136_v50  ;;  %v3134_v13 = vsel %vm1808_vm3, %v3126_v25, %v4011_v38  ;;  %v3135_v6 = vsel %vm1808_vm3, %v3127_v44, %v4012_v63 }
 0x81f   : > { %v3142_v58 = vpack.c.bf16 %v3134_v13, %v3134_v13  ;;  %v3143_v42 = vpack.c.bf16 %v3135_v6, %v3135_v6 }
 0x820   : > { %3152 = vst.msk [vmem:[%s6002_s10 + $0x34] sm:$0xf] %vm1825_vm4, %v3144_v41  ;;  %3153 = vst.msk [vmem:[%s6002_s10 + $0x3c] sm:$0xf] %vm1825_vm4, %v3145_v17 }
 0x821   : > { %3150 = vst.msk [vmem:[%s6002_s10 + $0x24] sm:$0xf] %vm1825_vm4, %v3142_v58  ;;  %3151 = vst.msk [vmem:[%s6002_s10 + $0x2c] sm:$0xf] %vm1825_vm4, %v3143_v42 }
 0x822   : > { %4339 = shalt.err (!%p4336_p7)
}
 0x823   : > { %s4340_s8 = scalar_lea.hbm %s6109_s24, 1024  ;;  %s4344_s29 = scalar_lea.hbm %s6178_s3, 4096 }
 0x824   : > { %p4341_p9 = scmp.ne.s32.totalorder %s6109_s24, %s4340_s8  ;;  %p4345_p12 = scmp.lt.u32.totalorder %s6109_s24, %s6178_s3 }
 0x825   : > { %p4346_p13 = scmp.lt.u32.totalorder %s4344_s29, %s4340_s8  ;;  %p4348_p1 = scmp.lt.u32.totalorder %s4340_s8, %s6109_s24 }
 0x826   : > { %p4342_p10 = pnand %p4341_p9, %p4503_p3 }
 0x827   : > { %p4347_p0 = por %p4346_p13, %p4345_p12 }
 0x828   : > { %p4343_p11 = pneg %p4342_p10 }
 0x829   : > { %p4349_p2 = por %p4348_p1, %p4347_p0 }
 0x82b   : > { %p4350_p4 = pnand %p4349_p2, %p4343_p11 }
 0x82d   : > { %4353 = shalt.err (!%p4350_p4)
}
 0x82e   : > { %s4431_s11 = smov 4  }
 0x82f   : > { %3818 = dma.vmem_to_hbm [thread:$0]  (%p4503_p3), %s6104_s16, 1024, %s6109_s24, %s6121_s27, %s4423_s6, %s4423_s6, %s4431_s11  }
 0x830 PF: > { %p3824_p5 = scmp.ge.s32.totalorder %s4420_s19, 2  ;;  %s3186_s20 = sand.u32 1, %s4392_s12  }
 0x831   : > { %s3187_s21 = scalar_lea.sflag [#allocation3], %s3186_s20 }
 0x832   : > { %p3821_p6 = pnand %p3824_p5, %p4512_p8 }
 0x834   : > { %4387 = dma.done.wait (!%p3821_p6), %s3187_s21, 1024  }
 0x835   : > { %4389 = vsyncadd (!%p3821_p6), %s3187_s21, 4294966272  ;;  %s16_s19 = sadd.s32 1, %s4420_s19   ;;  %s6293_s12 = smov %s4396_s13 }
 0x836   : > { %p13_p7 = scmp.ge.s32.totalorder %s16_s19, 6   ;;  %s6294_s13 = smov %s4400_s14 }
 0x837   : > { %s6295_s14 = smov %s4521_s30  ;;  %s6296_s15 = smov %s4412_s17 }
 0x838   : > { %s6297_s16 = smov %s4416_s18  ;;  %s6298_s17 = smov %s6301_s22 }
 0x839   : > { %s6299_s18 = smov %s6305_s23  ;;  %15 = sbr.rel (!%p13_p7) target bundleno = 5 (0x5), region = 67 }
 0x840   :  { %3192 = vsyncpa [#allocation3], 1 }
 0x841   :  { %3194 = vsyncpa [#allocation3 + $0x1], 1 }

</bundles_post_ra>
